<compile_context>
chip_gen: v7x
topology: tpu7x:2x2x1
jax: 0.10.0
libtpu: 0.0.40
codegen_flags: <defaults>
</compile_context>

<pallas_src>
import jax
import jax.numpy as jnp
from jax.experimental import pallas as pl
from jax.experimental.pallas import tpu as pltpu

# Hidden sizes from the PyTorch module.
H1, H2, H3, H4 = 8, 4, 4, 8


def _cell_update(gates, c, h):
    """LSTM nonlinearity with gates pre-ordered [i, f, o, g]."""
    ifo = jax.nn.sigmoid(gates[:, :3 * h])     # one EUP pass covers i, f, o
    g = jnp.tanh(gates[:, 3 * h:])             # one EUP pass for g
    i = ifo[:, 0 * h:1 * h]
    f = ifo[:, 1 * h:2 * h]
    o = ifo[:, 2 * h:3 * h]
    c_new = f * c + i * g
    h_new = o * jnp.tanh(c_new)
    return h_new, c_new


def autoencoder_kernel(x_ref,                          # (T*B, D), rows = (t, b)
                       w_ih1_ref, w_hh1_ref, b1_ref,   # (D,4H1) (H1,4H1) (1,4H1)
                       w_f2_ref, b2_ref,               # (H1+H2,4H2) (1,4H2)
                       wb_ref, bb_ref,                 # (H2,H2) (1,H2)
                       w_ih3_ref, w_hh3_ref, b3_ref,   # (H2,4H3) (H3,4H3) (1,4H3)
                       w_f4_ref, b4_ref,               # (H3+H4,4H4) (1,4H4)
                       wo_blk_ref, bo_blk_ref,         # (T*H4,T*D) (1,T*D)
                       y_ref,                          # (B, T*D)
                       h4_buf):                        # VMEM scratch (B, T*H4)
    B = y_ref.shape[0]
    T = x_ref.shape[0] // B

    x = x_ref[...].astype(jnp.float32)
    w_ih1, w_hh1, b1 = w_ih1_ref[...], w_hh1_ref[...], b1_ref[...]
    w_f2, b2 = w_f2_ref[...], b2_ref[...]
    wb, bb = wb_ref[...], bb_ref[...]
    w_ih3, w_hh3, b3 = w_ih3_ref[...], w_hh3_ref[...], b3_ref[...]
    w_f4, b4 = w_f4_ref[...], b4_ref[...]
    wo_blk, bo_blk = wo_blk_ref[...], bo_blk_ref[...]

    # encoder_1 input projection for ALL timesteps: one matmul, off the
    # serial recurrence.  Bias folded in.
    x_proj = jnp.dot(x, w_ih1, preferred_element_type=jnp.float32) + b1    # (T*B, 4H1)

    h1 = jnp.zeros((B, H1), jnp.float32); c1 = jnp.zeros((B, H1), jnp.float32)
    h2 = jnp.zeros((B, H2), jnp.float32); c2 = jnp.zeros((B, H2), jnp.float32)
    for t in range(T):                                  # statically unrolled (T=8)
        g1 = x_proj[t * B:(t + 1) * B, :] + jnp.dot(
            h1, w_hh1, preferred_element_type=jnp.float32)
        h1, c1 = _cell_update(g1, c1, H1)
        # encoder_2: fused input+recurrent matmul on [h1 | h2].
        g2 = jnp.dot(jnp.concatenate([h1, h2], axis=-1), w_f2,
                     preferred_element_type=jnp.float32) + b2
        h2, c2 = _cell_update(g2, c2, H2)

    # bridge Linear(4, 4) on encoder_2's final hidden state.
    z = jnp.dot(h2, wb, preferred_element_type=jnp.float32) + bb           # (B, H2)

    # decoder_1 input projection: z is constant over time -> hoisted.
    zg = jnp.dot(z, w_ih3, preferred_element_type=jnp.float32) + b3        # (B, 4H3)

    h3 = jnp.zeros((B, H3), jnp.float32); c3 = jnp.zeros((B, H3), jnp.float32)
    h4 = jnp.zeros((B, H4), jnp.float32); c4 = jnp.zeros((B, H4), jnp.float32)
    for t in range(T):
        g3 = zg + jnp.dot(h3, w_hh3, preferred_element_type=jnp.float32)
        h3, c3 = _cell_update(g3, c3, H3)
        g4 = jnp.dot(jnp.concatenate([h3, h4], axis=-1), w_f4,
                     preferred_element_type=jnp.float32) + b4
        h4, c4 = _cell_update(g4, c4, H4)
        h4_buf[:, t * H4:(t + 1) * H4] = h4            # cheap VMEM scratch write

    # Output Linear for all timesteps as ONE block-diagonal matmul and a
    # single lane-dense (B, T*D) store (T*D == 128 lanes at D=16, T=8).
    y = jnp.dot(h4_buf[...], wo_blk, preferred_element_type=jnp.float32) + bo_blk
    y_ref[...] = y.astype(y_ref.dtype)


# ----------------------- host-side weight preparation -----------------------

def _reorder_rows(w):
    """Permute PyTorch gate blocks [i, f, g, o] (rows) -> [i, f, o, g]."""
    h = w.shape[0] // 4
    return jnp.concatenate([w[:2 * h], w[3 * h:], w[2 * h:3 * h]], axis=0)


def _reorder_cols(b):
    h = b.shape[-1] // 4
    return jnp.concatenate([b[:, :2 * h], b[:, 3 * h:], b[:, 2 * h:3 * h]], axis=-1)


def prepare_params(params, seq_n):
    """PyTorch-layout params -> gate-reordered / pre-transposed / fused layout."""
    (w_ih1, w_hh1, b1, w_ih2, w_hh2, b2, wb, bb,
     w_ih3, w_hh3, b3, w_ih4, w_hh4, b4, wo, bo) = params

    k_w_ih1 = _reorder_rows(w_ih1).T                    # (D, 4H1)
    k_w_hh1 = _reorder_rows(w_hh1).T                    # (H1, 4H1)
    k_b1 = _reorder_cols(b1)

    k_w_f2 = jnp.concatenate([_reorder_rows(w_ih2).T,   # (H1+H2, 4H2)
                              _reorder_rows(w_hh2).T], axis=0)
    k_b2 = _reorder_cols(b2)

    k_wb, k_bb = wb.T, bb

    k_w_ih3 = _reorder_rows(w_ih3).T                    # (H2, 4H3)
    k_w_hh3 = _reorder_rows(w_hh3).T                    # (H3, 4H3)
    k_b3 = _reorder_cols(b3)

    k_w_f4 = jnp.concatenate([_reorder_rows(w_ih4).T,   # (H3+H4, 4H4)
                              _reorder_rows(w_hh4).T], axis=0)
    k_b4 = _reorder_cols(b4)

    wo_t = wo.T                                         # (H4, D)
    k_wo_blk = jax.scipy.linalg.block_diag(*([wo_t] * seq_n))   # (T*H4, T*D)
    k_bo_blk = jnp.tile(bo, (1, seq_n))                 # (1, T*D)

    return (k_w_ih1, k_w_hh1, k_b1, k_w_f2, k_b2, k_wb, k_bb,
            k_w_ih3, k_w_hh3, k_b3, k_w_f4, k_b4, k_wo_blk, k_bo_blk)


def lstm_autoencoder_forward(x, params):
    """x: (B, T, input_size) float32.  params: PyTorch-layout weight tuple."""
    B, T, D = x.shape
    kparams = prepare_params(params, T)
    # (B, T, D) -> (T*B, D) with rows ordered (t, b): the per-timestep slice of
    # the precomputed input projection is then a contiguous (B, 4H1) block.
    x_tb = jnp.transpose(x, (1, 0, 2)).reshape(T * B, D)

    vmem = pl.BlockSpec(memory_space=pltpu.MemorySpace.VMEM)
    args = (x_tb,) + kparams
    # Everything fits trivially in VMEM at these shapes -> single program, no
    # grid.  For larger batches, add grid=(B//tb,) with
    # dimension_semantics=("parallel",) to use both v7x TensorCores.
    y_slab = pl.pallas_call(
        autoencoder_kernel,
        out_shape=jax.ShapeDtypeStruct((B, T * D), x.dtype),   # lane-dense slab
        in_specs=[vmem] * len(args),
        out_specs=vmem,
        scratch_shapes=[pltpu.VMEM((B, T * H4), jnp.float32)],
    )(*args)
    return y_slab.reshape(B, T, D)


# --------------------------- init + pure-JAX reference ----------------------

def init_params(key, input_size):
    """Deterministic PyTorch-style uniform(-1/sqrt(H), 1/sqrt(H)) init."""
    def lstm(k, d_in, h):
        bound = 1.0 / float(h) ** 0.5
        k1, k2, k3, k4 = jax.random.split(k, 4)
        w_ih = jax.random.uniform(k1, (4 * h, d_in), jnp.float32, -bound, bound)
        w_hh = jax.random.uniform(k2, (4 * h, h), jnp.float32, -bound, bound)
        b_ih = jax.random.uniform(k3, (4 * h,), jnp.float32, -bound, bound)
        b_hh = jax.random.uniform(k4, (4 * h,), jnp.float32, -bound, bound)
        return w_ih, w_hh, (b_ih + b_hh).reshape(1, 4 * h)

    def linear(k, d_in, d_out):
        bound = 1.0 / float(d_in) ** 0.5
        k1, k2 = jax.random.split(k)
        w = jax.random.uniform(k1, (d_out, d_in), jnp.float32, -bound, bound)
        b = jax.random.uniform(k2, (1, d_out), jnp.float32, -bound, bound)
        return w, b

    k_e1, k_e2, k_br, k_d1, k_d2, k_out = jax.random.split(key, 6)
    return (lstm(k_e1, input_size, H1) + lstm(k_e2, H1, H2) + linear(k_br, H2, H2)
            + lstm(k_d1, H2, H3) + lstm(k_d2, H3, H4) + linear(k_out, H4, input_size))


def reference_forward(x, params):
    """Pure-JAX reference with original PyTorch gate order / layouts."""
    (w_ih1, w_hh1, b1, w_ih2, w_hh2, b2, wb, bb,
     w_ih3, w_hh3, b3, w_ih4, w_hh4, b4, wo, bo) = params
    B, T, _ = x.shape
    hp = jax.lax.Precision.HIGHEST

    def step(xt, h, c, w_ih, w_hh, b):
        hsz = h.shape[-1]
        g = (jnp.dot(xt, w_ih.T, precision=hp)
             + jnp.dot(h, w_hh.T, precision=hp) + b)
        i = jax.nn.sigmoid(g[:, :hsz])
        f = jax.nn.sigmoid(g[:, hsz:2 * hsz])
        gg = jnp.tanh(g[:, 2 * hsz:3 * hsz])
        o = jax.nn.sigmoid(g[:, 3 * hsz:])
        c = f * c + i * gg
        return o * jnp.tanh(c), c

    h1 = jnp.zeros((B, H1)); c1 = jnp.zeros((B, H1))
    h2 = jnp.zeros((B, H2)); c2 = jnp.zeros((B, H2))
    for t in range(T):
        h1, c1 = step(x[:, t], h1, c1, w_ih1, w_hh1, b1)
        h2, c2 = step(h1, h2, c2, w_ih2, w_hh2, b2)
    z = jnp.dot(h2, wb.T, precision=hp) + bb
    h3 = jnp.zeros((B, H3)); c3 = jnp.zeros((B, H3))
    h4 = jnp.zeros((B, H4)); c4 = jnp.zeros((B, H4))
    ys = []
    for t in range(T):
        h3, c3 = step(z, h3, c3, w_ih3, w_hh3, b3)
        h4, c4 = step(h3, h4, c4, w_ih4, w_hh4, b4)
        ys.append(jnp.dot(h4, wo.T, precision=hp) + bo)
    return jnp.stack(ys, axis=1)


if __name__ == "__main__":
    key = jax.random.PRNGKey(0)
    B, T, D = 2, 8, 16                 # batch, seq_n, input_size
    kx, kp = jax.random.split(key)
    x = jax.random.normal(kx, (B, T, D), jnp.float32)
    params = init_params(kp, D)

    y = jax.block_until_ready(lstm_autoencoder_forward(x, params))

    assert y.shape == (B, T, D), y.shape
    assert bool(jnp.all(jnp.isfinite(y)))

    y_ref = jax.block_until_ready(reference_forward(x, params))
    max_err = float(jnp.max(jnp.abs(y - y_ref)))
    assert max_err < 5e-3, f"mismatch vs reference: {max_err}"
    print("KERNEL_OK")
</pallas_src>

<mosaic_0001>
module attributes {stable_mosaic.version = 11 : i64} {
  func.func @autoencoder_kernel(%arg0: memref<16x16xf32, #tpu.memory_space<vmem>>, %arg1: memref<16x32xf32, #tpu.memory_space<vmem>>, %arg2: memref<8x32xf32, #tpu.memory_space<vmem>>, %arg3: memref<1x32xf32, #tpu.memory_space<vmem>>, %arg4: memref<12x16xf32, #tpu.memory_space<vmem>>, %arg5: memref<1x16xf32, #tpu.memory_space<vmem>>, %arg6: memref<4x4xf32, #tpu.memory_space<vmem>>, %arg7: memref<1x4xf32, #tpu.memory_space<vmem>>, %arg8: memref<4x16xf32, #tpu.memory_space<vmem>>, %arg9: memref<4x16xf32, #tpu.memory_space<vmem>>, %arg10: memref<1x16xf32, #tpu.memory_space<vmem>>, %arg11: memref<12x32xf32, #tpu.memory_space<vmem>>, %arg12: memref<1x32xf32, #tpu.memory_space<vmem>>, %arg13: memref<64x128xf32, #tpu.memory_space<vmem>>, %arg14: memref<1x128xf32, #tpu.memory_space<vmem>>, %arg15: memref<2x128xf32, #tpu.memory_space<vmem>>, %arg16: memref<2x64xf32, #tpu.memory_space<vmem>>) attributes {dimension_semantics = [], scalar_prefetch = 0 : i64, scratch_operands = 1 : i64, tpu.core_type = #tpu.core_type<tc>} {
    %c0 = arith.constant 0 : index
    %c0_0 = arith.constant 0 : index
    %0 = vector.load %arg0[%c0, %c0_0] : memref<16x16xf32, #tpu.memory_space<vmem>>, vector<16x16xf32>
    %c0_1 = arith.constant 0 : index
    %c0_2 = arith.constant 0 : index
    %1 = vector.load %arg1[%c0_1, %c0_2] : memref<16x32xf32, #tpu.memory_space<vmem>>, vector<16x32xf32>
    %c0_3 = arith.constant 0 : index
    %c0_4 = arith.constant 0 : index
    %2 = vector.load %arg2[%c0_3, %c0_4] : memref<8x32xf32, #tpu.memory_space<vmem>>, vector<8x32xf32>
    %c0_5 = arith.constant 0 : index
    %c0_6 = arith.constant 0 : index
    %3 = vector.load %arg3[%c0_5, %c0_6] : memref<1x32xf32, #tpu.memory_space<vmem>>, vector<1x32xf32>
    %c0_7 = arith.constant 0 : index
    %c0_8 = arith.constant 0 : index
    %4 = vector.load %arg4[%c0_7, %c0_8] : memref<12x16xf32, #tpu.memory_space<vmem>>, vector<12x16xf32>
    %c0_9 = arith.constant 0 : index
    %c0_10 = arith.constant 0 : index
    %5 = vector.load %arg5[%c0_9, %c0_10] : memref<1x16xf32, #tpu.memory_space<vmem>>, vector<1x16xf32>
    %c0_11 = arith.constant 0 : index
    %c0_12 = arith.constant 0 : index
    %6 = vector.load %arg6[%c0_11, %c0_12] : memref<4x4xf32, #tpu.memory_space<vmem>>, vector<4x4xf32>
    %c0_13 = arith.constant 0 : index
    %c0_14 = arith.constant 0 : index
    %7 = vector.load %arg7[%c0_13, %c0_14] : memref<1x4xf32, #tpu.memory_space<vmem>>, vector<1x4xf32>
    %c0_15 = arith.constant 0 : index
    %c0_16 = arith.constant 0 : index
    %8 = vector.load %arg8[%c0_15, %c0_16] : memref<4x16xf32, #tpu.memory_space<vmem>>, vector<4x16xf32>
    %c0_17 = arith.constant 0 : index
    %c0_18 = arith.constant 0 : index
    %9 = vector.load %arg9[%c0_17, %c0_18] : memref<4x16xf32, #tpu.memory_space<vmem>>, vector<4x16xf32>
    %c0_19 = arith.constant 0 : index
    %c0_20 = arith.constant 0 : index
    %10 = vector.load %arg10[%c0_19, %c0_20] : memref<1x16xf32, #tpu.memory_space<vmem>>, vector<1x16xf32>
    %c0_21 = arith.constant 0 : index
    %c0_22 = arith.constant 0 : index
    %11 = vector.load %arg11[%c0_21, %c0_22] : memref<12x32xf32, #tpu.memory_space<vmem>>, vector<12x32xf32>
    %c0_23 = arith.constant 0 : index
    %c0_24 = arith.constant 0 : index
    %12 = vector.load %arg12[%c0_23, %c0_24] : memref<1x32xf32, #tpu.memory_space<vmem>>, vector<1x32xf32>
    %c0_25 = arith.constant 0 : index
    %c0_26 = arith.constant 0 : index
    %13 = vector.load %arg13[%c0_25, %c0_26] : memref<64x128xf32, #tpu.memory_space<vmem>>, vector<64x128xf32>
    %c0_27 = arith.constant 0 : index
    %c0_28 = arith.constant 0 : index
    %14 = vector.load %arg14[%c0_27, %c0_28] : memref<1x128xf32, #tpu.memory_space<vmem>>, vector<1x128xf32>
    %cst = arith.constant dense<0.000000e+00> : vector<16x32xf32>
    %15 = tpu.matmul %0, %1, %cst {dimension_numbers = #tpu.dot_dimension_numbers<[1], [0], [0], [1], [0, 0, 1, 1], [], []>} : vector<16x16xf32>, vector<16x32xf32>, vector<16x32xf32> -> vector<16x32xf32>
    %16 = vector.broadcast %3 : vector<1x32xf32> to vector<16x32xf32>
    %17 = arith.addf %15, %16 : vector<16x32xf32>
    %cst_29 = arith.constant 0.000000e+00 : f32
    %18 = vector.broadcast %cst_29 : f32 to vector<2x8xf32>
    %cst_30 = arith.constant 0.000000e+00 : f32
    %19 = vector.broadcast %cst_30 : f32 to vector<2x8xf32>
    %cst_31 = arith.constant 0.000000e+00 : f32
    %20 = vector.broadcast %cst_31 : f32 to vector<2x4xf32>
    %cst_32 = arith.constant 0.000000e+00 : f32
    %21 = vector.broadcast %cst_32 : f32 to vector<2x4xf32>
    %22 = vector.extract_strided_slice %17 {offsets = [0, 0], sizes = [2, 32], strides = [1, 1]} : vector<16x32xf32> to vector<2x32xf32>
    %cst_33 = arith.constant dense<0.000000e+00> : vector<2x32xf32>
    %23 = tpu.matmul %18, %2, %cst_33 {dimension_numbers = #tpu.dot_dimension_numbers<[1], [0], [0], [1], [0, 0, 1, 1], [], []>} : vector<2x8xf32>, vector<8x32xf32>, vector<2x32xf32> -> vector<2x32xf32>
    %24 = arith.addf %22, %23 : vector<2x32xf32>
    %25 = vector.extract_strided_slice %24 {offsets = [0, 0], sizes = [2, 24], strides = [1, 1]} : vector<2x32xf32> to vector<2x24xf32>
    %26 = arith.negf %25 : vector<2x24xf32>
    %27 = math.exp %26 : vector<2x24xf32>
    %cst_34 = arith.constant 1.000000e+00 : f32
    %28 = vector.broadcast %cst_34 : f32 to vector<2x24xf32>
    %29 = arith.addf %28, %27 : vector<2x24xf32>
    %30 = arith.divf %28, %29 : vector<2x24xf32>
    %31 = vector.extract_strided_slice %24 {offsets = [0, 24], sizes = [2, 8], strides = [1, 1]} : vector<2x32xf32> to vector<2x8xf32>
    %32 = math.tanh %31 : vector<2x8xf32>
    %33 = vector.extract_strided_slice %30 {offsets = [0, 0], sizes = [2, 8], strides = [1, 1]} : vector<2x24xf32> to vector<2x8xf32>
    %34 = vector.extract_strided_slice %30 {offsets = [0, 8], sizes = [2, 8], strides = [1, 1]} : vector<2x24xf32> to vector<2x8xf32>
    %35 = vector.extract_strided_slice %30 {offsets = [0, 16], sizes = [2, 8], strides = [1, 1]} : vector<2x24xf32> to vector<2x8xf32>
    %36 = arith.mulf %34, %19 : vector<2x8xf32>
    %37 = arith.mulf %33, %32 : vector<2x8xf32>
    %38 = arith.addf %36, %37 : vector<2x8xf32>
    %39 = math.tanh %38 : vector<2x8xf32>
    %40 = arith.mulf %35, %39 : vector<2x8xf32>
    %41 = tpu.concatenate %40, %20 in 1 : vector<2x8xf32>, vector<2x4xf32> -> vector<2x12xf32>
    %cst_35 = arith.constant dense<0.000000e+00> : vector<2x16xf32>
    %42 = tpu.matmul %41, %4, %cst_35 {dimension_numbers = #tpu.dot_dimension_numbers<[1], [0], [0], [1], [0, 0, 1, 1], [], []>} : vector<2x12xf32>, vector<12x16xf32>, vector<2x16xf32> -> vector<2x16xf32>
    %43 = vector.broadcast %5 : vector<1x16xf32> to vector<2x16xf32>
    %44 = arith.addf %42, %43 : vector<2x16xf32>
    %45 = vector.extract_strided_slice %44 {offsets = [0, 0], sizes = [2, 12], strides = [1, 1]} : vector<2x16xf32> to vector<2x12xf32>
    %46 = arith.negf %45 : vector<2x12xf32>
    %47 = math.exp %46 : vector<2x12xf32>
    %cst_36 = arith.constant 1.000000e+00 : f32
    %48 = vector.broadcast %cst_36 : f32 to vector<2x12xf32>
    %49 = arith.addf %48, %47 : vector<2x12xf32>
    %50 = arith.divf %48, %49 : vector<2x12xf32>
    %51 = vector.extract_strided_slice %44 {offsets = [0, 12], sizes = [2, 4], strides = [1, 1]} : vector<2x16xf32> to vector<2x4xf32>
    %52 = math.tanh %51 : vector<2x4xf32>
    %53 = vector.extract_strided_slice %50 {offsets = [0, 0], sizes = [2, 4], strides = [1, 1]} : vector<2x12xf32> to vector<2x4xf32>
    %54 = vector.extract_strided_slice %50 {offsets = [0, 4], sizes = [2, 4], strides = [1, 1]} : vector<2x12xf32> to vector<2x4xf32>
    %55 = vector.extract_strided_slice %50 {offsets = [0, 8], sizes = [2, 4], strides = [1, 1]} : vector<2x12xf32> to vector<2x4xf32>
    %56 = arith.mulf %54, %21 : vector<2x4xf32>
    %57 = arith.mulf %53, %52 : vector<2x4xf32>
    %58 = arith.addf %56, %57 : vector<2x4xf32>
    %59 = math.tanh %58 : vector<2x4xf32>
    %60 = arith.mulf %55, %59 : vector<2x4xf32>
    %61 = vector.extract_strided_slice %17 {offsets = [2, 0], sizes = [2, 32], strides = [1, 1]} : vector<16x32xf32> to vector<2x32xf32>
    %cst_37 = arith.constant dense<0.000000e+00> : vector<2x32xf32>
    %62 = tpu.matmul %40, %2, %cst_37 {dimension_numbers = #tpu.dot_dimension_numbers<[1], [0], [0], [1], [0, 0, 1, 1], [], []>} : vector<2x8xf32>, vector<8x32xf32>, vector<2x32xf32> -> vector<2x32xf32>
    %63 = arith.addf %61, %62 : vector<2x32xf32>
    %64 = vector.extract_strided_slice %63 {offsets = [0, 0], sizes = [2, 24], strides = [1, 1]} : vector<2x32xf32> to vector<2x24xf32>
    %65 = arith.negf %64 : vector<2x24xf32>
    %66 = math.exp %65 : vector<2x24xf32>
    %cst_38 = arith.constant 1.000000e+00 : f32
    %67 = vector.broadcast %cst_38 : f32 to vector<2x24xf32>
    %68 = arith.addf %67, %66 : vector<2x24xf32>
    %69 = arith.divf %67, %68 : vector<2x24xf32>
    %70 = vector.extract_strided_slice %63 {offsets = [0, 24], sizes = [2, 8], strides = [1, 1]} : vector<2x32xf32> to vector<2x8xf32>
    %71 = math.tanh %70 : vector<2x8xf32>
    %72 = vector.extract_strided_slice %69 {offsets = [0, 0], sizes = [2, 8], strides = [1, 1]} : vector<2x24xf32> to vector<2x8xf32>
    %73 = vector.extract_strided_slice %69 {offsets = [0, 8], sizes = [2, 8], strides = [1, 1]} : vector<2x24xf32> to vector<2x8xf32>
    %74 = vector.extract_strided_slice %69 {offsets = [0, 16], sizes = [2, 8], strides = [1, 1]} : vector<2x24xf32> to vector<2x8xf32>
    %75 = arith.mulf %73, %38 : vector<2x8xf32>
    %76 = arith.mulf %72, %71 : vector<2x8xf32>
    %77 = arith.addf %75, %76 : vector<2x8xf32>
    %78 = math.tanh %77 : vector<2x8xf32>
    %79 = arith.mulf %74, %78 : vector<2x8xf32>
    %80 = tpu.concatenate %79, %60 in 1 : vector<2x8xf32>, vector<2x4xf32> -> vector<2x12xf32>
    %cst_39 = arith.constant dense<0.000000e+00> : vector<2x16xf32>
    %81 = tpu.matmul %80, %4, %cst_39 {dimension_numbers = #tpu.dot_dimension_numbers<[1], [0], [0], [1], [0, 0, 1, 1], [], []>} : vector<2x12xf32>, vector<12x16xf32>, vector<2x16xf32> -> vector<2x16xf32>
    %82 = vector.broadcast %5 : vector<1x16xf32> to vector<2x16xf32>
    %83 = arith.addf %81, %82 : vector<2x16xf32>
    %84 = vector.extract_strided_slice %83 {offsets = [0, 0], sizes = [2, 12], strides = [1, 1]} : vector<2x16xf32> to vector<2x12xf32>
    %85 = arith.negf %84 : vector<2x12xf32>
    %86 = math.exp %85 : vector<2x12xf32>
    %cst_40 = arith.constant 1.000000e+00 : f32
    %87 = vector.broadcast %cst_40 : f32 to vector<2x12xf32>
    %88 = arith.addf %87, %86 : vector<2x12xf32>
    %89 = arith.divf %87, %88 : vector<2x12xf32>
    %90 = vector.extract_strided_slice %83 {offsets = [0, 12], sizes = [2, 4], strides = [1, 1]} : vector<2x16xf32> to vector<2x4xf32>
    %91 = math.tanh %90 : vector<2x4xf32>
    %92 = vector.extract_strided_slice %89 {offsets = [0, 0], sizes = [2, 4], strides = [1, 1]} : vector<2x12xf32> to vector<2x4xf32>
    %93 = vector.extract_strided_slice %89 {offsets = [0, 4], sizes = [2, 4], strides = [1, 1]} : vector<2x12xf32> to vector<2x4xf32>
    %94 = vector.extract_strided_slice %89 {offsets = [0, 8], sizes = [2, 4], strides = [1, 1]} : vector<2x12xf32> to vector<2x4xf32>
    %95 = arith.mulf %93, %58 : vector<2x4xf32>
    %96 = arith.mulf %92, %91 : vector<2x4xf32>
    %97 = arith.addf %95, %96 : vector<2x4xf32>
    %98 = math.tanh %97 : vector<2x4xf32>
    %99 = arith.mulf %94, %98 : vector<2x4xf32>
    %100 = vector.extract_strided_slice %17 {offsets = [4, 0], sizes = [2, 32], strides = [1, 1]} : vector<16x32xf32> to vector<2x32xf32>
    %cst_41 = arith.constant dense<0.000000e+00> : vector<2x32xf32>
    %101 = tpu.matmul %79, %2, %cst_41 {dimension_numbers = #tpu.dot_dimension_numbers<[1], [0], [0], [1], [0, 0, 1, 1], [], []>} : vector<2x8xf32>, vector<8x32xf32>, vector<2x32xf32> -> vector<2x32xf32>
    %102 = arith.addf %100, %101 : vector<2x32xf32>
    %103 = vector.extract_strided_slice %102 {offsets = [0, 0], sizes = [2, 24], strides = [1, 1]} : vector<2x32xf32> to vector<2x24xf32>
    %104 = arith.negf %103 : vector<2x24xf32>
    %105 = math.exp %104 : vector<2x24xf32>
    %cst_42 = arith.constant 1.000000e+00 : f32
    %106 = vector.broadcast %cst_42 : f32 to vector<2x24xf32>
    %107 = arith.addf %106, %105 : vector<2x24xf32>
    %108 = arith.divf %106, %107 : vector<2x24xf32>
    %109 = vector.extract_strided_slice %102 {offsets = [0, 24], sizes = [2, 8], strides = [1, 1]} : vector<2x32xf32> to vector<2x8xf32>
    %110 = math.tanh %109 : vector<2x8xf32>
    %111 = vector.extract_strided_slice %108 {offsets = [0, 0], sizes = [2, 8], strides = [1, 1]} : vector<2x24xf32> to vector<2x8xf32>
    %112 = vector.extract_strided_slice %108 {offsets = [0, 8], sizes = [2, 8], strides = [1, 1]} : vector<2x24xf32> to vector<2x8xf32>
    %113 = vector.extract_strided_slice %108 {offsets = [0, 16], sizes = [2, 8], strides = [1, 1]} : vector<2x24xf32> to vector<2x8xf32>
    %114 = arith.mulf %112, %77 : vector<2x8xf32>
    %115 = arith.mulf %111, %110 : vector<2x8xf32>
    %116 = arith.addf %114, %115 : vector<2x8xf32>
    %117 = math.tanh %116 : vector<2x8xf32>
    %118 = arith.mulf %113, %117 : vector<2x8xf32>
    %119 = tpu.concatenate %118, %99 in 1 : vector<2x8xf32>, vector<2x4xf32> -> vector<2x12xf32>
    %cst_43 = arith.constant dense<0.000000e+00> : vector<2x16xf32>
    %120 = tpu.matmul %119, %4, %cst_43 {dimension_numbers = #tpu.dot_dimension_numbers<[1], [0], [0], [1], [0, 0, 1, 1], [], []>} : vector<2x12xf32>, vector<12x16xf32>, vector<2x16xf32> -> vector<2x16xf32>
    %121 = vector.broadcast %5 : vector<1x16xf32> to vector<2x16xf32>
    %122 = arith.addf %120, %121 : vector<2x16xf32>
    %123 = vector.extract_strided_slice %122 {offsets = [0, 0], sizes = [2, 12], strides = [1, 1]} : vector<2x16xf32> to vector<2x12xf32>
    %124 = arith.negf %123 : vector<2x12xf32>
    %125 = math.exp %124 : vector<2x12xf32>
    %cst_44 = arith.constant 1.000000e+00 : f32
    %126 = vector.broadcast %cst_44 : f32 to vector<2x12xf32>
    %127 = arith.addf %126, %125 : vector<2x12xf32>
    %128 = arith.divf %126, %127 : vector<2x12xf32>
    %129 = vector.extract_strided_slice %122 {offsets = [0, 12], sizes = [2, 4], strides = [1, 1]} : vector<2x16xf32> to vector<2x4xf32>
    %130 = math.tanh %129 : vector<2x4xf32>
    %131 = vector.extract_strided_slice %128 {offsets = [0, 0], sizes = [2, 4], strides = [1, 1]} : vector<2x12xf32> to vector<2x4xf32>
    %132 = vector.extract_strided_slice %128 {offsets = [0, 4], sizes = [2, 4], strides = [1, 1]} : vector<2x12xf32> to vector<2x4xf32>
    %133 = vector.extract_strided_slice %128 {offsets = [0, 8], sizes = [2, 4], strides = [1, 1]} : vector<2x12xf32> to vector<2x4xf32>
    %134 = arith.mulf %132, %97 : vector<2x4xf32>
    %135 = arith.mulf %131, %130 : vector<2x4xf32>
    %136 = arith.addf %134, %135 : vector<2x4xf32>
    %137 = math.tanh %136 : vector<2x4xf32>
    %138 = arith.mulf %133, %137 : vector<2x4xf32>
    %139 = vector.extract_strided_slice %17 {offsets = [6, 0], sizes = [2, 32], strides = [1, 1]} : vector<16x32xf32> to vector<2x32xf32>
    %cst_45 = arith.constant dense<0.000000e+00> : vector<2x32xf32>
    %140 = tpu.matmul %118, %2, %cst_45 {dimension_numbers = #tpu.dot_dimension_numbers<[1], [0], [0], [1], [0, 0, 1, 1], [], []>} : vector<2x8xf32>, vector<8x32xf32>, vector<2x32xf32> -> vector<2x32xf32>
    %141 = arith.addf %139, %140 : vector<2x32xf32>
    %142 = vector.extract_strided_slice %141 {offsets = [0, 0], sizes = [2, 24], strides = [1, 1]} : vector<2x32xf32> to vector<2x24xf32>
    %143 = arith.negf %142 : vector<2x24xf32>
    %144 = math.exp %143 : vector<2x24xf32>
    %cst_46 = arith.constant 1.000000e+00 : f32
    %145 = vector.broadcast %cst_46 : f32 to vector<2x24xf32>
    %146 = arith.addf %145, %144 : vector<2x24xf32>
    %147 = arith.divf %145, %146 : vector<2x24xf32>
    %148 = vector.extract_strided_slice %141 {offsets = [0, 24], sizes = [2, 8], strides = [1, 1]} : vector<2x32xf32> to vector<2x8xf32>
    %149 = math.tanh %148 : vector<2x8xf32>
    %150 = vector.extract_strided_slice %147 {offsets = [0, 0], sizes = [2, 8], strides = [1, 1]} : vector<2x24xf32> to vector<2x8xf32>
    %151 = vector.extract_strided_slice %147 {offsets = [0, 8], sizes = [2, 8], strides = [1, 1]} : vector<2x24xf32> to vector<2x8xf32>
    %152 = vector.extract_strided_slice %147 {offsets = [0, 16], sizes = [2, 8], strides = [1, 1]} : vector<2x24xf32> to vector<2x8xf32>
    %153 = arith.mulf %151, %116 : vector<2x8xf32>
    %154 = arith.mulf %150, %149 : vector<2x8xf32>
    %155 = arith.addf %153, %154 : vector<2x8xf32>
    %156 = math.tanh %155 : vector<2x8xf32>
    %157 = arith.mulf %152, %156 : vector<2x8xf32>
    %158 = tpu.concatenate %157, %138 in 1 : vector<2x8xf32>, vector<2x4xf32> -> vector<2x12xf32>
    %cst_47 = arith.constant dense<0.000000e+00> : vector<2x16xf32>
    %159 = tpu.matmul %158, %4, %cst_47 {dimension_numbers = #tpu.dot_dimension_numbers<[1], [0], [0], [1], [0, 0, 1, 1], [], []>} : vector<2x12xf32>, vector<12x16xf32>, vector<2x16xf32> -> vector<2x16xf32>
    %160 = vector.broadcast %5 : vector<1x16xf32> to vector<2x16xf32>
    %161 = arith.addf %159, %160 : vector<2x16xf32>
    %162 = vector.extract_strided_slice %161 {offsets = [0, 0], sizes = [2, 12], strides = [1, 1]} : vector<2x16xf32> to vector<2x12xf32>
    %163 = arith.negf %162 : vector<2x12xf32>
    %164 = math.exp %163 : vector<2x12xf32>
    %cst_48 = arith.constant 1.000000e+00 : f32
    %165 = vector.broadcast %cst_48 : f32 to vector<2x12xf32>
    %166 = arith.addf %165, %164 : vector<2x12xf32>
    %167 = arith.divf %165, %166 : vector<2x12xf32>
    %168 = vector.extract_strided_slice %161 {offsets = [0, 12], sizes = [2, 4], strides = [1, 1]} : vector<2x16xf32> to vector<2x4xf32>
    %169 = math.tanh %168 : vector<2x4xf32>
    %170 = vector.extract_strided_slice %167 {offsets = [0, 0], sizes = [2, 4], strides = [1, 1]} : vector<2x12xf32> to vector<2x4xf32>
    %171 = vector.extract_strided_slice %167 {offsets = [0, 4], sizes = [2, 4], strides = [1, 1]} : vector<2x12xf32> to vector<2x4xf32>
    %172 = vector.extract_strided_slice %167 {offsets = [0, 8], sizes = [2, 4], strides = [1, 1]} : vector<2x12xf32> to vector<2x4xf32>
    %173 = arith.mulf %171, %136 : vector<2x4xf32>
    %174 = arith.mulf %170, %169 : vector<2x4xf32>
    %175 = arith.addf %173, %174 : vector<2x4xf32>
    %176 = math.tanh %175 : vector<2x4xf32>
    %177 = arith.mulf %172, %176 : vector<2x4xf32>
    %178 = vector.extract_strided_slice %17 {offsets = [8, 0], sizes = [2, 32], strides = [1, 1]} : vector<16x32xf32> to vector<2x32xf32>
    %cst_49 = arith.constant dense<0.000000e+00> : vector<2x32xf32>
    %179 = tpu.matmul %157, %2, %cst_49 {dimension_numbers = #tpu.dot_dimension_numbers<[1], [0], [0], [1], [0, 0, 1, 1], [], []>} : vector<2x8xf32>, vector<8x32xf32>, vector<2x32xf32> -> vector<2x32xf32>
    %180 = arith.addf %178, %179 : vector<2x32xf32>
    %181 = vector.extract_strided_slice %180 {offsets = [0, 0], sizes = [2, 24], strides = [1, 1]} : vector<2x32xf32> to vector<2x24xf32>
    %182 = arith.negf %181 : vector<2x24xf32>
    %183 = math.exp %182 : vector<2x24xf32>
    %cst_50 = arith.constant 1.000000e+00 : f32
    %184 = vector.broadcast %cst_50 : f32 to vector<2x24xf32>
    %185 = arith.addf %184, %183 : vector<2x24xf32>
    %186 = arith.divf %184, %185 : vector<2x24xf32>
    %187 = vector.extract_strided_slice %180 {offsets = [0, 24], sizes = [2, 8], strides = [1, 1]} : vector<2x32xf32> to vector<2x8xf32>
    %188 = math.tanh %187 : vector<2x8xf32>
    %189 = vector.extract_strided_slice %186 {offsets = [0, 0], sizes = [2, 8], strides = [1, 1]} : vector<2x24xf32> to vector<2x8xf32>
    %190 = vector.extract_strided_slice %186 {offsets = [0, 8], sizes = [2, 8], strides = [1, 1]} : vector<2x24xf32> to vector<2x8xf32>
    %191 = vector.extract_strided_slice %186 {offsets = [0, 16], sizes = [2, 8], strides = [1, 1]} : vector<2x24xf32> to vector<2x8xf32>
    %192 = arith.mulf %190, %155 : vector<2x8xf32>
    %193 = arith.mulf %189, %188 : vector<2x8xf32>
    %194 = arith.addf %192, %193 : vector<2x8xf32>
    %195 = math.tanh %194 : vector<2x8xf32>
    %196 = arith.mulf %191, %195 : vector<2x8xf32>
    %197 = tpu.concatenate %196, %177 in 1 : vector<2x8xf32>, vector<2x4xf32> -> vector<2x12xf32>
    %cst_51 = arith.constant dense<0.000000e+00> : vector<2x16xf32>
    %198 = tpu.matmul %197, %4, %cst_51 {dimension_numbers = #tpu.dot_dimension_numbers<[1], [0], [0], [1], [0, 0, 1, 1], [], []>} : vector<2x12xf32>, vector<12x16xf32>, vector<2x16xf32> -> vector<2x16xf32>
    %199 = vector.broadcast %5 : vector<1x16xf32> to vector<2x16xf32>
    %200 = arith.addf %198, %199 : vector<2x16xf32>
    %201 = vector.extract_strided_slice %200 {offsets = [0, 0], sizes = [2, 12], strides = [1, 1]} : vector<2x16xf32> to vector<2x12xf32>
    %202 = arith.negf %201 : vector<2x12xf32>
    %203 = math.exp %202 : vector<2x12xf32>
    %cst_52 = arith.constant 1.000000e+00 : f32
    %204 = vector.broadcast %cst_52 : f32 to vector<2x12xf32>
    %205 = arith.addf %204, %203 : vector<2x12xf32>
    %206 = arith.divf %204, %205 : vector<2x12xf32>
    %207 = vector.extract_strided_slice %200 {offsets = [0, 12], sizes = [2, 4], strides = [1, 1]} : vector<2x16xf32> to vector<2x4xf32>
    %208 = math.tanh %207 : vector<2x4xf32>
    %209 = vector.extract_strided_slice %206 {offsets = [0, 0], sizes = [2, 4], strides = [1, 1]} : vector<2x12xf32> to vector<2x4xf32>
    %210 = vector.extract_strided_slice %206 {offsets = [0, 4], sizes = [2, 4], strides = [1, 1]} : vector<2x12xf32> to vector<2x4xf32>
    %211 = vector.extract_strided_slice %206 {offsets = [0, 8], sizes = [2, 4], strides = [1, 1]} : vector<2x12xf32> to vector<2x4xf32>
    %212 = arith.mulf %210, %175 : vector<2x4xf32>
    %213 = arith.mulf %209, %208 : vector<2x4xf32>
    %214 = arith.addf %212, %213 : vector<2x4xf32>
    %215 = math.tanh %214 : vector<2x4xf32>
    %216 = arith.mulf %211, %215 : vector<2x4xf32>
    %217 = vector.extract_strided_slice %17 {offsets = [10, 0], sizes = [2, 32], strides = [1, 1]} : vector<16x32xf32> to vector<2x32xf32>
    %cst_53 = arith.constant dense<0.000000e+00> : vector<2x32xf32>
    %218 = tpu.matmul %196, %2, %cst_53 {dimension_numbers = #tpu.dot_dimension_numbers<[1], [0], [0], [1], [0, 0, 1, 1], [], []>} : vector<2x8xf32>, vector<8x32xf32>, vector<2x32xf32> -> vector<2x32xf32>
    %219 = arith.addf %217, %218 : vector<2x32xf32>
    %220 = vector.extract_strided_slice %219 {offsets = [0, 0], sizes = [2, 24], strides = [1, 1]} : vector<2x32xf32> to vector<2x24xf32>
    %221 = arith.negf %220 : vector<2x24xf32>
    %222 = math.exp %221 : vector<2x24xf32>
    %cst_54 = arith.constant 1.000000e+00 : f32
    %223 = vector.broadcast %cst_54 : f32 to vector<2x24xf32>
    %224 = arith.addf %223, %222 : vector<2x24xf32>
    %225 = arith.divf %223, %224 : vector<2x24xf32>
    %226 = vector.extract_strided_slice %219 {offsets = [0, 24], sizes = [2, 8], strides = [1, 1]} : vector<2x32xf32> to vector<2x8xf32>
    %227 = math.tanh %226 : vector<2x8xf32>
    %228 = vector.extract_strided_slice %225 {offsets = [0, 0], sizes = [2, 8], strides = [1, 1]} : vector<2x24xf32> to vector<2x8xf32>
    %229 = vector.extract_strided_slice %225 {offsets = [0, 8], sizes = [2, 8], strides = [1, 1]} : vector<2x24xf32> to vector<2x8xf32>
    %230 = vector.extract_strided_slice %225 {offsets = [0, 16], sizes = [2, 8], strides = [1, 1]} : vector<2x24xf32> to vector<2x8xf32>
    %231 = arith.mulf %229, %194 : vector<2x8xf32>
    %232 = arith.mulf %228, %227 : vector<2x8xf32>
    %233 = arith.addf %231, %232 : vector<2x8xf32>
    %234 = math.tanh %233 : vector<2x8xf32>
    %235 = arith.mulf %230, %234 : vector<2x8xf32>
    %236 = tpu.concatenate %235, %216 in 1 : vector<2x8xf32>, vector<2x4xf32> -> vector<2x12xf32>
    %cst_55 = arith.constant dense<0.000000e+00> : vector<2x16xf32>
    %237 = tpu.matmul %236, %4, %cst_55 {dimension_numbers = #tpu.dot_dimension_numbers<[1], [0], [0], [1], [0, 0, 1, 1], [], []>} : vector<2x12xf32>, vector<12x16xf32>, vector<2x16xf32> -> vector<2x16xf32>
    %238 = vector.broadcast %5 : vector<1x16xf32> to vector<2x16xf32>
    %239 = arith.addf %237, %238 : vector<2x16xf32>
    %240 = vector.extract_strided_slice %239 {offsets = [0, 0], sizes = [2, 12], strides = [1, 1]} : vector<2x16xf32> to vector<2x12xf32>
    %241 = arith.negf %240 : vector<2x12xf32>
    %242 = math.exp %241 : vector<2x12xf32>
    %cst_56 = arith.constant 1.000000e+00 : f32
    %243 = vector.broadcast %cst_56 : f32 to vector<2x12xf32>
    %244 = arith.addf %243, %242 : vector<2x12xf32>
    %245 = arith.divf %243, %244 : vector<2x12xf32>
    %246 = vector.extract_strided_slice %239 {offsets = [0, 12], sizes = [2, 4], strides = [1, 1]} : vector<2x16xf32> to vector<2x4xf32>
    %247 = math.tanh %246 : vector<2x4xf32>
    %248 = vector.extract_strided_slice %245 {offsets = [0, 0], sizes = [2, 4], strides = [1, 1]} : vector<2x12xf32> to vector<2x4xf32>
    %249 = vector.extract_strided_slice %245 {offsets = [0, 4], sizes = [2, 4], strides = [1, 1]} : vector<2x12xf32> to vector<2x4xf32>
    %250 = vector.extract_strided_slice %245 {offsets = [0, 8], sizes = [2, 4], strides = [1, 1]} : vector<2x12xf32> to vector<2x4xf32>
    %251 = arith.mulf %249, %214 : vector<2x4xf32>
    %252 = arith.mulf %248, %247 : vector<2x4xf32>
    %253 = arith.addf %251, %252 : vector<2x4xf32>
    %254 = math.tanh %253 : vector<2x4xf32>
    %255 = arith.mulf %250, %254 : vector<2x4xf32>
    %256 = vector.extract_strided_slice %17 {offsets = [12, 0], sizes = [2, 32], strides = [1, 1]} : vector<16x32xf32> to vector<2x32xf32>
    %cst_57 = arith.constant dense<0.000000e+00> : vector<2x32xf32>
    %257 = tpu.matmul %235, %2, %cst_57 {dimension_numbers = #tpu.dot_dimension_numbers<[1], [0], [0], [1], [0, 0, 1, 1], [], []>} : vector<2x8xf32>, vector<8x32xf32>, vector<2x32xf32> -> vector<2x32xf32>
    %258 = arith.addf %256, %257 : vector<2x32xf32>
    %259 = vector.extract_strided_slice %258 {offsets = [0, 0], sizes = [2, 24], strides = [1, 1]} : vector<2x32xf32> to vector<2x24xf32>
    %260 = arith.negf %259 : vector<2x24xf32>
    %261 = math.exp %260 : vector<2x24xf32>
    %cst_58 = arith.constant 1.000000e+00 : f32
    %262 = vector.broadcast %cst_58 : f32 to vector<2x24xf32>
    %263 = arith.addf %262, %261 : vector<2x24xf32>
    %264 = arith.divf %262, %263 : vector<2x24xf32>
    %265 = vector.extract_strided_slice %258 {offsets = [0, 24], sizes = [2, 8], strides = [1, 1]} : vector<2x32xf32> to vector<2x8xf32>
    %266 = math.tanh %265 : vector<2x8xf32>
    %267 = vector.extract_strided_slice %264 {offsets = [0, 0], sizes = [2, 8], strides = [1, 1]} : vector<2x24xf32> to vector<2x8xf32>
    %268 = vector.extract_strided_slice %264 {offsets = [0, 8], sizes = [2, 8], strides = [1, 1]} : vector<2x24xf32> to vector<2x8xf32>
    %269 = vector.extract_strided_slice %264 {offsets = [0, 16], sizes = [2, 8], strides = [1, 1]} : vector<2x24xf32> to vector<2x8xf32>
    %270 = arith.mulf %268, %233 : vector<2x8xf32>
    %271 = arith.mulf %267, %266 : vector<2x8xf32>
    %272 = arith.addf %270, %271 : vector<2x8xf32>
    %273 = math.tanh %272 : vector<2x8xf32>
    %274 = arith.mulf %269, %273 : vector<2x8xf32>
    %275 = tpu.concatenate %274, %255 in 1 : vector<2x8xf32>, vector<2x4xf32> -> vector<2x12xf32>
    %cst_59 = arith.constant dense<0.000000e+00> : vector<2x16xf32>
    %276 = tpu.matmul %275, %4, %cst_59 {dimension_numbers = #tpu.dot_dimension_numbers<[1], [0], [0], [1], [0, 0, 1, 1], [], []>} : vector<2x12xf32>, vector<12x16xf32>, vector<2x16xf32> -> vector<2x16xf32>
    %277 = vector.broadcast %5 : vector<1x16xf32> to vector<2x16xf32>
    %278 = arith.addf %276, %277 : vector<2x16xf32>
    %279 = vector.extract_strided_slice %278 {offsets = [0, 0], sizes = [2, 12], strides = [1, 1]} : vector<2x16xf32> to vector<2x12xf32>
    %280 = arith.negf %279 : vector<2x12xf32>
    %281 = math.exp %280 : vector<2x12xf32>
    %cst_60 = arith.constant 1.000000e+00 : f32
    %282 = vector.broadcast %cst_60 : f32 to vector<2x12xf32>
    %283 = arith.addf %282, %281 : vector<2x12xf32>
    %284 = arith.divf %282, %283 : vector<2x12xf32>
    %285 = vector.extract_strided_slice %278 {offsets = [0, 12], sizes = [2, 4], strides = [1, 1]} : vector<2x16xf32> to vector<2x4xf32>
    %286 = math.tanh %285 : vector<2x4xf32>
    %287 = vector.extract_strided_slice %284 {offsets = [0, 0], sizes = [2, 4], strides = [1, 1]} : vector<2x12xf32> to vector<2x4xf32>
    %288 = vector.extract_strided_slice %284 {offsets = [0, 4], sizes = [2, 4], strides = [1, 1]} : vector<2x12xf32> to vector<2x4xf32>
    %289 = vector.extract_strided_slice %284 {offsets = [0, 8], sizes = [2, 4], strides = [1, 1]} : vector<2x12xf32> to vector<2x4xf32>
    %290 = arith.mulf %288, %253 : vector<2x4xf32>
    %291 = arith.mulf %287, %286 : vector<2x4xf32>
    %292 = arith.addf %290, %291 : vector<2x4xf32>
    %293 = math.tanh %292 : vector<2x4xf32>
    %294 = arith.mulf %289, %293 : vector<2x4xf32>
    %295 = vector.extract_strided_slice %17 {offsets = [14, 0], sizes = [2, 32], strides = [1, 1]} : vector<16x32xf32> to vector<2x32xf32>
    %cst_61 = arith.constant dense<0.000000e+00> : vector<2x32xf32>
    %296 = tpu.matmul %274, %2, %cst_61 {dimension_numbers = #tpu.dot_dimension_numbers<[1], [0], [0], [1], [0, 0, 1, 1], [], []>} : vector<2x8xf32>, vector<8x32xf32>, vector<2x32xf32> -> vector<2x32xf32>
    %297 = arith.addf %295, %296 : vector<2x32xf32>
    %298 = vector.extract_strided_slice %297 {offsets = [0, 0], sizes = [2, 24], strides = [1, 1]} : vector<2x32xf32> to vector<2x24xf32>
    %299 = arith.negf %298 : vector<2x24xf32>
    %300 = math.exp %299 : vector<2x24xf32>
    %cst_62 = arith.constant 1.000000e+00 : f32
    %301 = vector.broadcast %cst_62 : f32 to vector<2x24xf32>
    %302 = arith.addf %301, %300 : vector<2x24xf32>
    %303 = arith.divf %301, %302 : vector<2x24xf32>
    %304 = vector.extract_strided_slice %297 {offsets = [0, 24], sizes = [2, 8], strides = [1, 1]} : vector<2x32xf32> to vector<2x8xf32>
    %305 = math.tanh %304 : vector<2x8xf32>
    %306 = vector.extract_strided_slice %303 {offsets = [0, 0], sizes = [2, 8], strides = [1, 1]} : vector<2x24xf32> to vector<2x8xf32>
    %307 = vector.extract_strided_slice %303 {offsets = [0, 8], sizes = [2, 8], strides = [1, 1]} : vector<2x24xf32> to vector<2x8xf32>
    %308 = vector.extract_strided_slice %303 {offsets = [0, 16], sizes = [2, 8], strides = [1, 1]} : vector<2x24xf32> to vector<2x8xf32>
    %309 = arith.mulf %307, %272 : vector<2x8xf32>
    %310 = arith.mulf %306, %305 : vector<2x8xf32>
    %311 = arith.addf %309, %310 : vector<2x8xf32>
    %312 = math.tanh %311 : vector<2x8xf32>
    %313 = arith.mulf %308, %312 : vector<2x8xf32>
    %314 = tpu.concatenate %313, %294 in 1 : vector<2x8xf32>, vector<2x4xf32> -> vector<2x12xf32>
    %cst_63 = arith.constant dense<0.000000e+00> : vector<2x16xf32>
    %315 = tpu.matmul %314, %4, %cst_63 {dimension_numbers = #tpu.dot_dimension_numbers<[1], [0], [0], [1], [0, 0, 1, 1], [], []>} : vector<2x12xf32>, vector<12x16xf32>, vector<2x16xf32> -> vector<2x16xf32>
    %316 = vector.broadcast %5 : vector<1x16xf32> to vector<2x16xf32>
    %317 = arith.addf %315, %316 : vector<2x16xf32>
    %318 = vector.extract_strided_slice %317 {offsets = [0, 0], sizes = [2, 12], strides = [1, 1]} : vector<2x16xf32> to vector<2x12xf32>
    %319 = arith.negf %318 : vector<2x12xf32>
    %320 = math.exp %319 : vector<2x12xf32>
    %cst_64 = arith.constant 1.000000e+00 : f32
    %321 = vector.broadcast %cst_64 : f32 to vector<2x12xf32>
    %322 = arith.addf %321, %320 : vector<2x12xf32>
    %323 = arith.divf %321, %322 : vector<2x12xf32>
    %324 = vector.extract_strided_slice %317 {offsets = [0, 12], sizes = [2, 4], strides = [1, 1]} : vector<2x16xf32> to vector<2x4xf32>
    %325 = math.tanh %324 : vector<2x4xf32>
    %326 = vector.extract_strided_slice %323 {offsets = [0, 0], sizes = [2, 4], strides = [1, 1]} : vector<2x12xf32> to vector<2x4xf32>
    %327 = vector.extract_strided_slice %323 {offsets = [0, 4], sizes = [2, 4], strides = [1, 1]} : vector<2x12xf32> to vector<2x4xf32>
    %328 = vector.extract_strided_slice %323 {offsets = [0, 8], sizes = [2, 4], strides = [1, 1]} : vector<2x12xf32> to vector<2x4xf32>
    %329 = arith.mulf %327, %292 : vector<2x4xf32>
    %330 = arith.mulf %326, %325 : vector<2x4xf32>
    %331 = arith.addf %329, %330 : vector<2x4xf32>
    %332 = math.tanh %331 : vector<2x4xf32>
    %333 = arith.mulf %328, %332 : vector<2x4xf32>
    %cst_65 = arith.constant dense<0.000000e+00> : vector<2x4xf32>
    %334 = tpu.matmul %333, %6, %cst_65 {dimension_numbers = #tpu.dot_dimension_numbers<[1], [0], [0], [1], [0, 0, 1, 1], [], []>} : vector<2x4xf32>, vector<4x4xf32>, vector<2x4xf32> -> vector<2x4xf32>
    %335 = vector.broadcast %7 : vector<1x4xf32> to vector<2x4xf32>
    %336 = arith.addf %334, %335 : vector<2x4xf32>
    %cst_66 = arith.constant dense<0.000000e+00> : vector<2x16xf32>
    %337 = tpu.matmul %336, %8, %cst_66 {dimension_numbers = #tpu.dot_dimension_numbers<[1], [0], [0], [1], [0, 0, 1, 1], [], []>} : vector<2x4xf32>, vector<4x16xf32>, vector<2x16xf32> -> vector<2x16xf32>
    %338 = vector.broadcast %10 : vector<1x16xf32> to vector<2x16xf32>
    %339 = arith.addf %337, %338 : vector<2x16xf32>
    %cst_67 = arith.constant 0.000000e+00 : f32
    %340 = vector.broadcast %cst_67 : f32 to vector<2x4xf32>
    %cst_68 = arith.constant 0.000000e+00 : f32
    %341 = vector.broadcast %cst_68 : f32 to vector<2x4xf32>
    %cst_69 = arith.constant 0.000000e+00 : f32
    %342 = vector.broadcast %cst_69 : f32 to vector<2x8xf32>
    %cst_70 = arith.constant 0.000000e+00 : f32
    %343 = vector.broadcast %cst_70 : f32 to vector<2x8xf32>
    %cst_71 = arith.constant dense<0.000000e+00> : vector<2x16xf32>
    %344 = tpu.matmul %340, %9, %cst_71 {dimension_numbers = #tpu.dot_dimension_numbers<[1], [0], [0], [1], [0, 0, 1, 1], [], []>} : vector<2x4xf32>, vector<4x16xf32>, vector<2x16xf32> -> vector<2x16xf32>
    %345 = arith.addf %339, %344 : vector<2x16xf32>
    %346 = vector.extract_strided_slice %345 {offsets = [0, 0], sizes = [2, 12], strides = [1, 1]} : vector<2x16xf32> to vector<2x12xf32>
    %347 = arith.negf %346 : vector<2x12xf32>
    %348 = math.exp %347 : vector<2x12xf32>
    %cst_72 = arith.constant 1.000000e+00 : f32
    %349 = vector.broadcast %cst_72 : f32 to vector<2x12xf32>
    %350 = arith.addf %349, %348 : vector<2x12xf32>
    %351 = arith.divf %349, %350 : vector<2x12xf32>
    %352 = vector.extract_strided_slice %345 {offsets = [0, 12], sizes = [2, 4], strides = [1, 1]} : vector<2x16xf32> to vector<2x4xf32>
    %353 = math.tanh %352 : vector<2x4xf32>
    %354 = vector.extract_strided_slice %351 {offsets = [0, 0], sizes = [2, 4], strides = [1, 1]} : vector<2x12xf32> to vector<2x4xf32>
    %355 = vector.extract_strided_slice %351 {offsets = [0, 4], sizes = [2, 4], strides = [1, 1]} : vector<2x12xf32> to vector<2x4xf32>
    %356 = vector.extract_strided_slice %351 {offsets = [0, 8], sizes = [2, 4], strides = [1, 1]} : vector<2x12xf32> to vector<2x4xf32>
    %357 = arith.mulf %355, %341 : vector<2x4xf32>
    %358 = arith.mulf %354, %353 : vector<2x4xf32>
    %359 = arith.addf %357, %358 : vector<2x4xf32>
    %360 = math.tanh %359 : vector<2x4xf32>
    %361 = arith.mulf %356, %360 : vector<2x4xf32>
    %362 = tpu.concatenate %361, %342 in 1 : vector<2x4xf32>, vector<2x8xf32> -> vector<2x12xf32>
    %cst_73 = arith.constant dense<0.000000e+00> : vector<2x32xf32>
    %363 = tpu.matmul %362, %11, %cst_73 {dimension_numbers = #tpu.dot_dimension_numbers<[1], [0], [0], [1], [0, 0, 1, 1], [], []>} : vector<2x12xf32>, vector<12x32xf32>, vector<2x32xf32> -> vector<2x32xf32>
    %364 = vector.broadcast %12 : vector<1x32xf32> to vector<2x32xf32>
    %365 = arith.addf %363, %364 : vector<2x32xf32>
    %366 = vector.extract_strided_slice %365 {offsets = [0, 0], sizes = [2, 24], strides = [1, 1]} : vector<2x32xf32> to vector<2x24xf32>
    %367 = arith.negf %366 : vector<2x24xf32>
    %368 = math.exp %367 : vector<2x24xf32>
    %cst_74 = arith.constant 1.000000e+00 : f32
    %369 = vector.broadcast %cst_74 : f32 to vector<2x24xf32>
    %370 = arith.addf %369, %368 : vector<2x24xf32>
    %371 = arith.divf %369, %370 : vector<2x24xf32>
    %372 = vector.extract_strided_slice %365 {offsets = [0, 24], sizes = [2, 8], strides = [1, 1]} : vector<2x32xf32> to vector<2x8xf32>
    %373 = math.tanh %372 : vector<2x8xf32>
    %374 = vector.extract_strided_slice %371 {offsets = [0, 0], sizes = [2, 8], strides = [1, 1]} : vector<2x24xf32> to vector<2x8xf32>
    %375 = vector.extract_strided_slice %371 {offsets = [0, 8], sizes = [2, 8], strides = [1, 1]} : vector<2x24xf32> to vector<2x8xf32>
    %376 = vector.extract_strided_slice %371 {offsets = [0, 16], sizes = [2, 8], strides = [1, 1]} : vector<2x24xf32> to vector<2x8xf32>
    %377 = arith.mulf %375, %343 : vector<2x8xf32>
    %378 = arith.mulf %374, %373 : vector<2x8xf32>
    %379 = arith.addf %377, %378 : vector<2x8xf32>
    %380 = math.tanh %379 : vector<2x8xf32>
    %381 = arith.mulf %376, %380 : vector<2x8xf32>
    %c0_75 = arith.constant 0 : index
    %c0_76 = arith.constant 0 : index
    %382 = vector.load %arg16[%c0_75, %c0_76] : memref<2x64xf32, #tpu.memory_space<vmem>>, vector<2x8xf32>
    tpu.vector_store %arg16[%c0_75, %c0_76], %381 {strides = array<i32>} : memref<2x64xf32, #tpu.memory_space<vmem>>, vector<2x8xf32>,
    %cst_77 = arith.constant dense<0.000000e+00> : vector<2x16xf32>
    %383 = tpu.matmul %361, %9, %cst_77 {dimension_numbers = #tpu.dot_dimension_numbers<[1], [0], [0], [1], [0, 0, 1, 1], [], []>} : vector<2x4xf32>, vector<4x16xf32>, vector<2x16xf32> -> vector<2x16xf32>
    %384 = arith.addf %339, %383 : vector<2x16xf32>
    %385 = vector.extract_strided_slice %384 {offsets = [0, 0], sizes = [2, 12], strides = [1, 1]} : vector<2x16xf32> to vector<2x12xf32>
    %386 = arith.negf %385 : vector<2x12xf32>
    %387 = math.exp %386 : vector<2x12xf32>
    %cst_78 = arith.constant 1.000000e+00 : f32
    %388 = vector.broadcast %cst_78 : f32 to vector<2x12xf32>
    %389 = arith.addf %388, %387 : vector<2x12xf32>
    %390 = arith.divf %388, %389 : vector<2x12xf32>
    %391 = vector.extract_strided_slice %384 {offsets = [0, 12], sizes = [2, 4], strides = [1, 1]} : vector<2x16xf32> to vector<2x4xf32>
    %392 = math.tanh %391 : vector<2x4xf32>
    %393 = vector.extract_strided_slice %390 {offsets = [0, 0], sizes = [2, 4], strides = [1, 1]} : vector<2x12xf32> to vector<2x4xf32>
    %394 = vector.extract_strided_slice %390 {offsets = [0, 4], sizes = [2, 4], strides = [1, 1]} : vector<2x12xf32> to vector<2x4xf32>
    %395 = vector.extract_strided_slice %390 {offsets = [0, 8], sizes = [2, 4], strides = [1, 1]} : vector<2x12xf32> to vector<2x4xf32>
    %396 = arith.mulf %394, %359 : vector<2x4xf32>
    %397 = arith.mulf %393, %392 : vector<2x4xf32>
    %398 = arith.addf %396, %397 : vector<2x4xf32>
    %399 = math.tanh %398 : vector<2x4xf32>
    %400 = arith.mulf %395, %399 : vector<2x4xf32>
    %401 = tpu.concatenate %400, %381 in 1 : vector<2x4xf32>, vector<2x8xf32> -> vector<2x12xf32>
    %cst_79 = arith.constant dense<0.000000e+00> : vector<2x32xf32>
    %402 = tpu.matmul %401, %11, %cst_79 {dimension_numbers = #tpu.dot_dimension_numbers<[1], [0], [0], [1], [0, 0, 1, 1], [], []>} : vector<2x12xf32>, vector<12x32xf32>, vector<2x32xf32> -> vector<2x32xf32>
    %403 = vector.broadcast %12 : vector<1x32xf32> to vector<2x32xf32>
    %404 = arith.addf %402, %403 : vector<2x32xf32>
    %405 = vector.extract_strided_slice %404 {offsets = [0, 0], sizes = [2, 24], strides = [1, 1]} : vector<2x32xf32> to vector<2x24xf32>
    %406 = arith.negf %405 : vector<2x24xf32>
    %407 = math.exp %406 : vector<2x24xf32>
    %cst_80 = arith.constant 1.000000e+00 : f32
    %408 = vector.broadcast %cst_80 : f32 to vector<2x24xf32>
    %409 = arith.addf %408, %407 : vector<2x24xf32>
    %410 = arith.divf %408, %409 : vector<2x24xf32>
    %411 = vector.extract_strided_slice %404 {offsets = [0, 24], sizes = [2, 8], strides = [1, 1]} : vector<2x32xf32> to vector<2x8xf32>
    %412 = math.tanh %411 : vector<2x8xf32>
    %413 = vector.extract_strided_slice %410 {offsets = [0, 0], sizes = [2, 8], strides = [1, 1]} : vector<2x24xf32> to vector<2x8xf32>
    %414 = vector.extract_strided_slice %410 {offsets = [0, 8], sizes = [2, 8], strides = [1, 1]} : vector<2x24xf32> to vector<2x8xf32>
    %415 = vector.extract_strided_slice %410 {offsets = [0, 16], sizes = [2, 8], strides = [1, 1]} : vector<2x24xf32> to vector<2x8xf32>
    %416 = arith.mulf %414, %379 : vector<2x8xf32>
    %417 = arith.mulf %413, %412 : vector<2x8xf32>
    %418 = arith.addf %416, %417 : vector<2x8xf32>
    %419 = math.tanh %418 : vector<2x8xf32>
    %420 = arith.mulf %415, %419 : vector<2x8xf32>
    %c0_81 = arith.constant 0 : index
    %c8 = arith.constant 8 : index
    %421 = vector.load %arg16[%c0_81, %c8] : memref<2x64xf32, #tpu.memory_space<vmem>>, vector<2x8xf32>
    tpu.vector_store %arg16[%c0_81, %c8], %420 {strides = array<i32>} : memref<2x64xf32, #tpu.memory_space<vmem>>, vector<2x8xf32>,
    %cst_82 = arith.constant dense<0.000000e+00> : vector<2x16xf32>
    %422 = tpu.matmul %400, %9, %cst_82 {dimension_numbers = #tpu.dot_dimension_numbers<[1], [0], [0], [1], [0, 0, 1, 1], [], []>} : vector<2x4xf32>, vector<4x16xf32>, vector<2x16xf32> -> vector<2x16xf32>
    %423 = arith.addf %339, %422 : vector<2x16xf32>
    %424 = vector.extract_strided_slice %423 {offsets = [0, 0], sizes = [2, 12], strides = [1, 1]} : vector<2x16xf32> to vector<2x12xf32>
    %425 = arith.negf %424 : vector<2x12xf32>
    %426 = math.exp %425 : vector<2x12xf32>
    %cst_83 = arith.constant 1.000000e+00 : f32
    %427 = vector.broadcast %cst_83 : f32 to vector<2x12xf32>
    %428 = arith.addf %427, %426 : vector<2x12xf32>
    %429 = arith.divf %427, %428 : vector<2x12xf32>
    %430 = vector.extract_strided_slice %423 {offsets = [0, 12], sizes = [2, 4], strides = [1, 1]} : vector<2x16xf32> to vector<2x4xf32>
    %431 = math.tanh %430 : vector<2x4xf32>
    %432 = vector.extract_strided_slice %429 {offsets = [0, 0], sizes = [2, 4], strides = [1, 1]} : vector<2x12xf32> to vector<2x4xf32>
    %433 = vector.extract_strided_slice %429 {offsets = [0, 4], sizes = [2, 4], strides = [1, 1]} : vector<2x12xf32> to vector<2x4xf32>
    %434 = vector.extract_strided_slice %429 {offsets = [0, 8], sizes = [2, 4], strides = [1, 1]} : vector<2x12xf32> to vector<2x4xf32>
    %435 = arith.mulf %433, %398 : vector<2x4xf32>
    %436 = arith.mulf %432, %431 : vector<2x4xf32>
    %437 = arith.addf %435, %436 : vector<2x4xf32>
    %438 = math.tanh %437 : vector<2x4xf32>
    %439 = arith.mulf %434, %438 : vector<2x4xf32>
    %440 = tpu.concatenate %439, %420 in 1 : vector<2x4xf32>, vector<2x8xf32> -> vector<2x12xf32>
    %cst_84 = arith.constant dense<0.000000e+00> : vector<2x32xf32>
    %441 = tpu.matmul %440, %11, %cst_84 {dimension_numbers = #tpu.dot_dimension_numbers<[1], [0], [0], [1], [0, 0, 1, 1], [], []>} : vector<2x12xf32>, vector<12x32xf32>, vector<2x32xf32> -> vector<2x32xf32>
    %442 = vector.broadcast %12 : vector<1x32xf32> to vector<2x32xf32>
    %443 = arith.addf %441, %442 : vector<2x32xf32>
    %444 = vector.extract_strided_slice %443 {offsets = [0, 0], sizes = [2, 24], strides = [1, 1]} : vector<2x32xf32> to vector<2x24xf32>
    %445 = arith.negf %444 : vector<2x24xf32>
    %446 = math.exp %445 : vector<2x24xf32>
    %cst_85 = arith.constant 1.000000e+00 : f32
    %447 = vector.broadcast %cst_85 : f32 to vector<2x24xf32>
    %448 = arith.addf %447, %446 : vector<2x24xf32>
    %449 = arith.divf %447, %448 : vector<2x24xf32>
    %450 = vector.extract_strided_slice %443 {offsets = [0, 24], sizes = [2, 8], strides = [1, 1]} : vector<2x32xf32> to vector<2x8xf32>
    %451 = math.tanh %450 : vector<2x8xf32>
    %452 = vector.extract_strided_slice %449 {offsets = [0, 0], sizes = [2, 8], strides = [1, 1]} : vector<2x24xf32> to vector<2x8xf32>
    %453 = vector.extract_strided_slice %449 {offsets = [0, 8], sizes = [2, 8], strides = [1, 1]} : vector<2x24xf32> to vector<2x8xf32>
    %454 = vector.extract_strided_slice %449 {offsets = [0, 16], sizes = [2, 8], strides = [1, 1]} : vector<2x24xf32> to vector<2x8xf32>
    %455 = arith.mulf %453, %418 : vector<2x8xf32>
    %456 = arith.mulf %452, %451 : vector<2x8xf32>
    %457 = arith.addf %455, %456 : vector<2x8xf32>
    %458 = math.tanh %457 : vector<2x8xf32>
    %459 = arith.mulf %454, %458 : vector<2x8xf32>
    %c0_86 = arith.constant 0 : index
    %c16 = arith.constant 16 : index
    %460 = vector.load %arg16[%c0_86, %c16] : memref<2x64xf32, #tpu.memory_space<vmem>>, vector<2x8xf32>
    tpu.vector_store %arg16[%c0_86, %c16], %459 {strides = array<i32>} : memref<2x64xf32, #tpu.memory_space<vmem>>, vector<2x8xf32>,
    %cst_87 = arith.constant dense<0.000000e+00> : vector<2x16xf32>
    %461 = tpu.matmul %439, %9, %cst_87 {dimension_numbers = #tpu.dot_dimension_numbers<[1], [0], [0], [1], [0, 0, 1, 1], [], []>} : vector<2x4xf32>, vector<4x16xf32>, vector<2x16xf32> -> vector<2x16xf32>
    %462 = arith.addf %339, %461 : vector<2x16xf32>
    %463 = vector.extract_strided_slice %462 {offsets = [0, 0], sizes = [2, 12], strides = [1, 1]} : vector<2x16xf32> to vector<2x12xf32>
    %464 = arith.negf %463 : vector<2x12xf32>
    %465 = math.exp %464 : vector<2x12xf32>
    %cst_88 = arith.constant 1.000000e+00 : f32
    %466 = vector.broadcast %cst_88 : f32 to vector<2x12xf32>
    %467 = arith.addf %466, %465 : vector<2x12xf32>
    %468 = arith.divf %466, %467 : vector<2x12xf32>
    %469 = vector.extract_strided_slice %462 {offsets = [0, 12], sizes = [2, 4], strides = [1, 1]} : vector<2x16xf32> to vector<2x4xf32>
    %470 = math.tanh %469 : vector<2x4xf32>
    %471 = vector.extract_strided_slice %468 {offsets = [0, 0], sizes = [2, 4], strides = [1, 1]} : vector<2x12xf32> to vector<2x4xf32>
    %472 = vector.extract_strided_slice %468 {offsets = [0, 4], sizes = [2, 4], strides = [1, 1]} : vector<2x12xf32> to vector<2x4xf32>
    %473 = vector.extract_strided_slice %468 {offsets = [0, 8], sizes = [2, 4], strides = [1, 1]} : vector<2x12xf32> to vector<2x4xf32>
    %474 = arith.mulf %472, %437 : vector<2x4xf32>
    %475 = arith.mulf %471, %470 : vector<2x4xf32>
    %476 = arith.addf %474, %475 : vector<2x4xf32>
    %477 = math.tanh %476 : vector<2x4xf32>
    %478 = arith.mulf %473, %477 : vector<2x4xf32>
    %479 = tpu.concatenate %478, %459 in 1 : vector<2x4xf32>, vector<2x8xf32> -> vector<2x12xf32>
    %cst_89 = arith.constant dense<0.000000e+00> : vector<2x32xf32>
    %480 = tpu.matmul %479, %11, %cst_89 {dimension_numbers = #tpu.dot_dimension_numbers<[1], [0], [0], [1], [0, 0, 1, 1], [], []>} : vector<2x12xf32>, vector<12x32xf32>, vector<2x32xf32> -> vector<2x32xf32>
    %481 = vector.broadcast %12 : vector<1x32xf32> to vector<2x32xf32>
    %482 = arith.addf %480, %481 : vector<2x32xf32>
    %483 = vector.extract_strided_slice %482 {offsets = [0, 0], sizes = [2, 24], strides = [1, 1]} : vector<2x32xf32> to vector<2x24xf32>
    %484 = arith.negf %483 : vector<2x24xf32>
    %485 = math.exp %484 : vector<2x24xf32>
    %cst_90 = arith.constant 1.000000e+00 : f32
    %486 = vector.broadcast %cst_90 : f32 to vector<2x24xf32>
    %487 = arith.addf %486, %485 : vector<2x24xf32>
    %488 = arith.divf %486, %487 : vector<2x24xf32>
    %489 = vector.extract_strided_slice %482 {offsets = [0, 24], sizes = [2, 8], strides = [1, 1]} : vector<2x32xf32> to vector<2x8xf32>
    %490 = math.tanh %489 : vector<2x8xf32>
    %491 = vector.extract_strided_slice %488 {offsets = [0, 0], sizes = [2, 8], strides = [1, 1]} : vector<2x24xf32> to vector<2x8xf32>
    %492 = vector.extract_strided_slice %488 {offsets = [0, 8], sizes = [2, 8], strides = [1, 1]} : vector<2x24xf32> to vector<2x8xf32>
    %493 = vector.extract_strided_slice %488 {offsets = [0, 16], sizes = [2, 8], strides = [1, 1]} : vector<2x24xf32> to vector<2x8xf32>
    %494 = arith.mulf %492, %457 : vector<2x8xf32>
    %495 = arith.mulf %491, %490 : vector<2x8xf32>
    %496 = arith.addf %494, %495 : vector<2x8xf32>
    %497 = math.tanh %496 : vector<2x8xf32>
    %498 = arith.mulf %493, %497 : vector<2x8xf32>
    %c0_91 = arith.constant 0 : index
    %c24 = arith.constant 24 : index
    %499 = vector.load %arg16[%c0_91, %c24] : memref<2x64xf32, #tpu.memory_space<vmem>>, vector<2x8xf32>
    tpu.vector_store %arg16[%c0_91, %c24], %498 {strides = array<i32>} : memref<2x64xf32, #tpu.memory_space<vmem>>, vector<2x8xf32>,
    %cst_92 = arith.constant dense<0.000000e+00> : vector<2x16xf32>
    %500 = tpu.matmul %478, %9, %cst_92 {dimension_numbers = #tpu.dot_dimension_numbers<[1], [0], [0], [1], [0, 0, 1, 1], [], []>} : vector<2x4xf32>, vector<4x16xf32>, vector<2x16xf32> -> vector<2x16xf32>
    %501 = arith.addf %339, %500 : vector<2x16xf32>
    %502 = vector.extract_strided_slice %501 {offsets = [0, 0], sizes = [2, 12], strides = [1, 1]} : vector<2x16xf32> to vector<2x12xf32>
    %503 = arith.negf %502 : vector<2x12xf32>
    %504 = math.exp %503 : vector<2x12xf32>
    %cst_93 = arith.constant 1.000000e+00 : f32
    %505 = vector.broadcast %cst_93 : f32 to vector<2x12xf32>
    %506 = arith.addf %505, %504 : vector<2x12xf32>
    %507 = arith.divf %505, %506 : vector<2x12xf32>
    %508 = vector.extract_strided_slice %501 {offsets = [0, 12], sizes = [2, 4], strides = [1, 1]} : vector<2x16xf32> to vector<2x4xf32>
    %509 = math.tanh %508 : vector<2x4xf32>
    %510 = vector.extract_strided_slice %507 {offsets = [0, 0], sizes = [2, 4], strides = [1, 1]} : vector<2x12xf32> to vector<2x4xf32>
    %511 = vector.extract_strided_slice %507 {offsets = [0, 4], sizes = [2, 4], strides = [1, 1]} : vector<2x12xf32> to vector<2x4xf32>
    %512 = vector.extract_strided_slice %507 {offsets = [0, 8], sizes = [2, 4], strides = [1, 1]} : vector<2x12xf32> to vector<2x4xf32>
    %513 = arith.mulf %511, %476 : vector<2x4xf32>
    %514 = arith.mulf %510, %509 : vector<2x4xf32>
    %515 = arith.addf %513, %514 : vector<2x4xf32>
    %516 = math.tanh %515 : vector<2x4xf32>
    %517 = arith.mulf %512, %516 : vector<2x4xf32>
    %518 = tpu.concatenate %517, %498 in 1 : vector<2x4xf32>, vector<2x8xf32> -> vector<2x12xf32>
    %cst_94 = arith.constant dense<0.000000e+00> : vector<2x32xf32>
    %519 = tpu.matmul %518, %11, %cst_94 {dimension_numbers = #tpu.dot_dimension_numbers<[1], [0], [0], [1], [0, 0, 1, 1], [], []>} : vector<2x12xf32>, vector<12x32xf32>, vector<2x32xf32> -> vector<2x32xf32>
    %520 = vector.broadcast %12 : vector<1x32xf32> to vector<2x32xf32>
    %521 = arith.addf %519, %520 : vector<2x32xf32>
    %522 = vector.extract_strided_slice %521 {offsets = [0, 0], sizes = [2, 24], strides = [1, 1]} : vector<2x32xf32> to vector<2x24xf32>
    %523 = arith.negf %522 : vector<2x24xf32>
    %524 = math.exp %523 : vector<2x24xf32>
    %cst_95 = arith.constant 1.000000e+00 : f32
    %525 = vector.broadcast %cst_95 : f32 to vector<2x24xf32>
    %526 = arith.addf %525, %524 : vector<2x24xf32>
    %527 = arith.divf %525, %526 : vector<2x24xf32>
    %528 = vector.extract_strided_slice %521 {offsets = [0, 24], sizes = [2, 8], strides = [1, 1]} : vector<2x32xf32> to vector<2x8xf32>
    %529 = math.tanh %528 : vector<2x8xf32>
    %530 = vector.extract_strided_slice %527 {offsets = [0, 0], sizes = [2, 8], strides = [1, 1]} : vector<2x24xf32> to vector<2x8xf32>
    %531 = vector.extract_strided_slice %527 {offsets = [0, 8], sizes = [2, 8], strides = [1, 1]} : vector<2x24xf32> to vector<2x8xf32>
    %532 = vector.extract_strided_slice %527 {offsets = [0, 16], sizes = [2, 8], strides = [1, 1]} : vector<2x24xf32> to vector<2x8xf32>
    %533 = arith.mulf %531, %496 : vector<2x8xf32>
    %534 = arith.mulf %530, %529 : vector<2x8xf32>
    %535 = arith.addf %533, %534 : vector<2x8xf32>
    %536 = math.tanh %535 : vector<2x8xf32>
    %537 = arith.mulf %532, %536 : vector<2x8xf32>
    %c0_96 = arith.constant 0 : index
    %c32 = arith.constant 32 : index
    %538 = vector.load %arg16[%c0_96, %c32] : memref<2x64xf32, #tpu.memory_space<vmem>>, vector<2x8xf32>
    tpu.vector_store %arg16[%c0_96, %c32], %537 {strides = array<i32>} : memref<2x64xf32, #tpu.memory_space<vmem>>, vector<2x8xf32>,
    %cst_97 = arith.constant dense<0.000000e+00> : vector<2x16xf32>
    %539 = tpu.matmul %517, %9, %cst_97 {dimension_numbers = #tpu.dot_dimension_numbers<[1], [0], [0], [1], [0, 0, 1, 1], [], []>} : vector<2x4xf32>, vector<4x16xf32>, vector<2x16xf32> -> vector<2x16xf32>
    %540 = arith.addf %339, %539 : vector<2x16xf32>
    %541 = vector.extract_strided_slice %540 {offsets = [0, 0], sizes = [2, 12], strides = [1, 1]} : vector<2x16xf32> to vector<2x12xf32>
    %542 = arith.negf %541 : vector<2x12xf32>
    %543 = math.exp %542 : vector<2x12xf32>
    %cst_98 = arith.constant 1.000000e+00 : f32
    %544 = vector.broadcast %cst_98 : f32 to vector<2x12xf32>
    %545 = arith.addf %544, %543 : vector<2x12xf32>
    %546 = arith.divf %544, %545 : vector<2x12xf32>
    %547 = vector.extract_strided_slice %540 {offsets = [0, 12], sizes = [2, 4], strides = [1, 1]} : vector<2x16xf32> to vector<2x4xf32>
    %548 = math.tanh %547 : vector<2x4xf32>
    %549 = vector.extract_strided_slice %546 {offsets = [0, 0], sizes = [2, 4], strides = [1, 1]} : vector<2x12xf32> to vector<2x4xf32>
    %550 = vector.extract_strided_slice %546 {offsets = [0, 4], sizes = [2, 4], strides = [1, 1]} : vector<2x12xf32> to vector<2x4xf32>
    %551 = vector.extract_strided_slice %546 {offsets = [0, 8], sizes = [2, 4], strides = [1, 1]} : vector<2x12xf32> to vector<2x4xf32>
    %552 = arith.mulf %550, %515 : vector<2x4xf32>
    %553 = arith.mulf %549, %548 : vector<2x4xf32>
    %554 = arith.addf %552, %553 : vector<2x4xf32>
    %555 = math.tanh %554 : vector<2x4xf32>
    %556 = arith.mulf %551, %555 : vector<2x4xf32>
    %557 = tpu.concatenate %556, %537 in 1 : vector<2x4xf32>, vector<2x8xf32> -> vector<2x12xf32>
    %cst_99 = arith.constant dense<0.000000e+00> : vector<2x32xf32>
    %558 = tpu.matmul %557, %11, %cst_99 {dimension_numbers = #tpu.dot_dimension_numbers<[1], [0], [0], [1], [0, 0, 1, 1], [], []>} : vector<2x12xf32>, vector<12x32xf32>, vector<2x32xf32> -> vector<2x32xf32>
    %559 = vector.broadcast %12 : vector<1x32xf32> to vector<2x32xf32>
    %560 = arith.addf %558, %559 : vector<2x32xf32>
    %561 = vector.extract_strided_slice %560 {offsets = [0, 0], sizes = [2, 24], strides = [1, 1]} : vector<2x32xf32> to vector<2x24xf32>
    %562 = arith.negf %561 : vector<2x24xf32>
    %563 = math.exp %562 : vector<2x24xf32>
    %cst_100 = arith.constant 1.000000e+00 : f32
    %564 = vector.broadcast %cst_100 : f32 to vector<2x24xf32>
    %565 = arith.addf %564, %563 : vector<2x24xf32>
    %566 = arith.divf %564, %565 : vector<2x24xf32>
    %567 = vector.extract_strided_slice %560 {offsets = [0, 24], sizes = [2, 8], strides = [1, 1]} : vector<2x32xf32> to vector<2x8xf32>
    %568 = math.tanh %567 : vector<2x8xf32>
    %569 = vector.extract_strided_slice %566 {offsets = [0, 0], sizes = [2, 8], strides = [1, 1]} : vector<2x24xf32> to vector<2x8xf32>
    %570 = vector.extract_strided_slice %566 {offsets = [0, 8], sizes = [2, 8], strides = [1, 1]} : vector<2x24xf32> to vector<2x8xf32>
    %571 = vector.extract_strided_slice %566 {offsets = [0, 16], sizes = [2, 8], strides = [1, 1]} : vector<2x24xf32> to vector<2x8xf32>
    %572 = arith.mulf %570, %535 : vector<2x8xf32>
    %573 = arith.mulf %569, %568 : vector<2x8xf32>
    %574 = arith.addf %572, %573 : vector<2x8xf32>
    %575 = math.tanh %574 : vector<2x8xf32>
    %576 = arith.mulf %571, %575 : vector<2x8xf32>
    %c0_101 = arith.constant 0 : index
    %c40 = arith.constant 40 : index
    %577 = vector.load %arg16[%c0_101, %c40] : memref<2x64xf32, #tpu.memory_space<vmem>>, vector<2x8xf32>
    tpu.vector_store %arg16[%c0_101, %c40], %576 {strides = array<i32>} : memref<2x64xf32, #tpu.memory_space<vmem>>, vector<2x8xf32>,
    %cst_102 = arith.constant dense<0.000000e+00> : vector<2x16xf32>
    %578 = tpu.matmul %556, %9, %cst_102 {dimension_numbers = #tpu.dot_dimension_numbers<[1], [0], [0], [1], [0, 0, 1, 1], [], []>} : vector<2x4xf32>, vector<4x16xf32>, vector<2x16xf32> -> vector<2x16xf32>
    %579 = arith.addf %339, %578 : vector<2x16xf32>
    %580 = vector.extract_strided_slice %579 {offsets = [0, 0], sizes = [2, 12], strides = [1, 1]} : vector<2x16xf32> to vector<2x12xf32>
    %581 = arith.negf %580 : vector<2x12xf32>
    %582 = math.exp %581 : vector<2x12xf32>
    %cst_103 = arith.constant 1.000000e+00 : f32
    %583 = vector.broadcast %cst_103 : f32 to vector<2x12xf32>
    %584 = arith.addf %583, %582 : vector<2x12xf32>
    %585 = arith.divf %583, %584 : vector<2x12xf32>
    %586 = vector.extract_strided_slice %579 {offsets = [0, 12], sizes = [2, 4], strides = [1, 1]} : vector<2x16xf32> to vector<2x4xf32>
    %587 = math.tanh %586 : vector<2x4xf32>
    %588 = vector.extract_strided_slice %585 {offsets = [0, 0], sizes = [2, 4], strides = [1, 1]} : vector<2x12xf32> to vector<2x4xf32>
    %589 = vector.extract_strided_slice %585 {offsets = [0, 4], sizes = [2, 4], strides = [1, 1]} : vector<2x12xf32> to vector<2x4xf32>
    %590 = vector.extract_strided_slice %585 {offsets = [0, 8], sizes = [2, 4], strides = [1, 1]} : vector<2x12xf32> to vector<2x4xf32>
    %591 = arith.mulf %589, %554 : vector<2x4xf32>
    %592 = arith.mulf %588, %587 : vector<2x4xf32>
    %593 = arith.addf %591, %592 : vector<2x4xf32>
    %594 = math.tanh %593 : vector<2x4xf32>
    %595 = arith.mulf %590, %594 : vector<2x4xf32>
    %596 = tpu.concatenate %595, %576 in 1 : vector<2x4xf32>, vector<2x8xf32> -> vector<2x12xf32>
    %cst_104 = arith.constant dense<0.000000e+00> : vector<2x32xf32>
    %597 = tpu.matmul %596, %11, %cst_104 {dimension_numbers = #tpu.dot_dimension_numbers<[1], [0], [0], [1], [0, 0, 1, 1], [], []>} : vector<2x12xf32>, vector<12x32xf32>, vector<2x32xf32> -> vector<2x32xf32>
    %598 = vector.broadcast %12 : vector<1x32xf32> to vector<2x32xf32>
    %599 = arith.addf %597, %598 : vector<2x32xf32>
    %600 = vector.extract_strided_slice %599 {offsets = [0, 0], sizes = [2, 24], strides = [1, 1]} : vector<2x32xf32> to vector<2x24xf32>
    %601 = arith.negf %600 : vector<2x24xf32>
    %602 = math.exp %601 : vector<2x24xf32>
    %cst_105 = arith.constant 1.000000e+00 : f32
    %603 = vector.broadcast %cst_105 : f32 to vector<2x24xf32>
    %604 = arith.addf %603, %602 : vector<2x24xf32>
    %605 = arith.divf %603, %604 : vector<2x24xf32>
    %606 = vector.extract_strided_slice %599 {offsets = [0, 24], sizes = [2, 8], strides = [1, 1]} : vector<2x32xf32> to vector<2x8xf32>
    %607 = math.tanh %606 : vector<2x8xf32>
    %608 = vector.extract_strided_slice %605 {offsets = [0, 0], sizes = [2, 8], strides = [1, 1]} : vector<2x24xf32> to vector<2x8xf32>
    %609 = vector.extract_strided_slice %605 {offsets = [0, 8], sizes = [2, 8], strides = [1, 1]} : vector<2x24xf32> to vector<2x8xf32>
    %610 = vector.extract_strided_slice %605 {offsets = [0, 16], sizes = [2, 8], strides = [1, 1]} : vector<2x24xf32> to vector<2x8xf32>
    %611 = arith.mulf %609, %574 : vector<2x8xf32>
    %612 = arith.mulf %608, %607 : vector<2x8xf32>
    %613 = arith.addf %611, %612 : vector<2x8xf32>
    %614 = math.tanh %613 : vector<2x8xf32>
    %615 = arith.mulf %610, %614 : vector<2x8xf32>
    %c0_106 = arith.constant 0 : index
    %c48 = arith.constant 48 : index
    %616 = vector.load %arg16[%c0_106, %c48] : memref<2x64xf32, #tpu.memory_space<vmem>>, vector<2x8xf32>
    tpu.vector_store %arg16[%c0_106, %c48], %615 {strides = array<i32>} : memref<2x64xf32, #tpu.memory_space<vmem>>, vector<2x8xf32>,
    %cst_107 = arith.constant dense<0.000000e+00> : vector<2x16xf32>
    %617 = tpu.matmul %595, %9, %cst_107 {dimension_numbers = #tpu.dot_dimension_numbers<[1], [0], [0], [1], [0, 0, 1, 1], [], []>} : vector<2x4xf32>, vector<4x16xf32>, vector<2x16xf32> -> vector<2x16xf32>
    %618 = arith.addf %339, %617 : vector<2x16xf32>
    %619 = vector.extract_strided_slice %618 {offsets = [0, 0], sizes = [2, 12], strides = [1, 1]} : vector<2x16xf32> to vector<2x12xf32>
    %620 = arith.negf %619 : vector<2x12xf32>
    %621 = math.exp %620 : vector<2x12xf32>
    %cst_108 = arith.constant 1.000000e+00 : f32
    %622 = vector.broadcast %cst_108 : f32 to vector<2x12xf32>
    %623 = arith.addf %622, %621 : vector<2x12xf32>
    %624 = arith.divf %622, %623 : vector<2x12xf32>
    %625 = vector.extract_strided_slice %618 {offsets = [0, 12], sizes = [2, 4], strides = [1, 1]} : vector<2x16xf32> to vector<2x4xf32>
    %626 = math.tanh %625 : vector<2x4xf32>
    %627 = vector.extract_strided_slice %624 {offsets = [0, 0], sizes = [2, 4], strides = [1, 1]} : vector<2x12xf32> to vector<2x4xf32>
    %628 = vector.extract_strided_slice %624 {offsets = [0, 4], sizes = [2, 4], strides = [1, 1]} : vector<2x12xf32> to vector<2x4xf32>
    %629 = vector.extract_strided_slice %624 {offsets = [0, 8], sizes = [2, 4], strides = [1, 1]} : vector<2x12xf32> to vector<2x4xf32>
    %630 = arith.mulf %628, %593 : vector<2x4xf32>
    %631 = arith.mulf %627, %626 : vector<2x4xf32>
    %632 = arith.addf %630, %631 : vector<2x4xf32>
    %633 = math.tanh %632 : vector<2x4xf32>
    %634 = arith.mulf %629, %633 : vector<2x4xf32>
    %635 = tpu.concatenate %634, %615 in 1 : vector<2x4xf32>, vector<2x8xf32> -> vector<2x12xf32>
    %cst_109 = arith.constant dense<0.000000e+00> : vector<2x32xf32>
    %636 = tpu.matmul %635, %11, %cst_109 {dimension_numbers = #tpu.dot_dimension_numbers<[1], [0], [0], [1], [0, 0, 1, 1], [], []>} : vector<2x12xf32>, vector<12x32xf32>, vector<2x32xf32> -> vector<2x32xf32>
    %637 = vector.broadcast %12 : vector<1x32xf32> to vector<2x32xf32>
    %638 = arith.addf %636, %637 : vector<2x32xf32>
    %639 = vector.extract_strided_slice %638 {offsets = [0, 0], sizes = [2, 24], strides = [1, 1]} : vector<2x32xf32> to vector<2x24xf32>
    %640 = arith.negf %639 : vector<2x24xf32>
    %641 = math.exp %640 : vector<2x24xf32>
    %cst_110 = arith.constant 1.000000e+00 : f32
    %642 = vector.broadcast %cst_110 : f32 to vector<2x24xf32>
    %643 = arith.addf %642, %641 : vector<2x24xf32>
    %644 = arith.divf %642, %643 : vector<2x24xf32>
    %645 = vector.extract_strided_slice %638 {offsets = [0, 24], sizes = [2, 8], strides = [1, 1]} : vector<2x32xf32> to vector<2x8xf32>
    %646 = math.tanh %645 : vector<2x8xf32>
    %647 = vector.extract_strided_slice %644 {offsets = [0, 0], sizes = [2, 8], strides = [1, 1]} : vector<2x24xf32> to vector<2x8xf32>
    %648 = vector.extract_strided_slice %644 {offsets = [0, 8], sizes = [2, 8], strides = [1, 1]} : vector<2x24xf32> to vector<2x8xf32>
    %649 = vector.extract_strided_slice %644 {offsets = [0, 16], sizes = [2, 8], strides = [1, 1]} : vector<2x24xf32> to vector<2x8xf32>
    %650 = arith.mulf %648, %613 : vector<2x8xf32>
    %651 = arith.mulf %647, %646 : vector<2x8xf32>
    %652 = arith.addf %650, %651 : vector<2x8xf32>
    %653 = math.tanh %652 : vector<2x8xf32>
    %654 = arith.mulf %649, %653 : vector<2x8xf32>
    %c0_111 = arith.constant 0 : index
    %c56 = arith.constant 56 : index
    %655 = vector.load %arg16[%c0_111, %c56] : memref<2x64xf32, #tpu.memory_space<vmem>>, vector<2x8xf32>
    tpu.vector_store %arg16[%c0_111, %c56], %654 {strides = array<i32>} : memref<2x64xf32, #tpu.memory_space<vmem>>, vector<2x8xf32>,
    %c0_112 = arith.constant 0 : index
    %c0_113 = arith.constant 0 : index
    %656 = vector.load %arg16[%c0_112, %c0_113] : memref<2x64xf32, #tpu.memory_space<vmem>>, vector<2x64xf32>
    %cst_114 = arith.constant dense<0.000000e+00> : vector<2x128xf32>
    %657 = tpu.matmul %656, %13, %cst_114 {dimension_numbers = #tpu.dot_dimension_numbers<[1], [0], [0], [1], [0, 0, 1, 1], [], []>} : vector<2x64xf32>, vector<64x128xf32>, vector<2x128xf32> -> vector<2x128xf32>
    %658 = vector.broadcast %14 : vector<1x128xf32> to vector<2x128xf32>
    %659 = arith.addf %657, %658 : vector<2x128xf32>
    %c0_115 = arith.constant 0 : index
    %c0_116 = arith.constant 0 : index
    %660 = vector.load %arg15[%c0_115, %c0_116] : memref<2x128xf32, #tpu.memory_space<vmem>>, vector<2x128xf32>
    tpu.vector_store %arg15[%c0_115, %c0_116], %659 {strides = array<i32>} : memref<2x128xf32, #tpu.memory_space<vmem>>, vector<2x128xf32>,
    return
  }
}

</mosaic_0001>

<bundles_post_ra>
// kernel: tpu_custom_call.1
= control target key start
LH: loop header
LB: loop body
LE: loop exit
PB: predicated region body
PF: predicated region fallthrough
CT: control target
= control target key end

     0   :  { %20 = vsyncpa [#allocation4], 0  ;;  %s5510_s0 = inlined_call_operand.hbm [shape: f32[16,16], index: 0, kind: input, shape index: {}]   ;;  %s5511_s1 = inlined_call_operand.hbm [shape: f32[16,32], index: 1, kind: input, shape index: {}]   ;;  %s5512_s2 = inlined_call_operand.hbm [shape: f32[8,32], index: 2, kind: input, shape index: {}]   ;;  %s5513_s3 = inlined_call_operand.vmem [shape: f32[1,32], index: 3, kind: input, shape index: {}]   ;;  %s5514_s4 = inlined_call_operand.hbm [shape: f32[12,16], index: 4, kind: input, shape index: {}]   ;;  %s5515_s5 = inlined_call_operand.vmem [shape: f32[1,16], index: 5, kind: input, shape index: {}]   ;;  %s5516_s6 = inlined_call_operand.vmem [shape: f32[4,4], index: 6, kind: input, shape index: {}]   ;;  %s5517_s7 = inlined_call_operand.hbm [shape: f32[1,4], index: 7, kind: input, shape index: {}]   ;;  %s5518_s8 = inlined_call_operand.vmem [shape: f32[4,16], index: 8, kind: input, shape index: {}]   ;;  %s5519_s9 = inlined_call_operand.vmem [shape: f32[4,16], index: 9, kind: input, shape index: {}]   ;;  %s5520_s10 = inlined_call_operand.vmem [shape: f32[1,16], index: 10, kind: input, shape index: {}]   ;;  %s5521_s11 = inlined_call_operand.vmem [shape: f32[12,32], index: 11, kind: input, shape index: {}]   ;;  %s5522_s12 = inlined_call_operand.vmem [shape: f32[1,32], index: 12, kind: input, shape index: {}]   ;;  %s5523_s13 = inlined_call_operand.hbm [shape: f32[64,128], index: 13, kind: input, shape index: {}]   ;;  %s5524_s14 = inlined_call_operand.vmem [shape: f32[1,128], index: 14, kind: input, shape index: {}]   ;;  %s5525_s15 = inlined_call_operand.hbm [shape: f32[2,128], index: 15, kind: output, shape index: {}]  }
   0x1   :  { %21 = vsyncpa [#allocation7], 0 }
   0x2   :  { %22 = vsyncpa [#allocation10], 0 }
   0x3   :  { %23 = vsyncpa [#allocation13], 0 }
   0x4   :  { %24 = vsyncpa [#allocation5], 0  ;;  %s4809_s18 = smov [#allocation6]   ;;  %s4810_s20 = smov [#allocation9]  }
   0x5   :  { %s42_s19 = sshll.u32 %s4809_s18, 4  ;;  %s66_s21 = sshll.u32 %s4810_s20, 4  ;;  %s43_s19 = int_to_ptr.vmem [resolvable:$true] %s42_s19  ;;  %s4911_s21 = int_to_ptr.vmem [resolvable:$true] %s66_s21 }
   0x6   :  { %s4645_s24 = scalar_lea.hbm %s5511_s1, 256 }
   0x7   :  { %p4646_p0 = scmp.ne.s32.totalorder %s5511_s1, %s4645_s24  ;;  %p4649_p1 = scmp.lt.u32.totalorder %s4645_s24, %s5511_s1 }
   0x9   :  { %p4651_p2 = pnand %p4649_p1, %p4646_p0 }
   0xb   :  { %4654 = shalt.err (!%p4651_p2)
}
   0xc   :  { %s4655_s29 = scalar_lea.vmem %s43_s19, 256  ;;  %p4660_p4 = scmp.lt.s32.totalorder %s43_s19, %s43_s19 }
   0xd   :  { %p4656_p3 = scmp.ne.s32.totalorder %s43_s19, %s4655_s29  ;;  %p4661_p5 = scmp.lt.s32.totalorder %s4655_s29, %s4655_s29 }
   0xf   :  { %p4662_p6 = por %p4661_p5, %p4660_p4 }
  0x11   :  { %p4663_p7 = pnand %p4662_p6, %p4656_p3 }
  0x13   :  { %4666 = shalt.err (!%p4663_p7)
}
  0x14   :  { %s4811_s30 = smov 128   ;;  %s4812_s16 = smov 8  }
  0x15   :  { %48 = dma.hbm_to_vmem [thread:$0]  %s5511_s1, 256, %s43_s19, [#allocation7], %s4811_s30, %s4811_s30, %s4812_s16  }
  0x16   :  { %s4667_s23 = scalar_lea.hbm %s5514_s4, 256 }
  0x17   :  { %p4668_p8 = scmp.ne.s32.totalorder %s5514_s4, %s4667_s23  ;;  %p4671_p9 = scmp.lt.u32.totalorder %s4667_s23, %s5514_s4 }
  0x19   :  { %p4673_p10 = pnand %p4671_p9, %p4668_p8 }
  0x1b   :  { %4676 = shalt.err (!%p4673_p10)
}
  0x1c   :  { %s4677_s28 = scalar_lea.vmem %s4911_s21, 256  ;;  %p4682_p12 = scmp.lt.s32.totalorder %s4911_s21, %s4911_s21 }
  0x1d   :  { %p4678_p11 = scmp.ne.s32.totalorder %s4911_s21, %s4677_s28  ;;  %p4683_p13 = scmp.lt.s32.totalorder %s4677_s28, %s4677_s28 }
  0x1f   :  { %p4684_p0 = por %p4683_p13, %p4682_p12 }
  0x21   :  { %p4685_p1 = pnand %p4684_p0, %p4678_p11 }
  0x23   :  { %4688 = shalt.err (!%p4685_p1)
}
  0x24   :  { %72 = dma.hbm_to_vmem [thread:$0]  %s5514_s4, 256, %s4911_s21, [#allocation10], %s4811_s30, %s4811_s30, %s4812_s16  }
  0x25   :  { %s4813_s29 = smov [#allocation3]   ;;  %s4814_s18 = smov [#allocation8]  }
  0x26   :  { %s30_s17 = sshll.u32 %s4813_s29, 4  ;;  %s55_s20 = sshll.u32 %s4814_s18, 4  ;;  %s31_s17 = int_to_ptr.vmem [resolvable:$true] %s30_s17  ;;  %s56_s20 = int_to_ptr.vmem [resolvable:$true] %s55_s20 }
  0x27   :  { %s4689_s24 = scalar_lea.hbm %s5510_s0, 256 }
  0x28   :  { %p4690_p2 = scmp.ne.s32.totalorder %s5510_s0, %s4689_s24  ;;  %p4693_p3 = scmp.lt.u32.totalorder %s4689_s24, %s5510_s0 }
  0x2a   :  { %p4695_p4 = pnand %p4693_p3, %p4690_p2 }
  0x2c   :  { %4698 = shalt.err (!%p4695_p4)
}
  0x2d   :  { %s4699_s4 = scalar_lea.vmem %s31_s17, 256  ;;  %p4704_p6 = scmp.lt.s32.totalorder %s31_s17, %s31_s17 }
  0x2e   :  { %p4700_p5 = scmp.ne.s32.totalorder %s31_s17, %s4699_s4  ;;  %p4705_p7 = scmp.lt.s32.totalorder %s4699_s4, %s4699_s4 }
  0x30   :  { %p4706_p8 = por %p4705_p7, %p4704_p6 }
  0x32   :  { %p4707_p9 = pnand %p4706_p8, %p4700_p5 }
  0x34   :  { %4710 = shalt.err (!%p4707_p9)
}
  0x35   :  { %36 = dma.hbm_to_vmem [thread:$0]  %s5510_s0, 256, %s31_s17, [#allocation4], %s4811_s30, %s4811_s30, %s4812_s16  }
  0x36   :  { %s4711_s18 = scalar_lea.hbm %s5512_s2, 128 }
  0x37   :  { %p4712_p10 = scmp.ne.s32.totalorder %s5512_s2, %s4711_s18  ;;  %p4715_p11 = scmp.lt.u32.totalorder %s4711_s18, %s5512_s2 }
  0x39   :  { %p4717_p12 = pnand %p4715_p11, %p4712_p10 }
  0x3b   :  { %4720 = shalt.err (!%p4717_p12)
}
  0x3c   :  { %s4721_s26 = scalar_lea.vmem %s56_s20, 128  ;;  %p4726_p0 = scmp.lt.s32.totalorder %s56_s20, %s56_s20 }
  0x3d   :  { %p4722_p13 = scmp.ne.s32.totalorder %s56_s20, %s4721_s26  ;;  %p4727_p1 = scmp.lt.s32.totalorder %s4721_s26, %s4721_s26 }
  0x3f   :  { %p4728_p2 = por %p4727_p1, %p4726_p0 }
  0x41   :  { %p4729_p3 = pnand %p4728_p2, %p4722_p13 }
  0x43   :  { %4732 = shalt.err (!%p4729_p3)
}
  0x44   :  { %58 = dma.hbm_to_vmem [thread:$0]  %s5512_s2, 128, %s56_s20, [#allocation7]  }
  0x45   :  { %s4815_s27 = smov [#allocation11]   ;;  %s4816_s4 = smov [#allocation12]  }
  0x46   :  { %s83_s28 = sshll.u32 %s4815_s27, 4  ;;  %s102_s21 = sshll.u32 %s4816_s4, 4  ;;  %s84_s28 = int_to_ptr.vmem [resolvable:$true] %s83_s28  ;;  %s4975_s21 = int_to_ptr.vmem [resolvable:$true] %s102_s21 }
  0x47   :  { %s4733_s29 = scalar_lea.hbm %s5517_s7, 16 }
  0x48   :  { %p4734_p4 = scmp.ne.s32.totalorder %s5517_s7, %s4733_s29  ;;  %p4737_p5 = scmp.lt.u32.totalorder %s4733_s29, %s5517_s7 }
  0x4a   :  { %p4739_p6 = pnand %p4737_p5, %p4734_p4 }
  0x4c   :  { %4742 = shalt.err (!%p4739_p6)
}
  0x4d   :  { %s4743_s2 = scalar_lea.vmem %s84_s28, 16  ;;  %s4747_s20 = scalar_lea.vmem %s84_s28, 32 }
  0x4e   :  { %p4744_p7 = scmp.ne.s32.totalorder %s84_s28, %s4743_s2  ;;  %p4748_p8 = scmp.lt.s32.totalorder %s84_s28, %s84_s28 }
  0x4f   :  { %p4749_p9 = scmp.lt.s32.totalorder %s4747_s20, %s4743_s2 }
  0x51   :  { %p4750_p10 = por %p4749_p9, %p4748_p8 }
  0x53   :  { %p4751_p11 = pnand %p4750_p10, %p4744_p7 }
  0x55   :  { %4754 = shalt.err (!%p4751_p11)
}
  0x56   :  { %86 = dma.hbm_to_vmem [thread:$0]  %s5517_s7, 16, %s84_s28, [#allocation10]  }
  0x57   :  { %s4755_s27 = scalar_lea.hbm %s5523_s13, 1024 }
  0x58   :  { %p4756_p12 = scmp.ne.s32.totalorder %s5523_s13, %s4755_s27  ;;  %p4759_p13 = scmp.lt.u32.totalorder %s4755_s27, %s5523_s13 }
  0x5a   :  { %p4761_p0 = pnand %p4759_p13, %p4756_p12 }
  0x5c   :  { %4764 = shalt.err (!%p4761_p0)
}
  0x5d   :  { %s4765_s18 = scalar_lea.vmem %s4975_s21, 1024  ;;  %p4770_p2 = scmp.lt.s32.totalorder %s4975_s21, %s4975_s21 }
  0x5e   :  { %p4766_p1 = scmp.ne.s32.totalorder %s4975_s21, %s4765_s18  ;;  %p4771_p3 = scmp.lt.s32.totalorder %s4765_s18, %s4765_s18 }
  0x60   :  { %p4772_p4 = por %p4771_p3, %p4770_p2 }
  0x62   :  { %p4773_p5 = pnand %p4772_p4, %p4766_p1 }
  0x64   :  { %4776 = shalt.err (!%p4773_p5)
}
  0x65   :  { %108 = dma.hbm_to_vmem [thread:$0]  %s5523_s13, 1024, %s4975_s21, [#allocation13], %s4811_s30, %s4811_s30, %s4812_s16  }
  0x66   :  { %4799 = dma.done.wait [#allocation4], 256  }
  0x67   :  { %4800 = vsyncadd [#allocation4], 4294967040 }
  0x68   :  { %4801 = dma.done.wait [#allocation7], 384  }
  0x69   :  { %4802 = vsyncadd [#allocation7], 4294966912 }
  0x6a   :  { %4803 = dma.done.wait [#allocation10], 272  }
  0x6b   :  { %4804 = vsyncadd [#allocation10], 4294967024 }
  0x6c   :  { %4805 = dma.done.wait [#allocation13], 1024  }
  0x6d   :  { %4806 = vsyncadd [#allocation13], 4294966272  ;;  %v4817_v0 = vmov 0.0   ;;  %vm4818_vm0 = vmmov 0   ;;  %vm161_vm1 = vcmask 130048   ;;  %v131_v1 = vld [vmem:[#allocation6] sm:$0xff] }
  0x6e   :  { %4078 = vmatprep.subr.mxu0 %v4817_v0  ;;  %4080 = vmatprep.mubr.msk.f32.mxu0 %vm4818_vm0, %v4817_v0  ;;  %v132_v2 = vld [vmem:[#allocation6 + $0x8] sm:$0xff]  ;;  %v129_v3 = vld [vmem:[#allocation3] sm:$0xff]  ;;  %v130_v6 = vld [vmem:[#allocation3 + $0x8] sm:$0xff]  ;;  %s4819_s21 = smov 104   ;;  %vm357_vm2 = vcmask 1043456   ;;  %v4820_v27 = vmov 0.0|0.0  }
  0x6f   :  { %v4287_v4 = vpack.c.bf16 %v132_v2, %v131_v1  ;;  %4063 = vmatprep.mubr.msk.f32.mxu1 %vm161_vm1, %v129_v3  ;;  %v5012_v5 = vld [vmem:[#allocation8] sm:$0xff]  ;;  %v3863_v7 = vld [vmem:[%s5513_s3] ss:$0 sm:$0xff]  ;;  %v135_v25 = vld [vmem:[#allocation9] sm:$0xff]  ;;  %vm4821_vm3 = vmmov 1   ;;  %s4822_s3 = smov 112  }
  0x70   :  { %4079 = vmatpush3.msra.mxu0 %v5012_v5  ;;  %v136_v26 = vld [vmem:[#allocation9 + $0x8] sm:$0xf]  ;;  %vm5037_vm4 = vmpackc.low %vm357_vm2, %vm4821_vm3  ;;  %vm243_vm5 = vcmask 64512   ;;  %vm353_vm6 = vcmask 97280   ;;  %v5066_v50 = vld [vmem:[%s5515_s5] ss:$0 sm:$0xff] }
  0x71   :  { %4288 = vmatprep.subr.bf16.mxu1 %v4287_v4  ;;  %4090 = vmatprep.subr.mxu0 %v4817_v0  ;;  %v5034_v28 = vpack.c.bf16 %v136_v26, %v135_v25  ;;  %s4823_s24 = smov 116   ;;  %s4824_s5 = smov 4   ;;  %vm1935_vm7 = vcmask 31744   ;;  %vm2308_vm8 = vcmask 58368   ;;  %vm2516_vm9 = vcmask 123968  }
  0x72   :  { %4290 = vmatpush3.bf16.msra.mxu1 %v4287_v4  ;;  %s4825_s25 = smov 120   ;;  %s4827_s29 = smov 16   ;;  %vm2720_vm10 = vcmask 189568   ;;  %vm2929_vm11 = vcmask 255168   ;;  %vm3137_vm12 = vcmask 320768   ;;  %vm3345_vm13 = vcmask 386368  }
  0x73   :  { %4066 = vmatprep.subr.mxu1 %v4817_v0  ;;  %s4828_s18 = smov 32   ;;  %vm3553_vm14 = vcmask 451968   ;;  %vm3761_vm15 = vcmask 517568   ;;  %s4830_s13 = smov [#allocation14]  }
  0x74   :  { %s3851_s30 = sshll.u32 %s4830_s13, 4  ;;  %s3852_s30 = int_to_ptr.vmem [resolvable:$true] %s3851_s30 }
  0x75   :  { %4064 = vmatmul.mubr.msk.f32.vlgmr.msra.gmra.mrb[0].mxu1 %vm161_vm1, %v130_v6  ;;  %p4782_p7 = scmp.lt.s32.totalorder %s3852_s30, %s3852_s30 }
  0x76   :  { %4067 = vmatpush3.msra.mxu1 %v5012_v5  ;;  %4068 = vmatprep.mubr.msk.f32.mxu1 %vm4818_vm0, %v4817_v0 }
  0x77   :  { %4291 = vmatprep.subr.bf16.mxu1 %v4820_v27 }
  0x79   :  { %4069 = vmatmul.mubr.f32.vlgmr.msra.gmra.mrb[2].mxu1 %v4817_v0 }
  0x7a   :  { %4075 = vmatprep.mubr.msk.f32.mxu1 %vm4818_vm0, %v4817_v0  ;;  %4294 = vmatpush3.bf16.msk.msra.mxu1 %vm5037_vm4, %v5034_v28 }
  0x7b   :  { %4295 = vmatprep.subr.bf16.mxu1 %v4820_v27 }
 0x148   :  { %v4065_v8 = vpop.f32.mrb[0].mxu1 }
 0x149   :  { %v5026_v9 = vadd.f32 %v4065_v8, %v3863_v7  ;;  %v234_v10 = vpop.f32.mrb[1].mxu1 }
 0x14a   :  { %v5028_v11 = vadd.f32 %v3863_v7, %v234_v10 }
 0x14c   :  { %v313_v12 = vpop.f32.mrb[2].mxu1 }
 0x14d   :  { %v317_v13 = vadd.f32 %v313_v12, %v5028_v11  ;;  %v4070_v14 = vpop.f32.mrb[3].mxu1 }
 0x14f   :  { %4389 = vtanh.f32 %v317_v13  ;;  %v3866_v16 = vmul.f32 -1.442695, %v317_v13 }
 0x151   :  { %4391 = vpow2.f32 %v3866_v16 }
 0x159   :  { %v4390_v15 = vpop.eup %4389 }
 0x15a   :  { %327 = vrot.lane.b32.xlu0 %v4390_v15, %s4819_s21 }
 0x15b   :  { %v4392_v17 = vpop.eup %4391 }
 0x15c   :  { %v321_v18 = vadd.f32 1.0, %v4392_v17 }
 0x15e   :  { %4393 = vrcp.f32 %v321_v18 }
 0x168   :  { %v4394_v19 = vpop.eup %4393 }
 0x169   :  { %v325_v22 = vmul.f32 0.0, %v4394_v19 }
 0x1cc   :  { %v328_v20 = vpop.permute.xlu0 %327 }
 0x1cd   :  { %v330_v21 = vmul.f32 %v4394_v19, %v328_v20 }
 0x1cf   :  { %332 = vrot.lane.b32.xlu0 %v330_v21, %s4812_s16 }
 0x241   :  { %v333_v23 = vpop.permute.xlu0 %332 }
 0x242   :  { %v335_v24 = vadd.f32 %v333_v23, %v325_v22 }
 0x244   :  { %4395 = vtanh.f32 %v335_v24  ;;  %v539_v48 = vrot.slane %v335_v24, 6 }
 0x24e   :  { %v4396_v30 = vpop.eup %4395 }
 0x24f   :  { %338 = vrot.lane.b32.xlu1 %v4396_v30, %s4812_s16 }
 0x2c1   :  { %v339_v31 = vpop.permute.xlu1 %338 }
 0x2c2   :  { %v341_v32 = vmul.f32 %v4394_v19, %v339_v31 }
 0x2c4   :  { %343 = vrot.lane.b32.xlu1 %v341_v32, %s4822_s3 }
 0x336   :  { %v344_v33 = vpop.permute.xlu1 %343 }
 0x337   :  { %v346_v34 = vsel %vm243_vm5, %v344_v33, 0.0  ;;  %4081 = vmatmul.mubr.msk.f32.vlgmr.msra.gmra.mrb[0].mxu0 %vm243_vm5, %v344_v33 }
 0x338   :  { %4076 = vmatmul.mubr.msk.f32.vlgmr.msra.gmra.mrb[4].mxu1 %vm353_vm6, %v346_v34  ;;  %4091 = vmatpush3.msra.mxu0 %v5012_v5 }
 0x339   :  { %4092 = vmatprep.mubr.msk.f32.mxu0 %vm4818_vm0, %v4817_v0  ;;  %4298 = vmatpush3.bf16.msk.msra.mxu1 %vm5037_vm4, %v5034_v28 }
 0x33a   :  { %4087 = vmatprep.mubr.msk.f32.mxu1 %vm4818_vm0, %v4817_v0  ;;  %4102 = vmatprep.subr.mxu0 %v4817_v0 }
 0x33b   :  { %4299 = vmatprep.subr.bf16.mxu1 %v4820_v27 }
 0x40a   :  { %v523_v35 = vpop.f32.mrb[0].mxu0 }
 0x40b   :  { %v528_v36 = vrot.slane %v523_v35, 6  ;;  %v427_v37 = vpop.f32.mrb[4].mxu1  ;;  %v4082_v38 = vpop.f32.mrb[1].mxu0 }
 0x40c   :  { %v4077_v39 = vpop.f32.mrb[5].mxu1  ;;  %v428_v53 = vadd.f32 %v5066_v50, %v427_v37 }
 0x40d   :  { %v530_v40 = vadd.f32 %v528_v36, %v5028_v11 }
 0x40e   :  { %v3870_v56 = vmul.f32 -1.442695, %v428_v53 }
 0x40f   :  { %4397 = vtanh.f32 %v530_v40  ;;  %v3872_v42 = vmul.f32 -1.442695, %v530_v40 }
 0x411   :  { %4399 = vpow2.f32 %v3872_v42 }
 0x419   :  { %v4398_v41 = vpop.eup %4397 }
 0x41a   :  { %543 = vrot.lane.b32.xlu0 %v4398_v41, %s4819_s21 }
 0x41b   :  { %v4400_v43 = vpop.eup %4399 }
 0x41c   :  { %v534_v44 = vadd.f32 1.0, %v4400_v43 }
 0x41e   :  { %4401 = vrcp.f32 %v534_v44 }
 0x428   :  { %v4402_v45 = vpop.eup %4401 }
 0x429   :  { %v541_v49 = vmul.f32 %v4402_v45, %v539_v48 }
 0x48c   :  { %v544_v46 = vpop.permute.xlu0 %543 }
 0x48d   :  { %v546_v47 = vmul.f32 %v4402_v45, %v544_v46 }
 0x48f   :  { %548 = vrot.lane.b32.xlu1 %v546_v47, %s4812_s16 }
 0x501   :  { %v549_v51 = vpop.permute.xlu1 %548 }
 0x502   :  { %v5068_v52 = vadd.f32 %v549_v51, %v541_v49 }
 0x504   :  { %4403 = vtanh.f32 %v5068_v52  ;;  %v751_v30 = vrot.slane %v5068_v52, 6 }
 0x505   :  { %4405 = vtanh.f32 %v428_v53 }
 0x506   :  { %4407 = vpow2.f32 %v3870_v56 }
 0x50e   :  { %v4404_v54 = vpop.eup %4403 }
 0x50f   :  { %554 = vrot.lane.b32.xlu0 %v4404_v54, %s4812_s16  ;;  %v4406_v55 = vpop.eup %4405 }
 0x510   :  { %v4408_v57 = vpop.eup %4407 }
 0x511   :  { %v434_v58 = vadd.f32 1.0, %v4408_v57 }
 0x513   :  { %440 = vrot.lane.b32.xlu0 %v4406_v55, %s4823_s24  ;;  %4409 = vrcp.f32 %v434_v58 }
 0x51d   :  { %v4410_v63 = vpop.eup %4409 }
 0x51e   :  { %v438_v3 = vmul.f32 0.0, %v4410_v63 }
 0x581   :  { %v555_v59 = vpop.permute.xlu0 %554 }
 0x582   :  { %v557_v60 = vmul.f32 %v4402_v45, %v555_v59 }
 0x584   :  { %v664_v61 = vrot.slane %v557_v60, 2 }
 0x585   :  { %v441_v62 = vpop.permute.xlu0 %440 }
 0x586   :  { %665 = vrot.lane.b32.xlu1 %v664_v61, %s4822_s3  ;;  %v443_v1 = vmul.f32 %v4410_v63, %v441_v62 }
 0x58a   :  { %445 = vrot.lane.b32.xlu1 %v443_v1, %s4824_s5 }
 0x5f8   :  { %v666_v2 = vpop.permute.xlu1 %665 }
 0x5f9   :  { %4093 = vmatmul.mubr.msk.f32.vlgmr.msra.gmra.mrb[2].mxu0 %vm243_vm5, %v666_v2 }
 0x5fa   :  { %4103 = vmatpush3.msra.mxu0 %v5012_v5  ;;  %4104 = vmatprep.mubr.msk.f32.mxu0 %vm4818_vm0, %v4817_v0 }
 0x5fb   :  { %4114 = vmatprep.subr.mxu0 %v4817_v0 }
 0x5fc   :  { %v446_v4 = vpop.permute.xlu1 %445 }
 0x5fd   :  { %v5081_v6 = vadd.f32 %v446_v4, %v438_v3 }
 0x5ff   :  { %4411 = vtanh.f32 %v5081_v6 }
 0x609   :  { %v4412_v7 = vpop.eup %4411 }
 0x60a   :  { %451 = vrot.lane.b32.xlu1 %v4412_v7, %s4824_s5 }
 0x67c   :  { %v452_v18 = vpop.permute.xlu1 %451 }
 0x67d   :  { %v454_v19 = vmul.f32 %v4410_v63, %v452_v18 }
 0x67f   :  { %v563_v23 = vrot.slane %v454_v19, 6 }
 0x6cc   :  { %v735_v8 = vpop.f32.mrb[2].mxu0 }
 0x6cd   :  { %v740_v10 = vrot.slane %v735_v8, 4  ;;  %v4094_v12 = vpop.f32.mrb[3].mxu0 }
 0x6cf   :  { %v742_v13 = vadd.f32 %v740_v10, %v5028_v11 }
 0x6d1   :  { %4413 = vtanh.f32 %v742_v13  ;;  %v3877_v15 = vmul.f32 -1.442695, %v742_v13 }
 0x6d3   :  { %4415 = vpow2.f32 %v3877_v15 }
 0x6db   :  { %v4414_v14 = vpop.eup %4413 }
 0x6dc   :  { %755 = vrot.lane.b32.xlu0 %v4414_v14, %s4819_s21 }
 0x6dd   :  { %v4416_v16 = vpop.eup %4415 }
 0x6de   :  { %v746_v17 = vadd.f32 1.0, %v4416_v16 }
 0x6e0   :  { %559 = vrot.lane.b32.xlu0 %v557_v60, %s4822_s3  ;;  %4417 = vrcp.f32 %v746_v17 }
 0x6ea   :  { %v4418_v20 = vpop.eup %4417 }
 0x6eb   :  { %v753_v31 = vmul.f32 %v4418_v20, %v751_v30 }
 0x74e   :  { %v756_v21 = vpop.permute.xlu0 %755 }
 0x74f   :  { %v758_v22 = vmul.f32 %v4418_v20, %v756_v21 }
 0x751   :  { %760 = vrot.lane.b32.xlu1 %v758_v22, %s4812_s16 }
 0x752   :  { %v560_v24 = vpop.permute.xlu0 %559 }
 0x753   :  { %v565_v25 = vsel %vm243_vm5, %v560_v24, %v563_v23 }
 0x754   :  { %v567_v26 = vrot.slane %v565_v25, 2 }
 0x756   :  { %4088 = vmatmul.mubr.msk.f32.vlgmr.msra.gmra.mrb[6].mxu1 %vm353_vm6, %v567_v26 }
 0x757   :  { %4302 = vmatpush3.bf16.msk.msra.mxu1 %vm5037_vm4, %v5034_v28  ;;  %4099 = vmatprep.mubr.msk.f32.mxu1 %vm4818_vm0, %v4817_v0 }
 0x758   :  { %4303 = vmatprep.subr.bf16.mxu1 %v4820_v27 }
 0x7c3   :  { %v761_v32 = vpop.permute.xlu1 %760 }
 0x7c4   :  { %v5098_v33 = vadd.f32 %v761_v32, %v753_v31 }
 0x7c6   :  { %4419 = vtanh.f32 %v5098_v33  ;;  %v963_v12 = vrot.slane %v5098_v33, 6 }
 0x7d0   :  { %v4420_v34 = vpop.eup %4419 }
 0x7d1   :  { %766 = vrot.lane.b32.xlu0 %v4420_v34, %s4812_s16 }
 0x829   :  { %v636_v35 = vpop.f32.mrb[6].mxu1 }
 0x82a   :  { %v637_v36 = vadd.f32 %v5066_v50, %v636_v35  ;;  %v4089_v37 = vpop.f32.mrb[7].mxu1 }
 0x82c   :  { %4421 = vtanh.f32 %v637_v36  ;;  %v3875_v42 = vmul.f32 -1.442695, %v637_v36 }
 0x82e   :  { %4423 = vpow2.f32 %v3875_v42 }
 0x836   :  { %v4422_v38 = vpop.eup %4421 }
 0x837   :  { %649 = vrot.lane.b32.xlu0 %v4422_v38, %s4823_s24 }
 0x838   :  { %v4424_v43 = vpop.eup %4423 }
 0x839   :  { %v643_v44 = vadd.f32 1.0, %v4424_v43 }
 0x83b   :  { %4425 = vrcp.f32 %v643_v44 }
 0x843   :  { %v767_v39 = vpop.permute.xlu0 %766 }
 0x844   :  { %v769_v40 = vmul.f32 %v4418_v20, %v767_v39 }
 0x845   :  { %v4426_v45 = vpop.eup %4425 }
 0x846   :  { %v876_v41 = vrot.slane %v769_v40, 4  ;;  %v647_v49 = vmul.f32 %v4426_v45, %v5081_v6 }
 0x848   :  { %877 = vrot.lane.b32.xlu1 %v876_v41, %s4822_s3 }
 0x8a9   :  { %v650_v46 = vpop.permute.xlu0 %649 }
 0x8aa   :  { %v652_v47 = vmul.f32 %v4426_v45, %v650_v46 }
 0x8ac   :  { %654 = vrot.lane.b32.xlu1 %v652_v47, %s4824_s5 }
 0x8b0   :  { %771 = vrot.lane.b32.xlu1 %v769_v40, %s4822_s3 }
 0x8ba   :  { %v878_v48 = vpop.permute.xlu1 %877 }
 0x8bb   :  { %4105 = vmatmul.mubr.msk.f32.vlgmr.msra.gmra.mrb[4].mxu0 %vm243_vm5, %v878_v48 }
 0x8bc   :  { %4115 = vmatpush3.msra.mxu0 %v5012_v5  ;;  %4116 = vmatprep.mubr.msk.f32.mxu0 %vm4818_vm0, %v4817_v0 }
 0x8bd   :  { %4126 = vmatprep.subr.mxu0 %v4817_v0 }
 0x91e   :  { %v655_v51 = vpop.permute.xlu1 %654 }
 0x91f   :  { %v657_v52 = vadd.f32 %v655_v51, %v647_v49 }
 0x921   :  { %4427 = vtanh.f32 %v657_v52 }
 0x922   :  { %v772_v62 = vpop.permute.xlu1 %771 }
 0x92b   :  { %v4428_v53 = vpop.eup %4427 }
 0x92c   :  { %660 = vrot.lane.b32.xlu0 %v4428_v53, %s4824_s5 }
 0x98e   :  { %v947_v54 = vpop.f32.mrb[4].mxu0 }
 0x98f   :  { %v952_v55 = vrot.slane %v947_v54, 2  ;;  %v4106_v56 = vpop.f32.mrb[5].mxu0 }
 0x991   :  { %v954_v57 = vadd.f32 %v952_v55, %v5028_v11 }
 0x993   :  { %4429 = vtanh.f32 %v954_v57  ;;  %v3882_v11 = vmul.f32 -1.442695, %v954_v57 }
 0x995   :  { %4431 = vpow2.f32 %v3882_v11 }
 0x99d   :  { %v4430_v58 = vpop.eup %4429 }
 0x99e   :  { %967 = vrot.lane.b32.xlu0 %v4430_v58, %s4819_s21  ;;  %v661_v59 = vpop.permute.xlu0 %660 }
 0x99f   :  { %v663_v60 = vmul.f32 %v4426_v45, %v661_v59  ;;  %v4432_v2 = vpop.eup %4431 }
 0x9a0   :  { %v958_v3 = vadd.f32 1.0, %v4432_v2 }
 0x9a1   :  { %v775_v61 = vrot.slane %v663_v60, 4 }
 0x9a2   :  { %4433 = vrcp.f32 %v958_v3 }
 0x9a3   :  { %v777_v63 = vsel %vm243_vm5, %v772_v62, %v775_v61 }
 0x9a4   :  { %v779_v1 = vrot.slane %v777_v63, 4 }
 0x9a6   :  { %4100 = vmatmul.mubr.msk.f32.vlgmr.msra.gmra.mrb[8].mxu1 %vm353_vm6, %v779_v1 }
 0x9a7   :  { %4306 = vmatpush3.bf16.msk.msra.mxu1 %vm5037_vm4, %v5034_v28  ;;  %4111 = vmatprep.mubr.msk.f32.mxu1 %vm4818_vm0, %v4817_v0 }
 0x9a8   :  { %4307 = vmatprep.subr.bf16.mxu1 %v4820_v27 }
 0x9ac   :  { %v4434_v4 = vpop.eup %4433 }
 0x9ad   :  { %v965_v13 = vmul.f32 %v4434_v4, %v963_v12 }
 0xa10   :  { %v968_v6 = vpop.permute.xlu0 %967 }
 0xa11   :  { %v970_v7 = vmul.f32 %v4434_v4, %v968_v6 }
 0xa13   :  { %972 = vrot.lane.b32.xlu1 %v970_v7, %s4812_s16 }
 0xa79   :  { %v848_v8 = vpop.f32.mrb[8].mxu1 }
 0xa7a   :  { %v4101_v10 = vpop.f32.mrb[9].mxu1  ;;  %v849_v16 = vadd.f32 %v5066_v50, %v848_v8 }
 0xa7c   :  { %v3880_v19 = vmul.f32 -1.442695, %v849_v16 }
 0xa85   :  { %v973_v14 = vpop.permute.xlu1 %972 }
 0xa86   :  { %v975_v15 = vadd.f32 %v973_v14, %v965_v13 }
 0xa88   :  { %4435 = vtanh.f32 %v975_v15  ;;  %v1172_v55 = vrot.slane %v975_v15, 6 }
 0xa89   :  { %4437 = vtanh.f32 %v849_v16 }
 0xa8a   :  { %4439 = vpow2.f32 %v3880_v19 }
 0xa92   :  { %v4436_v17 = vpop.eup %4435 }
 0xa93   :  { %978 = vrot.lane.b32.xlu0 %v4436_v17, %s4812_s16  ;;  %v4438_v18 = vpop.eup %4437 }
 0xa94   :  { %v4440_v20 = vpop.eup %4439 }
 0xa95   :  { %v855_v21 = vadd.f32 1.0, %v4440_v20 }
 0xa97   :  { %861 = vrot.lane.b32.xlu0 %v4438_v18, %s4823_s24  ;;  %4441 = vrcp.f32 %v855_v21 }
 0xaa1   :  { %v4442_v26 = vpop.eup %4441 }
 0xaa2   :  { %v859_v32 = vmul.f32 %v4442_v26, %v657_v52 }
 0xb05   :  { %v979_v22 = vpop.permute.xlu0 %978 }
 0xb06   :  { %v981_v23 = vmul.f32 %v4434_v4, %v979_v22 }
 0xb08   :  { %v1088_v24 = vrot.slane %v981_v23, 6 }
 0xb09   :  { %v862_v25 = vpop.permute.xlu0 %861 }
 0xb0a   :  { %1089 = vrot.lane.b32.xlu1 %v1088_v24, %s4822_s3  ;;  %v864_v30 = vmul.f32 %v4442_v26, %v862_v25 }
 0xb0e   :  { %866 = vrot.lane.b32.xlu1 %v864_v30, %s4824_s5 }
 0xb12   :  { %983 = vrot.lane.b32.xlu1 %v981_v23, %s4822_s3 }
 0xb7c   :  { %v1090_v31 = vpop.permute.xlu1 %1089 }
 0xb7d   :  { %4117 = vmatmul.mubr.msk.f32.vlgmr.msra.gmra.mrb[6].mxu0 %vm243_vm5, %v1090_v31 }
 0xb7e   :  { %4127 = vmatpush3.msra.mxu0 %v5012_v5  ;;  %4128 = vmatprep.mubr.msk.f32.mxu0 %vm4818_vm0, %v4817_v0 }
 0xb7f   :  { %4138 = vmatprep.subr.mxu0 %v4817_v0 }
 0xb80   :  { %v867_v33 = vpop.permute.xlu1 %866 }
 0xb81   :  { %v869_v34 = vadd.f32 %v867_v33, %v859_v32 }
 0xb83   :  { %4443 = vtanh.f32 %v869_v34 }
 0xb84   :  { %v984_v39 = vpop.permute.xlu1 %983 }
 0xb8d   :  { %v4444_v35 = vpop.eup %4443 }
 0xb8e   :  { %872 = vrot.lane.b32.xlu0 %v4444_v35, %s4824_s5 }
 0xc00   :  { %v873_v36 = vpop.permute.xlu0 %872 }
 0xc01   :  { %v875_v37 = vmul.f32 %v4442_v26, %v873_v36 }
 0xc03   :  { %v987_v38 = vrot.slane %v875_v37, 2 }
 0xc05   :  { %v989_v40 = vsel %vm243_vm5, %v984_v39, %v987_v38 }
 0xc06   :  { %v991_v41 = vrot.slane %v989_v40, 6 }
 0xc08   :  { %4112 = vmatmul.mubr.msk.f32.vlgmr.msra.gmra.mrb[10].mxu1 %vm353_vm6, %v991_v41 }
 0xc09   :  { %4310 = vmatpush3.bf16.msk.msra.mxu1 %vm5037_vm4, %v5034_v28  ;;  %4123 = vmatprep.mubr.msk.f32.mxu1 %vm4818_vm0, %v4817_v0 }
 0xc0a   :  { %4311 = vmatprep.subr.bf16.mxu1 %v4820_v27 }
 0xc50   :  { %v1159_v42 = vpop.f32.mrb[6].mxu0 }
 0xc51   :  { %v1163_v43 = vadd.f32 %v1159_v42, %v5026_v9  ;;  %v4118_v44 = vpop.f32.mrb[7].mxu0 }
 0xc53   :  { %4445 = vtanh.f32 %v1163_v43  ;;  %v3887_v46 = vmul.f32 -1.442695, %v1163_v43 }
 0xc55   :  { %4447 = vpow2.f32 %v3887_v46 }
 0xc5d   :  { %v4446_v45 = vpop.eup %4445 }
 0xc5e   :  { %1176 = vrot.lane.b32.xlu0 %v4446_v45, %s4819_s21 }
 0xc5f   :  { %v4448_v47 = vpop.eup %4447 }
 0xc60   :  { %v1167_v48 = vadd.f32 1.0, %v4448_v47 }
 0xc62   :  { %4449 = vrcp.f32 %v1167_v48 }
 0xc6c   :  { %v4450_v49 = vpop.eup %4449 }
 0xc6d   :  { %v1174_v56 = vmul.f32 %v4450_v49, %v1172_v55 }
 0xcd0   :  { %v1177_v51 = vpop.permute.xlu0 %1176 }
 0xcd1   :  { %v1179_v52 = vmul.f32 %v4450_v49, %v1177_v51 }
 0xcd3   :  { %1181 = vrot.lane.b32.xlu1 %v1179_v52, %s4812_s16 }
 0xcdb   :  { %v1060_v53 = vpop.f32.mrb[10].mxu1 }
 0xcdc   :  { %v4113_v54 = vpop.f32.mrb[11].mxu1  ;;  %v1061_v59 = vadd.f32 %v5066_v50, %v1060_v53 }
 0xcde   :  { %v3885_v62 = vmul.f32 -1.442695, %v1061_v59 }
 0xd45   :  { %v1182_v57 = vpop.permute.xlu1 %1181 }
 0xd46   :  { %v5149_v58 = vadd.f32 %v1182_v57, %v1174_v56 }
 0xd48   :  { %4451 = vtanh.f32 %v5149_v58  ;;  %v1377_v36 = vrot.slane %v5149_v58, 6 }
 0xd49   :  { %4453 = vtanh.f32 %v1061_v59 }
 0xd4a   :  { %4455 = vpow2.f32 %v3885_v62 }
 0xd52   :  { %v4452_v60 = vpop.eup %4451 }
 0xd53   :  { %1187 = vrot.lane.b32.xlu0 %v4452_v60, %s4812_s16  ;;  %v4454_v61 = vpop.eup %4453 }
 0xd54   :  { %v4456_v63 = vpop.eup %4455 }
 0xd55   :  { %v1067_v1 = vadd.f32 1.0, %v4456_v63 }
 0xd57   :  { %1073 = vrot.lane.b32.xlu0 %v4454_v61, %s4823_s24  ;;  %4457 = vrcp.f32 %v1067_v1 }
 0xd61   :  { %v4458_v3 = vpop.eup %4457 }
 0xd62   :  { %v1071_v8 = vmul.f32 %v4458_v3, %v869_v34 }
 0xdc5   :  { %v1188_v11 = vpop.permute.xlu0 %1187 }
 0xdc6   :  { %v1190_v2 = vmul.f32 %v4450_v49, %v1188_v11 }
 0xdc8   :  { %1192 = vrot.lane.b32.xlu1 %v1190_v2, %s4822_s3 }
 0xdc9   :  { %v1074_v4 = vpop.permute.xlu0 %1073 }
 0xdca   :  { %v1076_v6 = vmul.f32 %v4458_v3, %v1074_v4 }
 0xdcc   :  { %1078 = vrot.lane.b32.xlu1 %v1076_v6, %s4824_s5 }
 0xe3a   :  { %v1193_v7 = vpop.permute.xlu1 %1192 }
 0xe3b   :  { %4129 = vmatmul.mubr.msk.f32.vlgmr.msra.gmra.mrb[8].mxu0 %vm243_vm5, %v1193_v7 }
 0xe3c   :  { %4139 = vmatpush3.msra.mxu0 %v5012_v5  ;;  %4140 = vmatprep.mubr.msk.f32.mxu0 %vm4818_vm0, %v4817_v0 }
 0xe3d   :  { %4150 = vmatprep.subr.mxu0 %v4817_v0 }
 0xe3e   :  { %v1079_v10 = vpop.permute.xlu1 %1078 }
 0xe3f   :  { %v1081_v12 = vadd.f32 %v1079_v10, %v1071_v8 }
 0xe41   :  { %4459 = vtanh.f32 %v1081_v12 }
 0xe4b   :  { %v4460_v13 = vpop.eup %4459 }
 0xe4c   :  { %1084 = vrot.lane.b32.xlu0 %v4460_v13, %s4824_s5 }
 0xebe   :  { %v1085_v14 = vpop.permute.xlu0 %1084 }
 0xebf   :  { %v1087_v15 = vmul.f32 %v4458_v3, %v1085_v14 }
 0xec1   :  { %v1195_v16 = vsel %vm243_vm5, %v1193_v7, %v1087_v15 }
 0xec2   :  { %4124 = vmatmul.mubr.msk.f32.vlgmr.msra.gmra.mrb[12].mxu1 %vm353_vm6, %v1195_v16 }
 0xec3   :  { %4314 = vmatpush3.bf16.msk.msra.mxu1 %vm5037_vm4, %v5034_v28  ;;  %4135 = vmatprep.mubr.msk.f32.mxu1 %vm4818_vm0, %v4817_v0 }
 0xec4   :  { %4315 = vmatprep.subr.bf16.mxu1 %v4820_v27 }
 0xf0e   :  { %v1361_v17 = vpop.f32.mrb[8].mxu0 }
 0xf0f   :  { %v1366_v18 = vrot.slane %v1361_v17, 6  ;;  %v4130_v19 = vpop.f32.mrb[9].mxu0 }
 0xf11   :  { %v1368_v20 = vadd.f32 %v1366_v18, %v5026_v9 }
 0xf13   :  { %4461 = vtanh.f32 %v1368_v20  ;;  %v3892_v22 = vmul.f32 -1.442695, %v1368_v20 }
 0xf15   :  { %4463 = vpow2.f32 %v3892_v22 }
 0xf1d   :  { %v4462_v21 = vpop.eup %4461 }
 0xf1e   :  { %1381 = vrot.lane.b32.xlu1 %v4462_v21, %s4819_s21 }
 0xf1f   :  { %v4464_v23 = vpop.eup %4463 }
 0xf20   :  { %v1372_v24 = vadd.f32 1.0, %v4464_v23 }
 0xf22   :  { %4465 = vrcp.f32 %v1372_v24 }
 0xf2c   :  { %v4466_v25 = vpop.eup %4465 }
 0xf2d   :  { %v1379_v38 = vmul.f32 %v4466_v25, %v1377_v36 }
 0xf90   :  { %v1382_v26 = vpop.permute.xlu1 %1381 }
 0xf91   :  { %v1384_v30 = vmul.f32 %v4466_v25, %v1382_v26 }
 0xf93   :  { %1386 = vrot.lane.b32.xlu0 %v1384_v30, %s4812_s16 }
 0xf95   :  { %v1265_v31 = vpop.f32.mrb[12].mxu1 }
 0xf96   :  { %v1266_v32 = vadd.f32 %v5066_v50, %v1265_v31  ;;  %v4125_v33 = vpop.f32.mrb[13].mxu1 }
 0xf98   :  { %4467 = vtanh.f32 %v1266_v32  ;;  %v3890_v35 = vmul.f32 -1.442695, %v1266_v32 }
 0xf9a   :  { %4469 = vpow2.f32 %v3890_v35 }
 0xfa2   :  { %v4468_v34 = vpop.eup %4467 }
 0xfa3   :  { %1278 = vrot.lane.b32.xlu0 %v4468_v34, %s4823_s24 }
 0xfa4   :  { %v4470_v37 = vpop.eup %4469 }
 0xfa5   :  { %v1272_v41 = vadd.f32 1.0, %v4470_v37 }
0x1005   :  { %v1387_v39 = vpop.permute.xlu0 %1386 }
0x1006   :  { %v5177_v40 = vadd.f32 %v1387_v39, %v1379_v38 }
0x1008   :  { %4471 = vtanh.f32 %v5177_v40  ;;  %v1589_v20 = vrot.slane %v5177_v40, 6 }
0x1009   :  { %4473 = vrcp.f32 %v1272_v41 }
0x1012   :  { %v4472_v42 = vpop.eup %4471 }
0x1013   :  { %1392 = vrot.lane.b32.xlu1 %v4472_v42, %s4812_s16  ;;  %v4474_v43 = vpop.eup %4473 }
0x1014   :  { %v1276_v49 = vmul.f32 %v4474_v43, %v1081_v12 }
0x1015   :  { %v1279_v44 = vpop.permute.xlu0 %1278 }
0x1016   :  { %v1281_v45 = vmul.f32 %v4474_v43, %v1279_v44 }
0x1018   :  { %1283 = vrot.lane.b32.xlu0 %v1281_v45, %s4824_s5 }
0x1085   :  { %v1393_v46 = vpop.permute.xlu1 %1392 }
0x1086   :  { %v1395_v47 = vmul.f32 %v4466_v25, %v1393_v46 }
0x1088   :  { %v1502_v48 = vrot.slane %v1395_v47, 2  ;;  %1397 = vrot.lane.b32.xlu0 %v1395_v47, %s4822_s3 }
0x108a   :  { %1503 = vrot.lane.b32.xlu1 %v1502_v48, %s4822_s3  ;;  %v1284_v51 = vpop.permute.xlu0 %1283 }
0x108b   :  { %v1286_v52 = vadd.f32 %v1284_v51, %v1276_v49 }
0x108d   :  { %4475 = vtanh.f32 %v1286_v52 }
0x1097   :  { %v4476_v53 = vpop.eup %4475 }
0x1098   :  { %1289 = vrot.lane.b32.xlu1 %v4476_v53, %s4824_s5 }
0x10fa   :  { %v1398_v58 = vpop.permute.xlu0 %1397 }
0x10fc   :  { %v1504_v54 = vpop.permute.xlu1 %1503 }
0x10fd   :  { %4141 = vmatmul.mubr.msk.f32.vlgmr.msra.gmra.mrb[10].mxu0 %vm243_vm5, %v1504_v54 }
0x10fe   :  { %4151 = vmatpush3.msra.mxu0 %v5012_v5  ;;  %4152 = vmatprep.mubr.msk.f32.mxu0 %vm4818_vm0, %v4817_v0 }
0x10ff   :  { %4162 = vmatprep.subr.mxu0 %v4817_v0 }
0x110a   :  { %v1290_v55 = vpop.permute.xlu1 %1289 }
0x110b   :  { %v1292_v56 = vmul.f32 %v4474_v43, %v1290_v55 }
0x110d   :  { %v1401_v57 = vrot.slane %v1292_v56, 6 }
0x110f   :  { %v1403_v59 = vsel %vm243_vm5, %v1398_v58, %v1401_v57 }
0x1110   :  { %v1405_v60 = vrot.slane %v1403_v59, 2 }
0x1112   :  { %4136 = vmatmul.mubr.msk.f32.vlgmr.msra.gmra.mrb[14].mxu1 %vm353_vm6, %v1405_v60 }
0x1113   :  { %4318 = vmatpush3.bf16.msk.msra.mxu1 %vm5037_vm4, %v5034_v28  ;;  %4147 = vmatprep.mubr.msk.f32.mxu1 %vm4818_vm0, %v4817_v0 }
0x1114   :  { %4319 = vmatprep.subr.bf16.mxu1 %v4820_v27 }
0x11d0   :  { %v1573_v5 = vpop.f32.mrb[10].mxu0 }
0x11d1   :  { %v1578_v61 = vrot.slane %v1573_v5, 4  ;;  %v4142_v62 = vpop.f32.mrb[11].mxu0 }
0x11d3   :  { %v1580_v63 = vadd.f32 %v1578_v61, %v5026_v9 }
0x11d5   :  { %4477 = vtanh.f32 %v1580_v63  ;;  %v3897_v6 = vmul.f32 -1.442695, %v1580_v63 }
0x11df   :  { %v4478_v1 = vpop.eup %4477 }
0x11e0   :  { %1593 = vrot.lane.b32.xlu1 %v4478_v1, %s4819_s21 }
0x11e5   :  { %v1474_v11 = vpop.f32.mrb[14].mxu1 }
0x11e6   :  { %v1475_v2 = vadd.f32 %v5066_v50, %v1474_v11  ;;  %v4137_v3 = vpop.f32.mrb[15].mxu1 }
0x11e8   :  { %4479 = vtanh.f32 %v1475_v2  ;;  %v3895_v10 = vmul.f32 -1.442695, %v1475_v2 }
0x11e9   :  { %4481 = vpow2.f32 %v3897_v6 }
0x11f2   :  { %v4480_v4 = vpop.eup %4479 }
0x11f3   :  { %1487 = vrot.lane.b32.xlu1 %v4480_v4, %s4823_s24  ;;  %v4482_v7 = vpop.eup %4481 }
0x11f4   :  { %v1584_v8 = vadd.f32 1.0, %v4482_v7 }
0x11f6   :  { %4483 = vrcp.f32 %v1584_v8 }
0x11f7   :  { %4485 = vpow2.f32 %v3895_v10 }
0x1200   :  { %v4484_v12 = vpop.eup %4483 }
0x1201   :  { %v4486_v15 = vpop.eup %4485  ;;  %v1591_v21 = vmul.f32 %v4484_v12, %v1589_v20 }
0x1202   :  { %v1481_v16 = vadd.f32 1.0, %v4486_v15 }
0x1204   :  { %4487 = vrcp.f32 %v1481_v16 }
0x120e   :  { %v4488_v17 = vpop.eup %4487 }
0x120f   :  { %v1485_v25 = vmul.f32 %v4488_v17, %v1286_v52 }
0x1252   :  { %v1594_v13 = vpop.permute.xlu1 %1593 }
0x1253   :  { %v1596_v14 = vmul.f32 %v4484_v12, %v1594_v13 }
0x1255   :  { %1598 = vrot.lane.b32.xlu0 %v1596_v14, %s4812_s16 }
0x1265   :  { %v1488_v18 = vpop.permute.xlu1 %1487 }
0x1266   :  { %v1490_v19 = vmul.f32 %v4488_v17, %v1488_v18 }
0x1268   :  { %1492 = vrot.lane.b32.xlu1 %v1490_v19, %s4824_s5 }
0x12c7   :  { %v1599_v22 = vpop.permute.xlu0 %1598 }
0x12c8   :  { %v1601_v23 = vadd.f32 %v1599_v22, %v1591_v21 }
0x12ca   :  { %4489 = vtanh.f32 %v1601_v23  ;;  %v1801_v61 = vrot.slane %v1601_v23, 6 }
0x12d4   :  { %v4490_v24 = vpop.eup %4489 }
0x12d5   :  { %1604 = vrot.lane.b32.xlu0 %v4490_v24, %s4812_s16 }
0x12da   :  { %v1493_v26 = vpop.permute.xlu1 %1492 }
0x12db   :  { %v1495_v30 = vadd.f32 %v1493_v26, %v1485_v25 }
0x12dd   :  { %4491 = vtanh.f32 %v1495_v30 }
0x12e7   :  { %v4492_v31 = vpop.eup %4491 }
0x12e8   :  { %1498 = vrot.lane.b32.xlu1 %v4492_v31, %s4824_s5 }
0x1347   :  { %v1605_v32 = vpop.permute.xlu0 %1604 }
0x1348   :  { %v1607_v33 = vmul.f32 %v4484_v12, %v1605_v32 }
0x134a   :  { %v1714_v34 = vrot.slane %v1607_v33, 4 }
0x134c   :  { %1715 = vrot.lane.b32.xlu0 %v1714_v34, %s4822_s3 }
0x1350   :  { %1609 = vrot.lane.b32.xlu0 %v1607_v33, %s4822_s3 }
0x135a   :  { %v1499_v35 = vpop.permute.xlu1 %1498 }
0x135b   :  { %v1501_v36 = vmul.f32 %v4488_v17, %v1499_v35 }
0x135d   :  { %v1613_v38 = vrot.slane %v1501_v36, 4 }
0x13be   :  { %v1716_v37 = vpop.permute.xlu0 %1715 }
0x13bf   :  { %4153 = vmatmul.mubr.msk.f32.vlgmr.msra.gmra.mrb[12].mxu0 %vm243_vm5, %v1716_v37  ;;  %v140_v37 = vld [vmem:[%s5518_s8] sm:$0xf] }
0x13c0   :  { %4164 = vmatprep.mubr.msk.f32.mxu0 %vm4818_vm0, %v4817_v0 }
0x13c2   :  { %v1610_v39 = vpop.permute.xlu0 %1609 }
0x13c3   :  { %v1615_v40 = vsel %vm243_vm5, %v1610_v39, %v1613_v38  ;;  %v5252_v38 = vld [vmem:[%s5519_s9] sm:$0xf]  ;;  %v3906_v39 = vld [vmem:[#allocation11] ss:$0 sm:$0xff] }
0x13c4   :  { %v1617_v41 = vrot.slane %v1615_v40, 4 }
0x13c6   :  { %4148 = vmatmul.mubr.msk.f32.vlgmr.msra.gmra.mrb[16].mxu1 %vm353_vm6, %v1617_v41 }
0x13c7   :  { %4322 = vmatpush3.bf16.msk.msra.mxu1 %vm5037_vm4, %v5034_v28  ;;  %4159 = vmatprep.mubr.msk.f32.mxu1 %vm4818_vm0, %v4817_v0 }
0x13c8   :  { %4167 = vmatprep.subr.mxu1 %v4817_v0 }
0x1492   :  { %v1785_v42 = vpop.f32.mrb[12].mxu0 }
0x1493   :  { %v1790_v43 = vrot.slane %v1785_v42, 2  ;;  %v4154_v44 = vpop.f32.mrb[13].mxu0 }
0x1495   :  { %v1792_v45 = vadd.f32 %v1790_v43, %v5026_v9 }
0x1497   :  { %4493 = vtanh.f32 %v1792_v45  ;;  %v3902_v51 = vmul.f32 -1.442695, %v1792_v45  ;;  %v3909_v45 = vld [vmem:[%s5520_s10] ss:$0 sm:$0xff] }
0x1499   :  { %v1686_v46 = vpop.f32.mrb[16].mxu1 }
0x149a   :  { %v1687_v47 = vadd.f32 %v5066_v50, %v1686_v46  ;;  %v4149_v48 = vpop.f32.mrb[17].mxu1 }
0x149c   :  { %4495 = vtanh.f32 %v1687_v47  ;;  %v3900_v52 = vmul.f32 -1.442695, %v1687_v47 }
0x149d   :  { %4497 = vpow2.f32 %v3902_v51 }
0x149e   :  { %4499 = vpow2.f32 %v3900_v52 }
0x14a1   :  { %v4494_v49 = vpop.eup %4493 }
0x14a2   :  { %1805 = vrot.lane.b32.xlu1 %v4494_v49, %s4819_s21 }
0x14a6   :  { %v4496_v28 = vpop.eup %4495 }
0x14a7   :  { %1699 = vrot.lane.b32.xlu0 %v4496_v28, %s4823_s24  ;;  %v4498_v53 = vpop.eup %4497 }
0x14a8   :  { %v1796_v54 = vadd.f32 1.0, %v4498_v53  ;;  %v4500_v55 = vpop.eup %4499 }
0x14a9   :  { %v1693_v9 = vadd.f32 1.0, %v4500_v55 }
0x14aa   :  { %4501 = vrcp.f32 %v1796_v54 }
0x14ab   :  { %4503 = vrcp.f32 %v1693_v9 }
0x14b4   :  { %v4502_v56 = vpop.eup %4501 }
0x14b5   :  { %v4504_v59 = vpop.eup %4503  ;;  %v1803_v62 = vmul.f32 %v4502_v56, %v1801_v61 }
0x14b6   :  { %v1697_v11 = vmul.f32 %v4504_v59, %v1495_v30 }
0x1514   :  { %v1806_v57 = vpop.permute.xlu1 %1805 }
0x1515   :  { %v1808_v58 = vmul.f32 %v4502_v56, %v1806_v57 }
0x1517   :  { %1810 = vrot.lane.b32.xlu1 %v1808_v58, %s4812_s16 }
0x1519   :  { %v1700_v60 = vpop.permute.xlu0 %1699 }
0x151a   :  { %v1702_v5 = vmul.f32 %v4504_v59, %v1700_v60  ;;  %v144_v60 = vld [vmem:[%s5521_s11 + $0x8] sm:$0xf] }
0x151c   :  { %1704 = vrot.lane.b32.xlu0 %v1702_v5, %s4824_s5 }
0x1589   :  { %v1811_v63 = vpop.permute.xlu1 %1810 }
0x158a   :  { %v1813_v1 = vadd.f32 %v1811_v63, %v1803_v62 }
0x158c   :  { %4505 = vtanh.f32 %v1813_v1 }
0x158e   :  { %v1705_v2 = vpop.permute.xlu0 %1704 }
0x158f   :  { %v1707_v3 = vadd.f32 %v1705_v2, %v1697_v11  ;;  %v5307_v2 = vld [vmem:[%s5522_s12] ss:$0 sm:$0xff]  ;;  %s4826_s12 = smov 24  }
0x1591   :  { %4507 = vtanh.f32 %v1707_v3 }
0x1596   :  { %v4506_v4 = vpop.eup %4505 }
0x1597   :  { %1816 = vrot.lane.b32.xlu1 %v4506_v4, %s4812_s16 }
0x159b   :  { %v4508_v6 = vpop.eup %4507 }
0x159c   :  { %1710 = vrot.lane.b32.xlu0 %v4508_v6, %s4824_s5 }
0x1609   :  { %v1817_v7 = vpop.permute.xlu1 %1816 }
0x160a   :  { %v1819_v8 = vmul.f32 %v4502_v56, %v1817_v7 }
0x160c   :  { %1821 = vrot.lane.b32.xlu1 %v1819_v8, %s4822_s3 }
0x160e   :  { %v1711_v10 = vpop.permute.xlu0 %1710 }
0x160f   :  { %v1713_v12 = vmul.f32 %v4504_v59, %v1711_v10  ;;  %v143_v59 = vld [vmem:[%s5521_s11] sm:$0xff] }
0x1610   :  { %v5282_v5 = vpack.c.bf16 %v144_v60, %v143_v59 }
0x1611   :  { %v1825_v13 = vrot.slane %v1713_v12, 2 }
0x167e   :  { %v1822_v14 = vpop.permute.xlu1 %1821 }
0x167f   :  { %v1827_v15 = vsel %vm243_vm5, %v1822_v14, %v1825_v13 }
0x1680   :  { %v1829_v16 = vrot.slane %v1827_v15, 6 }
0x1682   :  { %4160 = vmatmul.mubr.msk.f32.vlgmr.msra.gmra.mrb[18].mxu1 %vm353_vm6, %v1829_v16 }
0x1683   :  { %4169 = vmatprep.mubr.msk.f32.mxu1 %vm4818_vm0, %v4817_v0  ;;  %4168 = vmatpush3.msk.msra.mxu1 %vm357_vm2, %v140_v37 }
0x1684   :  { %4323 = vmatprep.subr.bf16.mxu1 %v4820_v27 }
0x1755   :  { %v1898_v17 = vpop.f32.mrb[18].mxu1 }
0x1756   :  { %v1899_v18 = vadd.f32 %v5066_v50, %v1898_v17  ;;  %v4161_v19 = vpop.f32.mrb[19].mxu1  ;;  %v138_v50 = vld [vmem:[%s5516_s6] sm:$0xf] }
0x1757   :  { %4163 = vmatpush3.msk.msra.mxu0 %vm357_vm2, %v138_v50 }
0x1758   :  { %4509 = vtanh.f32 %v1899_v18  ;;  %v3905_v21 = vmul.f32 -1.442695, %v1899_v18  ;;  %4172 = vmatprep.subr.mxu0 %v4817_v0 }
0x175a   :  { %4511 = vpow2.f32 %v3905_v21 }
0x1762   :  { %v4510_v20 = vpop.eup %4509 }
0x1763   :  { %1911 = vrot.lane.b32.xlu0 %v4510_v20, %s4823_s24 }
0x1764   :  { %v4512_v22 = vpop.eup %4511 }
0x1765   :  { %v1905_v23 = vadd.f32 1.0, %v4512_v22 }
0x1767   :  { %4513 = vrcp.f32 %v1905_v23 }
0x1771   :  { %v4514_v24 = vpop.eup %4513 }
0x1772   :  { %v1909_v30 = vmul.f32 %v4514_v24, %v1707_v3 }
0x17d5   :  { %v1912_v25 = vpop.permute.xlu0 %1911 }
0x17d6   :  { %v1914_v26 = vmul.f32 %v4514_v24, %v1912_v25 }
0x17d8   :  { %1916 = vrot.lane.b32.xlu1 %v1914_v26, %s4824_s5 }
0x184a   :  { %v1917_v31 = vpop.permute.xlu1 %1916 }
0x184b   :  { %v1919_v32 = vadd.f32 %v1917_v31, %v1909_v30 }
0x184d   :  { %4515 = vtanh.f32 %v1919_v32 }
0x1857   :  { %v4516_v33 = vpop.eup %4515 }
0x1858   :  { %1922 = vrot.lane.b32.xlu0 %v4516_v33, %s4824_s5 }
0x18ca   :  { %v1923_v34 = vpop.permute.xlu0 %1922 }
0x18cb   :  { %v1925_v35 = vmul.f32 %v4514_v24, %v1923_v34 }
0x18cd   :  { %1933 = vrot.lane.b32.xlu1 %v1925_v35, %s4825_s25 }
0x193f   :  { %v1934_v36 = vpop.permute.xlu1 %1933 }
0x1940   :  { %4165 = vmatmul.mubr.msk.f32.vlgmr.msra.gmra.mrb[14].mxu0 %vm1935_vm7, %v1934_v36 }
0x1941   :  { %4174 = vmatprep.mubr.msk.f32.mxu0 %vm4818_vm0, %v4817_v0  ;;  %4173 = vmatpush3.msk.msra.mxu0 %vm357_vm2, %v5252_v38 }
0x1942   :  { %4184 = vmatprep.subr.mxu0 %v4817_v0 }
0x1944   :  { %4175 = vmatmul.mubr.f32.vlgmr.msra.gmra.mrb[16].mxu0 %v4817_v0 }
0x1945   :  { %4186 = vmatprep.mubr.msk.f32.mxu0 %vm4818_vm0, %v4817_v0  ;;  %4185 = vmatpush3.msk.msra.mxu0 %vm357_vm2, %v5252_v38 }
0x1946   :  { %4196 = vmatprep.subr.mxu0 %v4817_v0 }
0x1a13   :  { %v2007_v40 = vpop.f32.mrb[14].mxu0 }
0x1a14   :  { %v2008_v41 = vadd.f32 %v3906_v39, %v2007_v40  ;;  %v4166_v42 = vpop.f32.mrb[15].mxu0 }
0x1a16   :  { %4170 = vmatmul.mubr.msk.f32.vlgmr.msra.gmra.mrb[20].mxu1 %vm1935_vm7, %v2008_v41 }
0x1a17   :  { %4181 = vmatprep.mubr.msk.f32.mxu1 %vm4818_vm0, %v4817_v0  ;;  %v2164_v43 = vpop.f32.mrb[16].mxu0  ;;  %4326 = vmatpush3.bf16.msk.msra.mxu1 %vm5037_vm4, %v5282_v5 }
0x1a18   :  { %v4176_v44 = vpop.f32.mrb[17].mxu0  ;;  %4327 = vmatprep.subr.bf16.mxu1 %v4820_v27 }
0x1ae9   :  { %v2089_v46 = vpop.f32.mrb[20].mxu1 }
0x1aea   :  { %v5271_v47 = vadd.f32 %v3909_v45, %v2089_v46  ;;  %v4171_v48 = vpop.f32.mrb[21].mxu1 }
0x1aec   :  { %v2168_v49 = vadd.f32 %v2164_v43, %v5271_v47 }
0x1aee   :  { %4517 = vtanh.f32 %v2168_v49  ;;  %v3913_v51 = vmul.f32 -1.442695, %v2168_v49 }
0x1af0   :  { %4519 = vpow2.f32 %v3913_v51 }
0x1af8   :  { %v4518_v28 = vpop.eup %4517 }
0x1af9   :  { %2178 = vrot.lane.b32.xlu0 %v4518_v28, %s4823_s24 }
0x1afa   :  { %v4520_v52 = vpop.eup %4519 }
0x1afb   :  { %v2172_v53 = vadd.f32 1.0, %v4520_v52 }
0x1afd   :  { %4521 = vrcp.f32 %v2172_v53 }
0x1b07   :  { %v4522_v54 = vpop.eup %4521 }
0x1b08   :  { %v2176_v56 = vmul.f32 0.0, %v4522_v54 }
0x1b6b   :  { %v2179_v55 = vpop.permute.xlu0 %2178 }
0x1b6c   :  { %v2181_v9 = vmul.f32 %v4522_v54, %v2179_v55 }
0x1b6e   :  { %2183 = vrot.lane.b32.xlu1 %v2181_v9, %s4824_s5 }
0x1be0   :  { %v2184_v57 = vpop.permute.xlu1 %2183 }
0x1be1   :  { %v2186_v58 = vadd.f32 %v2184_v57, %v2176_v56 }
0x1be3   :  { %4523 = vtanh.f32 %v2186_v58 }
0x1bed   :  { %v4524_v61 = vpop.eup %4523 }
0x1bee   :  { %2189 = vrot.lane.b32.xlu0 %v4524_v61, %s4824_s5 }
0x1c60   :  { %v2190_v62 = vpop.permute.xlu0 %2189 }
0x1c61   :  { %v2192_v63 = vmul.f32 %v4522_v54, %v2190_v62 }
0x1c63   :  { %2194 = vrot.lane.b32.xlu1 %v2192_v63, %s4825_s25 }
0x1cd5   :  { %v2195_v1 = vpop.permute.xlu1 %2194 }
0x1cd6   :  { %v2197_v11 = vsel %vm1935_vm7, %v2195_v1, 0.0  ;;  %4187 = vmatmul.mubr.msk.f32.vlgmr.msra.gmra.mrb[18].mxu0 %vm1935_vm7, %v2195_v1 }
0x1cd7   :  { %4182 = vmatmul.mubr.msk.f32.vlgmr.msra.gmra.mrb[22].mxu1 %vm353_vm6, %v2197_v11  ;;  %4197 = vmatpush3.msk.msra.mxu0 %vm357_vm2, %v5252_v38 }
0x1cd8   :  { %4330 = vmatpush3.bf16.msk.msra.mxu1 %vm5037_vm4, %v5282_v5  ;;  %4198 = vmatprep.mubr.msk.f32.mxu0 %vm4818_vm0, %v4817_v0 }
0x1cd9   :  { %4193 = vmatprep.mubr.msk.f32.mxu1 %vm4818_vm0, %v4817_v0  ;;  %4208 = vmatprep.subr.mxu0 %v4817_v0 }
0x1cda   :  { %4331 = vmatprep.subr.bf16.mxu1 %v4820_v27 }
0x1da9   :  { %v2378_v3 = vpop.f32.mrb[18].mxu0 }
0x1daa   :  { %v2382_v4 = vadd.f32 %v2378_v3, %v5271_v47  ;;  %v2276_v6 = vpop.f32.mrb[22].mxu1  ;;  %v4188_v7 = vpop.f32.mrb[19].mxu0 }
0x1dab   :  { %v2277_v8 = vadd.f32 %v5307_v2, %v2276_v6  ;;  %v4183_v10 = vpop.f32.mrb[23].mxu1 }
0x1dac   :  { %4525 = vtanh.f32 %v2382_v4  ;;  %v3920_v14 = vmul.f32 -1.442695, %v2382_v4 }
0x1dad   :  { %4527 = vtanh.f32 %v2277_v8  ;;  %v3917_v15 = vmul.f32 -1.442695, %v2277_v8 }
0x1dae   :  { %4529 = vpow2.f32 %v3920_v14 }
0x1daf   :  { %4531 = vpow2.f32 %v3917_v15 }
0x1db6   :  { %v4526_v12 = vpop.eup %4525 }
0x1db7   :  { %v4528_v13 = vpop.eup %4527  ;;  %2392 = vrot.lane.b32.xlu1 %v4526_v12, %s4823_s24 }
0x1db8   :  { %2289 = vrot.lane.b32.xlu0 %v4528_v13, %s4819_s21  ;;  %v4530_v16 = vpop.eup %4529 }
0x1db9   :  { %v4532_v17 = vpop.eup %4531  ;;  %v2386_v18 = vadd.f32 1.0, %v4530_v16 }
0x1dba   :  { %v2283_v19 = vadd.f32 1.0, %v4532_v17 }
0x1dbb   :  { %4533 = vrcp.f32 %v2386_v18 }
0x1dbc   :  { %4535 = vrcp.f32 %v2283_v19 }
0x1dc5   :  { %v4534_v20 = vpop.eup %4533 }
0x1dc6   :  { %v4536_v22 = vpop.eup %4535  ;;  %v2390_v26 = vmul.f32 %v4534_v20, %v2186_v58 }
0x1dc7   :  { %v2287_v31 = vmul.f32 0.0, %v4536_v22 }
0x1e29   :  { %v2393_v21 = vpop.permute.xlu1 %2392 }
0x1e2a   :  { %v2395_v23 = vmul.f32 %v4534_v20, %v2393_v21  ;;  %v2290_v24 = vpop.permute.xlu0 %2289 }
0x1e2b   :  { %v2292_v25 = vmul.f32 %v4536_v22, %v2290_v24 }
0x1e2c   :  { %2397 = vrot.lane.b32.xlu1 %v2395_v23, %s4824_s5 }
0x1e2d   :  { %2294 = vrot.lane.b32.xlu0 %v2292_v25, %s4812_s16 }
0x1e9e   :  { %v2398_v30 = vpop.permute.xlu1 %2397 }
0x1e9f   :  { %v2400_v32 = vadd.f32 %v2398_v30, %v2390_v26  ;;  %v2295_v50 = vpop.permute.xlu0 %2294 }
0x1ea0   :  { %v2297_v33 = vadd.f32 %v2295_v50, %v2287_v31 }
0x1ea1   :  { %4537 = vtanh.f32 %v2400_v32 }
0x1ea2   :  { %4539 = vtanh.f32 %v2297_v33 }
0x1eab   :  { %v4538_v34 = vpop.eup %4537 }
0x1eac   :  { %v4540_v35 = vpop.eup %4539  ;;  %2403 = vrot.lane.b32.xlu1 %v4538_v34, %s4824_s5 }
0x1ead   :  { %2300 = vrot.lane.b32.xlu0 %v4540_v35, %s4812_s16 }
0x1f1e   :  { %v2404_v36 = vpop.permute.xlu1 %2403 }
0x1f1f   :  { %v2406_v37 = vmul.f32 %v4534_v20, %v2404_v36  ;;  %v2301_v39 = vpop.permute.xlu0 %2300 }
0x1f20   :  { %v5317_v40 = vmul.f32 %v4536_v22, %v2301_v39 }
0x1f21   :  { %2408 = vrot.lane.b32.xlu0 %v2406_v37, %s4825_s25 }
0x1f22   :  { %2411 = vrot.lane.b32.xlu1 %v5317_v40, %s4823_s24 }
0x1f93   :  { %v2409_v41 = vpop.permute.xlu0 %2408 }
0x1f94   :  { %v2412_v42 = vpop.permute.xlu1 %2411  ;;  %4199 = vmatmul.mubr.msk.f32.vlgmr.msra.gmra.mrb[20].mxu0 %vm1935_vm7, %v2409_v41 }
0x1f95   :  { %v2414_v43 = vsel %vm1935_vm7, %v2409_v41, %v2412_v42  ;;  %4209 = vmatpush3.msk.msra.mxu0 %vm357_vm2, %v5252_v38  ;;  %4210 = vmatprep.mubr.msk.f32.mxu0 %vm4818_vm0, %v4817_v0 }
0x1f96   :  { %4194 = vmatmul.mubr.msk.f32.vlgmr.msra.gmra.mrb[24].mxu1 %vm353_vm6, %v2414_v43  ;;  %4220 = vmatprep.subr.mxu0 %v4817_v0 }
0x1f97   :  { %4334 = vmatpush3.bf16.msk.msra.mxu1 %vm5037_vm4, %v5282_v5  ;;  %4205 = vmatprep.mubr.msk.f32.mxu1 %vm4818_vm0, %v4817_v0 }
0x1f98   :  { %4335 = vmatprep.subr.bf16.mxu1 %v4820_v27 }
0x2067   :  { %v2586_v44 = vpop.f32.mrb[20].mxu0 }
0x2068   :  { %v2590_v45 = vadd.f32 %v2586_v44, %v5271_v47  ;;  %v4200_v46 = vpop.f32.mrb[21].mxu0 }
0x2069   :  { %v2484_v48 = vpop.f32.mrb[24].mxu1 }
0x206a   :  { %4541 = vtanh.f32 %v2590_v45  ;;  %v2485_v49 = vadd.f32 %v5307_v2, %v2484_v48  ;;  %v4195_v28 = vpop.f32.mrb[25].mxu1  ;;  %v3926_v53 = vmul.f32 -1.442695, %v2590_v45 }
0x206c   :  { %4543 = vtanh.f32 %v2485_v49  ;;  %v3923_v54 = vmul.f32 -1.442695, %v2485_v49 }
0x206d   :  { %4545 = vpow2.f32 %v3926_v53 }
0x206e   :  { %4547 = vpow2.f32 %v3923_v54 }
0x2074   :  { %v4542_v51 = vpop.eup %4541 }
0x2075   :  { %2600 = vrot.lane.b32.xlu1 %v4542_v51, %s4823_s24 }
0x2076   :  { %v4544_v52 = vpop.eup %4543 }
0x2077   :  { %2497 = vrot.lane.b32.xlu0 %v4544_v52, %s4819_s21  ;;  %v4546_v55 = vpop.eup %4545 }
0x2078   :  { %v4548_v9 = vpop.eup %4547  ;;  %v2594_v56 = vadd.f32 1.0, %v4546_v55 }
0x2079   :  { %v2491_v57 = vadd.f32 1.0, %v4548_v9 }
0x207a   :  { %4549 = vrcp.f32 %v2594_v56 }
0x207b   :  { %4551 = vrcp.f32 %v2491_v57 }
0x2084   :  { %v4550_v58 = vpop.eup %4549 }
0x2085   :  { %v4552_v61 = vpop.eup %4551  ;;  %v2598_v1 = vmul.f32 %v4550_v58, %v2400_v32 }
0x2086   :  { %v2495_v4 = vmul.f32 %v4552_v61, %v2297_v33 }
0x20e7   :  { %v2601_v59 = vpop.permute.xlu1 %2600 }
0x20e8   :  { %v2603_v60 = vmul.f32 %v4550_v58, %v2601_v59 }
0x20e9   :  { %v2498_v62 = vpop.permute.xlu0 %2497 }
0x20ea   :  { %2605 = vrot.lane.b32.xlu1 %v2603_v60, %s4824_s5  ;;  %v2500_v63 = vmul.f32 %v4552_v61, %v2498_v62 }
0x20ec   :  { %2502 = vrot.lane.b32.xlu0 %v2500_v63, %s4812_s16 }
0x215c   :  { %v2606_v11 = vpop.permute.xlu1 %2605 }
0x215d   :  { %v2608_v3 = vadd.f32 %v2606_v11, %v2598_v1 }
0x215e   :  { %v2503_v6 = vpop.permute.xlu0 %2502 }
0x215f   :  { %4553 = vtanh.f32 %v2608_v3  ;;  %v2505_v7 = vadd.f32 %v2503_v6, %v2495_v4 }
0x2161   :  { %4555 = vtanh.f32 %v2505_v7 }
0x2169   :  { %v4554_v8 = vpop.eup %4553 }
0x216a   :  { %2611 = vrot.lane.b32.xlu1 %v4554_v8, %s4824_s5 }
0x216b   :  { %v4556_v10 = vpop.eup %4555 }
0x216c   :  { %2508 = vrot.lane.b32.xlu0 %v4556_v10, %s4812_s16 }
0x21dc   :  { %v2612_v12 = vpop.permute.xlu1 %2611 }
0x21dd   :  { %v2614_v13 = vmul.f32 %v4550_v58, %v2612_v12 }
0x21de   :  { %v2509_v14 = vpop.permute.xlu0 %2508 }
0x21df   :  { %2616 = vrot.lane.b32.xlu0 %v2614_v13, %s4825_s25  ;;  %v5345_v15 = vmul.f32 %v4552_v61, %v2509_v14 }
0x21e1   :  { %2619 = vrot.lane.b32.xlu1 %v5345_v15, %s4823_s24 }
0x2251   :  { %v2617_v16 = vpop.permute.xlu0 %2616 }
0x2252   :  { %4211 = vmatmul.mubr.msk.f32.vlgmr.msra.gmra.mrb[22].mxu0 %vm1935_vm7, %v2617_v16 }
0x2253   :  { %4221 = vmatpush3.msk.msra.mxu0 %vm357_vm2, %v5252_v38  ;;  %4222 = vmatprep.mubr.msk.f32.mxu0 %vm4818_vm0, %v4817_v0  ;;  %v2620_v17 = vpop.permute.xlu1 %2619 }
0x2254   :  { %4232 = vmatprep.subr.mxu0 %v4817_v0  ;;  %v2622_v18 = vsel %vm1935_vm7, %v2617_v16, %v2620_v17 }
0x2255   :  { %4206 = vmatmul.mubr.msk.f32.vlgmr.msra.gmra.mrb[26].mxu1 %vm353_vm6, %v2622_v18 }
0x2256   :  { %4338 = vmatpush3.bf16.msk.msra.mxu1 %vm5037_vm4, %v5282_v5  ;;  %4217 = vmatprep.mubr.msk.f32.mxu1 %vm4818_vm0, %v4817_v0 }
0x2257   :  { %4339 = vmatprep.subr.bf16.mxu1 %v4820_v27 }
0x2325   :  { %v2790_v19 = vpop.f32.mrb[22].mxu0 }
0x2326   :  { %v2794_v20 = vadd.f32 %v2790_v19, %v5271_v47  ;;  %v4212_v21 = vpop.f32.mrb[23].mxu0 }
0x2328   :  { %4557 = vtanh.f32 %v2794_v20  ;;  %v2692_v22 = vpop.f32.mrb[26].mxu1  ;;  %v3932_v30 = vmul.f32 -1.442695, %v2794_v20 }
0x2329   :  { %v2693_v23 = vadd.f32 %v5307_v2, %v2692_v22  ;;  %v4207_v24 = vpop.f32.mrb[27].mxu1 }
0x232b   :  { %4559 = vtanh.f32 %v2693_v23  ;;  %v3929_v31 = vmul.f32 -1.442695, %v2693_v23 }
0x232c   :  { %4561 = vpow2.f32 %v3932_v30 }
0x232d   :  { %4563 = vpow2.f32 %v3929_v31 }
0x2332   :  { %v4558_v25 = vpop.eup %4557 }
0x2333   :  { %2804 = vrot.lane.b32.xlu1 %v4558_v25, %s4823_s24 }
0x2335   :  { %v4560_v26 = vpop.eup %4559 }
0x2336   :  { %2705 = vrot.lane.b32.xlu0 %v4560_v26, %s4819_s21  ;;  %v4562_v32 = vpop.eup %4561 }
0x2337   :  { %v2798_v50 = vadd.f32 1.0, %v4562_v32  ;;  %v4564_v33 = vpop.eup %4563 }
0x2338   :  { %v2699_v34 = vadd.f32 1.0, %v4564_v33 }
0x2339   :  { %4565 = vrcp.f32 %v2798_v50 }
0x233a   :  { %4567 = vrcp.f32 %v2699_v34 }
0x2343   :  { %v4566_v35 = vpop.eup %4565 }
0x2344   :  { %v4568_v39 = vpop.eup %4567  ;;  %v2802_v43 = vmul.f32 %v4566_v35, %v2608_v3 }
0x2345   :  { %v2703_v46 = vmul.f32 %v4568_v39, %v2505_v7 }
0x23a5   :  { %v2805_v36 = vpop.permute.xlu1 %2804 }
0x23a6   :  { %v2807_v37 = vmul.f32 %v4566_v35, %v2805_v36 }
0x23a8   :  { %2809 = vrot.lane.b32.xlu1 %v2807_v37, %s4824_s5  ;;  %v2706_v41 = vpop.permute.xlu0 %2705 }
0x23a9   :  { %v2708_v42 = vmul.f32 %v4568_v39, %v2706_v41 }
0x23ab   :  { %2710 = vrot.lane.b32.xlu0 %v2708_v42, %s4812_s16 }
0x241a   :  { %v2810_v44 = vpop.permute.xlu1 %2809 }
0x241b   :  { %v2812_v45 = vadd.f32 %v2810_v44, %v2802_v43 }
0x241d   :  { %4569 = vtanh.f32 %v2812_v45  ;;  %v2711_v48 = vpop.permute.xlu0 %2710 }
0x241e   :  { %v2713_v49 = vadd.f32 %v2711_v48, %v2703_v46 }
0x2420   :  { %4571 = vtanh.f32 %v2713_v49 }
0x2427   :  { %v4570_v28 = vpop.eup %4569 }
0x2428   :  { %2815 = vrot.lane.b32.xlu1 %v4570_v28, %s4824_s5 }
0x242a   :  { %v4572_v51 = vpop.eup %4571 }
0x242b   :  { %2716 = vrot.lane.b32.xlu0 %v4572_v51, %s4812_s16 }
0x249a   :  { %v2816_v52 = vpop.permute.xlu1 %2815 }
0x249b   :  { %v2818_v53 = vmul.f32 %v4566_v35, %v2816_v52 }
0x249d   :  { %2820 = vrot.lane.b32.xlu0 %v2818_v53, %s4825_s25  ;;  %v2717_v54 = vpop.permute.xlu0 %2716 }
0x249e   :  { %v5372_v55 = vmul.f32 %v4568_v39, %v2717_v54 }
0x24a0   :  { %2824 = vrot.lane.b32.xlu1 %v5372_v55, %s4823_s24 }
0x250f   :  { %v2821_v9 = vpop.permute.xlu0 %2820 }
0x2510   :  { %4223 = vmatmul.mubr.msk.f32.vlgmr.msra.gmra.mrb[24].mxu0 %vm1935_vm7, %v2821_v9 }
0x2511   :  { %4233 = vmatpush3.msk.msra.mxu0 %vm357_vm2, %v5252_v38  ;;  %4234 = vmatprep.mubr.msk.f32.mxu0 %vm4818_vm0, %v4817_v0 }
0x2512   :  { %4244 = vmatprep.subr.mxu0 %v4817_v0  ;;  %v2825_v56 = vpop.permute.xlu1 %2824 }
0x2513   :  { %v2827_v57 = vsel %vm1935_vm7, %v2821_v9, %v2825_v56 }
0x2514   :  { %4218 = vmatmul.mubr.msk.f32.vlgmr.msra.gmra.mrb[28].mxu1 %vm353_vm6, %v2827_v57 }
0x2515   :  { %4342 = vmatpush3.bf16.msk.msra.mxu1 %vm5037_vm4, %v5282_v5  ;;  %4229 = vmatprep.mubr.msk.f32.mxu1 %vm4818_vm0, %v4817_v0 }
0x2516   :  { %4343 = vmatprep.subr.bf16.mxu1 %v4820_v27 }
0x25e3   :  { %v2999_v58 = vpop.f32.mrb[24].mxu0 }
0x25e4   :  { %v3003_v59 = vadd.f32 %v2999_v58, %v5271_v47  ;;  %v4224_v60 = vpop.f32.mrb[25].mxu0 }
0x25e6   :  { %4573 = vtanh.f32 %v3003_v59  ;;  %v3938_v3 = vmul.f32 -1.442695, %v3003_v59 }
0x25e7   :  { %v2897_v61 = vpop.f32.mrb[28].mxu1 }
0x25e8   :  { %v2898_v62 = vadd.f32 %v5307_v2, %v2897_v61  ;;  %v4219_v63 = vpop.f32.mrb[29].mxu1 }
0x25ea   :  { %4575 = vtanh.f32 %v2898_v62  ;;  %v3935_v4 = vmul.f32 -1.442695, %v2898_v62 }
0x25eb   :  { %4577 = vpow2.f32 %v3938_v3 }
0x25ec   :  { %4579 = vpow2.f32 %v3935_v4 }
0x25f0   :  { %v4574_v1 = vpop.eup %4573 }
0x25f1   :  { %3013 = vrot.lane.b32.xlu1 %v4574_v1, %s4823_s24 }
0x25f4   :  { %v4576_v11 = vpop.eup %4575 }
0x25f5   :  { %2910 = vrot.lane.b32.xlu0 %v4576_v11, %s4819_s21  ;;  %v4578_v6 = vpop.eup %4577 }
0x25f6   :  { %v3007_v7 = vadd.f32 1.0, %v4578_v6  ;;  %v4580_v8 = vpop.eup %4579 }
0x25f7   :  { %v2904_v10 = vadd.f32 1.0, %v4580_v8 }
0x25f8   :  { %4581 = vrcp.f32 %v3007_v7 }
0x25f9   :  { %4583 = vrcp.f32 %v2904_v10 }
0x2602   :  { %v4582_v12 = vpop.eup %4581 }
0x2603   :  { %v4584_v16 = vpop.eup %4583  ;;  %v3011_v19 = vmul.f32 %v4582_v12, %v2812_v45 }
0x2604   :  { %v2908_v22 = vmul.f32 %v4584_v16, %v2713_v49 }
0x2663   :  { %v3014_v13 = vpop.permute.xlu1 %3013 }
0x2664   :  { %v3016_v14 = vmul.f32 %v4582_v12, %v3014_v13 }
0x2666   :  { %3018 = vrot.lane.b32.xlu1 %v3016_v14, %s4824_s5 }
0x2667   :  { %v2911_v17 = vpop.permute.xlu0 %2910 }
0x2668   :  { %v2913_v18 = vmul.f32 %v4584_v16, %v2911_v17 }
0x266a   :  { %2915 = vrot.lane.b32.xlu0 %v2913_v18, %s4812_s16 }
0x26d8   :  { %v3019_v20 = vpop.permute.xlu1 %3018 }
0x26d9   :  { %v3021_v21 = vadd.f32 %v3019_v20, %v3011_v19 }
0x26db   :  { %4585 = vtanh.f32 %v3021_v21 }
0x26dc   :  { %v2916_v23 = vpop.permute.xlu0 %2915 }
0x26dd   :  { %v2918_v24 = vadd.f32 %v2916_v23, %v2908_v22 }
0x26df   :  { %4587 = vtanh.f32 %v2918_v24 }
0x26e5   :  { %v4586_v25 = vpop.eup %4585 }
0x26e6   :  { %3024 = vrot.lane.b32.xlu1 %v4586_v25, %s4824_s5 }
0x26e9   :  { %v4588_v26 = vpop.eup %4587 }
0x26ea   :  { %2921 = vrot.lane.b32.xlu0 %v4588_v26, %s4812_s16 }
0x2758   :  { %v3025_v30 = vpop.permute.xlu1 %3024 }
0x2759   :  { %v3027_v31 = vmul.f32 %v4582_v12, %v3025_v30 }
0x275b   :  { %3029 = vrot.lane.b32.xlu0 %v3027_v31, %s4825_s25 }
0x275c   :  { %v2922_v32 = vpop.permute.xlu0 %2921 }
0x275d   :  { %v5399_v50 = vmul.f32 %v4584_v16, %v2922_v32 }
0x275f   :  { %3032 = vrot.lane.b32.xlu1 %v5399_v50, %s4823_s24 }
0x27cd   :  { %v3030_v33 = vpop.permute.xlu0 %3029 }
0x27ce   :  { %4235 = vmatmul.mubr.msk.f32.vlgmr.msra.gmra.mrb[26].mxu0 %vm1935_vm7, %v3030_v33 }
0x27cf   :  { %4245 = vmatpush3.msk.msra.mxu0 %vm357_vm2, %v5252_v38  ;;  %4246 = vmatprep.mubr.msk.f32.mxu0 %vm4818_vm0, %v4817_v0 }
0x27d0   :  { %4256 = vmatprep.subr.mxu0 %v4817_v0 }
0x27d1   :  { %v3033_v34 = vpop.permute.xlu1 %3032 }
0x27d2   :  { %v3035_v35 = vsel %vm1935_vm7, %v3030_v33, %v3033_v34 }
0x27d3   :  { %4230 = vmatmul.mubr.msk.f32.vlgmr.msra.gmra.mrb[30].mxu1 %vm353_vm6, %v3035_v35 }
0x27d4   :  { %4346 = vmatpush3.bf16.msk.msra.mxu1 %vm5037_vm4, %v5282_v5  ;;  %4241 = vmatprep.mubr.msk.f32.mxu1 %vm4818_vm0, %v4817_v0 }
0x27d5   :  { %4347 = vmatprep.subr.bf16.mxu1 %v4820_v27 }
0x28a1   :  { %v3207_v36 = vpop.f32.mrb[26].mxu0 }
0x28a2   :  { %v3211_v37 = vadd.f32 %v3207_v36, %v5271_v47  ;;  %v4236_v39 = vpop.f32.mrb[27].mxu0 }
0x28a4   :  { %4589 = vtanh.f32 %v3211_v37  ;;  %v3944_v46 = vmul.f32 -1.442695, %v3211_v37 }
0x28a6   :  { %v3105_v41 = vpop.f32.mrb[30].mxu1 }
0x28a7   :  { %v3106_v42 = vadd.f32 %v5307_v2, %v3105_v41  ;;  %v4231_v43 = vpop.f32.mrb[31].mxu1 }
0x28a9   :  { %4591 = vtanh.f32 %v3106_v42  ;;  %v3941_v48 = vmul.f32 -1.442695, %v3106_v42 }
0x28aa   :  { %4593 = vpow2.f32 %v3944_v46 }
0x28ab   :  { %4595 = vpow2.f32 %v3941_v48 }
0x28ae   :  { %v4590_v44 = vpop.eup %4589 }
0x28af   :  { %3221 = vrot.lane.b32.xlu1 %v4590_v44, %s4823_s24 }
0x28b3   :  { %v4592_v45 = vpop.eup %4591 }
0x28b4   :  { %3118 = vrot.lane.b32.xlu0 %v4592_v45, %s4819_s21  ;;  %v4594_v49 = vpop.eup %4593 }
0x28b5   :  { %v3215_v28 = vadd.f32 1.0, %v4594_v49  ;;  %v4596_v51 = vpop.eup %4595 }
0x28b6   :  { %v3112_v52 = vadd.f32 1.0, %v4596_v51 }
0x28b7   :  { %4597 = vrcp.f32 %v3215_v28 }
0x28b8   :  { %4599 = vrcp.f32 %v3112_v52 }
0x28c1   :  { %v4598_v53 = vpop.eup %4597 }
0x28c2   :  { %v4600_v56 = vpop.eup %4599  ;;  %v3219_v59 = vmul.f32 %v4598_v53, %v3021_v21 }
0x28c3   :  { %v3116_v62 = vmul.f32 %v4600_v56, %v2918_v24 }
0x2921   :  { %v3222_v54 = vpop.permute.xlu1 %3221 }
0x2922   :  { %v3224_v9 = vmul.f32 %v4598_v53, %v3222_v54 }
0x2924   :  { %3226 = vrot.lane.b32.xlu1 %v3224_v9, %s4824_s5 }
0x2926   :  { %v3119_v57 = vpop.permute.xlu0 %3118 }
0x2927   :  { %v3121_v58 = vmul.f32 %v4600_v56, %v3119_v57 }
0x2929   :  { %3123 = vrot.lane.b32.xlu0 %v3121_v58, %s4812_s16 }
0x2996   :  { %v3227_v60 = vpop.permute.xlu1 %3226 }
0x2997   :  { %v3229_v61 = vadd.f32 %v3227_v60, %v3219_v59 }
0x2999   :  { %4601 = vtanh.f32 %v3229_v61 }
0x299b   :  { %v3124_v63 = vpop.permute.xlu0 %3123 }
0x299c   :  { %v3126_v1 = vadd.f32 %v3124_v63, %v3116_v62 }
0x299e   :  { %4603 = vtanh.f32 %v3126_v1 }
0x29a3   :  { %v4602_v11 = vpop.eup %4601 }
0x29a4   :  { %3232 = vrot.lane.b32.xlu1 %v4602_v11, %s4824_s5 }
0x29a8   :  { %v4604_v3 = vpop.eup %4603 }
0x29a9   :  { %3129 = vrot.lane.b32.xlu0 %v4604_v3, %s4812_s16 }
0x2a16   :  { %v3233_v4 = vpop.permute.xlu1 %3232 }
0x2a17   :  { %v3235_v6 = vmul.f32 %v4598_v53, %v3233_v4 }
0x2a19   :  { %3237 = vrot.lane.b32.xlu0 %v3235_v6, %s4825_s25 }
0x2a1b   :  { %v3130_v7 = vpop.permute.xlu0 %3129 }
0x2a1c   :  { %v5426_v8 = vmul.f32 %v4600_v56, %v3130_v7 }
0x2a1e   :  { %3240 = vrot.lane.b32.xlu1 %v5426_v8, %s4823_s24 }
0x2a8b   :  { %v3238_v10 = vpop.permute.xlu0 %3237 }
0x2a8c   :  { %4247 = vmatmul.mubr.msk.f32.vlgmr.msra.gmra.mrb[28].mxu0 %vm1935_vm7, %v3238_v10 }
0x2a8d   :  { %4257 = vmatpush3.msk.msra.mxu0 %vm357_vm2, %v5252_v38  ;;  %4258 = vmatprep.mubr.msk.f32.mxu0 %vm4818_vm0, %v4817_v0 }
0x2a8e   :  { %4355 = vmatprep.subr.bf16.mxu0 %v4820_v27 }
0x2a90   :  { %v3241_v12 = vpop.permute.xlu1 %3240 }
0x2a91   :  { %v3243_v13 = vsel %vm1935_vm7, %v3238_v10, %v3241_v12 }
0x2a92   :  { %4242 = vmatmul.mubr.msk.f32.vlgmr.msra.gmra.mrb[32].mxu1 %vm353_vm6, %v3243_v13 }
0x2a93   :  { %4350 = vmatpush3.bf16.msk.msra.mxu1 %vm5037_vm4, %v5282_v5  ;;  %4253 = vmatprep.mubr.msk.f32.mxu1 %vm4818_vm0, %v4817_v0 }
0x2a94   :  { %4351 = vmatprep.subr.bf16.mxu1 %v4820_v27 }
0x2b5f   :  { %v3415_v38 = vpop.f32.mrb[28].mxu0 }
0x2b60   :  { %v3419_v14 = vadd.f32 %v3415_v38, %v5271_v47  ;;  %v4248_v16 = vpop.f32.mrb[29].mxu0 }
0x2b62   :  { %4605 = vtanh.f32 %v3419_v14  ;;  %v3950_v22 = vmul.f32 -1.442695, %v3419_v14 }
0x2b65   :  { %v3313_v17 = vpop.f32.mrb[32].mxu1 }
0x2b66   :  { %v3314_v18 = vadd.f32 %v5307_v2, %v3313_v17  ;;  %v4243_v19 = vpop.f32.mrb[33].mxu1 }
0x2b68   :  { %4607 = vtanh.f32 %v3314_v18  ;;  %v3947_v23 = vmul.f32 -1.442695, %v3314_v18 }
0x2b69   :  { %4609 = vpow2.f32 %v3950_v22 }
0x2b6a   :  { %4611 = vpow2.f32 %v3947_v23 }
0x2b6c   :  { %v4606_v20 = vpop.eup %4605 }
0x2b6d   :  { %3429 = vrot.lane.b32.xlu1 %v4606_v20, %s4823_s24 }
0x2b72   :  { %v4608_v21 = vpop.eup %4607 }
0x2b73   :  { %3326 = vrot.lane.b32.xlu0 %v4608_v21, %s4819_s21  ;;  %v4610_v24 = vpop.eup %4609 }
0x2b74   :  { %v3423_v25 = vadd.f32 1.0, %v4610_v24  ;;  %v4612_v26 = vpop.eup %4611 }
0x2b75   :  { %v3320_v30 = vadd.f32 1.0, %v4612_v26 }
0x2b76   :  { %4613 = vrcp.f32 %v3423_v25 }
0x2b77   :  { %4615 = vrcp.f32 %v3320_v30 }
0x2b80   :  { %v4614_v31 = vpop.eup %4613 }
0x2b81   :  { %v4616_v34 = vpop.eup %4615  ;;  %v3427_v37 = vmul.f32 %v4614_v31, %v3229_v61 }
0x2b82   :  { %v3324_v42 = vmul.f32 %v4616_v34, %v3126_v1 }
0x2bdf   :  { %v3430_v32 = vpop.permute.xlu1 %3429 }
0x2be0   :  { %v3432_v33 = vmul.f32 %v4614_v31, %v3430_v32 }
0x2be2   :  { %3434 = vrot.lane.b32.xlu1 %v3432_v33, %s4824_s5 }
0x2be5   :  { %v3327_v35 = vpop.permute.xlu0 %3326 }
0x2be6   :  { %v3329_v36 = vmul.f32 %v4616_v34, %v3327_v35 }
0x2be8   :  { %3331 = vrot.lane.b32.xlu0 %v3329_v36, %s4812_s16 }
0x2c54   :  { %v3435_v39 = vpop.permute.xlu1 %3434 }
0x2c55   :  { %v3437_v41 = vadd.f32 %v3435_v39, %v3427_v37 }
0x2c57   :  { %4617 = vtanh.f32 %v3437_v41 }
0x2c5a   :  { %v3332_v43 = vpop.permute.xlu0 %3331 }
0x2c5b   :  { %v3334_v44 = vadd.f32 %v3332_v43, %v3324_v42 }
0x2c5d   :  { %4619 = vtanh.f32 %v3334_v44 }
0x2c61   :  { %v4618_v45 = vpop.eup %4617 }
0x2c62   :  { %3440 = vrot.lane.b32.xlu1 %v4618_v45, %s4824_s5 }
0x2c67   :  { %v4620_v46 = vpop.eup %4619 }
0x2c68   :  { %3337 = vrot.lane.b32.xlu0 %v4620_v46, %s4812_s16  ;;  %v146_v46 = vld [vmem:[#allocation12] sm:$0xff] }
0x2cd4   :  { %v3441_v48 = vpop.permute.xlu1 %3440 }
0x2cd5   :  { %v3443_v49 = vmul.f32 %v4614_v31, %v3441_v48  ;;  %v147_v48 = vld [vmem:[#allocation12 + $0x8] sm:$0xff] }
0x2cd7   :  { %3445 = vrot.lane.b32.xlu0 %v3443_v49, %s4825_s25  ;;  %v148_v49 = vld [vmem:[#allocation12 + $0x10] sm:$0xff] }
0x2cda   :  { %v3338_v28 = vpop.permute.xlu0 %3337 }
0x2cdb   :  { %v5453_v51 = vmul.f32 %v4616_v34, %v3338_v28  ;;  %v149_v28 = vld [vmem:[#allocation12 + $0x18] sm:$0xff] }
0x2cdd   :  { %3448 = vrot.lane.b32.xlu1 %v5453_v51, %s4823_s24 }
0x2d49   :  { %v3446_v52 = vpop.permute.xlu0 %3445 }
0x2d4a   :  { %4259 = vmatmul.mubr.msk.f32.vlgmr.msra.gmra.mrb[30].mxu0 %vm1935_vm7, %v3446_v52 }
0x2d4b   :  { %4284 = vmatprep.mubr.msk.f32.mxu0 %vm4818_vm0, %v4817_v0 }
0x2d4f   :  { %v3449_v53 = vpop.permute.xlu1 %3448 }
0x2d50   :  { %v3451_v54 = vsel %vm1935_vm7, %v3446_v52, %v3449_v53  ;;  %v151_v52 = vld [vmem:[#allocation12 + $0x28] sm:$0xff] }
0x2d51   :  { %4254 = vmatmul.mubr.msk.f32.vlgmr.msra.gmra.mrb[34].mxu1 %vm353_vm6, %v3451_v54  ;;  %v152_v54 = vld [vmem:[#allocation12 + $0x30] sm:$0xff] }
0x2d52   :  { %4354 = vmatpush3.bf16.msk.msra.mxu1 %vm5037_vm4, %v5282_v5  ;;  %4265 = vmatprep.mubr.msk.f32.mxu1 %vm4818_vm0, %v4817_v0  ;;  %vm3770_vm0 = vcmask 523264  }
0x2e1d   :  { %v3623_v9 = vpop.f32.mrb[30].mxu0 }
0x2e1e   :  { %v3627_v56 = vadd.f32 %v3623_v9, %v5271_v47  ;;  %v4260_v57 = vpop.f32.mrb[31].mxu0  ;;  %v153_v9 = vld [vmem:[#allocation12 + $0x38] sm:$0xff] }
0x2e20   :  { %4621 = vtanh.f32 %v3627_v56  ;;  %v3956_v29 = vmul.f32 -1.442695, %v3627_v56  ;;  %v4365_v56 = vpack.c.bf16 %v153_v9, %v152_v54 }
0x2e24   :  { %v3521_v58 = vpop.f32.mrb[34].mxu1 }
0x2e25   :  { %v3522_v59 = vadd.f32 %v5307_v2, %v3521_v58  ;;  %v4255_v60 = vpop.f32.mrb[35].mxu1 }
0x2e27   :  { %4623 = vtanh.f32 %v3522_v59  ;;  %v3953_v5 = vmul.f32 -1.442695, %v3522_v59 }
0x2e28   :  { %4625 = vpow2.f32 %v3956_v29 }
0x2e29   :  { %4627 = vpow2.f32 %v3953_v5 }
0x2e2a   :  { %v4622_v61 = vpop.eup %4621 }
0x2e2b   :  { %3637 = vrot.lane.b32.xlu1 %v4622_v61, %s4823_s24 }
0x2e31   :  { %v4624_v62 = vpop.eup %4623 }
0x2e32   :  { %3534 = vrot.lane.b32.xlu0 %v4624_v62, %s4819_s21  ;;  %v4626_v0 = vpop.eup %4625 }
0x2e33   :  { %v3631_v63 = vadd.f32 1.0, %v4626_v0  ;;  %v4628_v47 = vpop.eup %4627 }
0x2e34   :  { %v3528_v1 = vadd.f32 1.0, %v4628_v47 }
0x2e35   :  { %4629 = vrcp.f32 %v3631_v63 }
0x2e36   :  { %4631 = vrcp.f32 %v3528_v1 }
0x2e3f   :  { %v4630_v11 = vpop.eup %4629 }
0x2e40   :  { %v4632_v6 = vpop.eup %4631  ;;  %v3635_v12 = vmul.f32 %v4630_v11, %v3437_v41 }
0x2e41   :  { %v3532_v14 = vmul.f32 %v4632_v6, %v3334_v44 }
0x2e9d   :  { %v3638_v3 = vpop.permute.xlu1 %3637 }
0x2e9e   :  { %v3640_v4 = vmul.f32 %v4630_v11, %v3638_v3 }
0x2ea0   :  { %3642 = vrot.lane.b32.xlu1 %v3640_v4, %s4824_s5 }
0x2ea4   :  { %v3535_v7 = vpop.permute.xlu0 %3534 }
0x2ea5   :  { %v3537_v10 = vmul.f32 %v4632_v6, %v3535_v7 }
0x2ea7   :  { %3539 = vrot.lane.b32.xlu0 %v3537_v10, %s4812_s16 }
0x2f12   :  { %v3643_v13 = vpop.permute.xlu1 %3642 }
0x2f13   :  { %v3645_v38 = vadd.f32 %v3643_v13, %v3635_v12 }
0x2f15   :  { %4633 = vtanh.f32 %v3645_v38 }
0x2f19   :  { %v3540_v16 = vpop.permute.xlu0 %3539 }
0x2f1a   :  { %v3542_v17 = vadd.f32 %v3540_v16, %v3532_v14 }
0x2f1c   :  { %4635 = vtanh.f32 %v3542_v17 }
0x2f1f   :  { %v4634_v18 = vpop.eup %4633 }
0x2f20   :  { %3648 = vrot.lane.b32.xlu1 %v4634_v18, %s4824_s5 }
0x2f26   :  { %v4636_v19 = vpop.eup %4635 }
0x2f27   :  { %3545 = vrot.lane.b32.xlu0 %v4636_v19, %s4812_s16 }
0x2f92   :  { %v3649_v20 = vpop.permute.xlu1 %3648 }
0x2f93   :  { %v3651_v21 = vmul.f32 %v4630_v11, %v3649_v20 }
0x2f95   :  { %3653 = vrot.lane.b32.xlu0 %v3651_v21, %s4825_s25 }
0x2f99   :  { %v3546_v22 = vpop.permute.xlu0 %3545 }
0x2f9a   :  { %v3548_v23 = vmul.f32 %v4632_v6, %v3546_v22 }
0x2f9c   :  { %3656 = vrot.lane.b32.xlu1 %v3548_v23, %s4823_s24 }
0x3007   :  { %v3654_v24 = vpop.permute.xlu0 %3653 }
0x300e   :  { %v3657_v25 = vpop.permute.xlu1 %3656 }
0x300f   :  { %v3659_v26 = vsel %vm1935_vm7, %v3654_v24, %v3657_v25 }
0x3010   :  { %4266 = vmatmul.mubr.msk.f32.vlgmr.msra.gmra.mrb[36].mxu1 %vm353_vm6, %v3659_v26 }
0x30e3   :  { %v3729_v30 = vpop.f32.mrb[36].mxu1 }
0x30e4   :  { %v3730_v31 = vadd.f32 %v5307_v2, %v3729_v30  ;;  %v4267_v32 = vpop.f32.mrb[37].mxu1 }
0x30e6   :  { %4637 = vtanh.f32 %v3730_v31  ;;  %v3959_v34 = vmul.f32 -1.442695, %v3730_v31 }
0x30e8   :  { %4639 = vpow2.f32 %v3959_v34 }
0x30f0   :  { %v4638_v33 = vpop.eup %4637 }
0x30f1   :  { %3742 = vrot.lane.b32.xlu0 %v4638_v33, %s4819_s21  ;;  %s4777_s21 = scalar_lea.vmem %s3852_s30, 32 }
0x30f2   :  { %v4640_v35 = vpop.eup %4639  ;;  %p4778_p6 = scmp.ne.s32.totalorder %s3852_s30, %s4777_s21  ;;  %p4783_p8 = scmp.lt.s32.totalorder %s4777_s21, %s4777_s21 }
0x30f3   :  { %v3736_v36 = vadd.f32 1.0, %v4640_v35 }
0x30f4   :  { %p4784_p9 = por %p4783_p8, %p4782_p7 }
0x30f5   :  { %4641 = vrcp.f32 %v3736_v36 }
0x30f6   :  { %p4785_p10 = pnand %p4784_p9, %p4778_p6 }
0x30ff   :  { %v4642_v37 = vpop.eup %4641 }
0x3100   :  { %v3740_v2 = vmul.f32 %v4642_v37, %v3542_v17 }
0x3163   :  { %v3743_v39 = vpop.permute.xlu0 %3742 }
0x3164   :  { %v3745_v41 = vmul.f32 %v4642_v37, %v3743_v39 }
0x3166   :  { %3747 = vrot.lane.b32.xlu1 %v3745_v41, %s4812_s16 }
0x316a   :  { %2305 = vrot.lane.b32.xlu1 %v5317_v40, %s4822_s3  ;;  %v4356_v40 = vpack.c.bf16 %v147_v48, %v146_v46 }
0x316c   :  { %4357 = vmatpush3.bf16.msra.mxu0 %v4356_v40 }
0x316d   :  { %4358 = vmatprep.subr.bf16.mxu0 %v4820_v27 }
0x316e   :  { %2926 = vrot.lane.b32.xlu1 %v5399_v50, %s4812_s16  ;;  %v4359_v50 = vpack.c.bf16 %v149_v28, %v148_v49 }
0x3170   :  { %4360 = vmatpush3.bf16.msra.mxu0 %v4359_v50 }
0x3171   :  { %4361 = vmatprep.subr.bf16.mxu0 %v4820_v27 }
0x3172   :  { %3342 = vrot.lane.b32.xlu1 %v5453_v51, %s4826_s12  ;;  %v150_v51 = vld [vmem:[#allocation12 + $0x20] sm:$0xff] }
0x3173   :  { %v4362_v53 = vpack.c.bf16 %v151_v52, %v150_v51 }
0x3175   :  { %4363 = vmatpush3.bf16.msra.mxu0 %v4362_v53 }
0x3176   :  { %4364 = vmatprep.subr.bf16.mxu0 %v4820_v27 }
0x3179   :  { %4366 = vmatpush3.bf16.msra.mxu0 %v4365_v56 }
0x31d8   :  { %v3748_v42 = vpop.permute.xlu1 %3747 }
0x31d9   :  { %v3750_v43 = vadd.f32 %v3748_v42, %v3740_v2 }
0x31db   :  { %4643 = vtanh.f32 %v3750_v43 }
0x31dc   :  { %v2306_v44 = vpop.permute.xlu1 %2305 }
0x31dd   :  { %2309 = vst.msk [vmem:[#allocation2] sm:$0x3] %vm2308_vm8, %v2306_v44 }
0x31e0   :  { %v2927_v58 = vpop.permute.xlu1 %2926 }
0x31e4   :  { %v3343_v60 = vpop.permute.xlu1 %3342 }
0x31e5   :  { %v4644_v45 = vpop.eup %4643 }
0x31e6   :  { %3753 = vrot.lane.b32.xlu0 %v4644_v45, %s4812_s16  ;;  %s4829_s16 = smov 40  }
0x31ea   :  { %2513 = vrot.lane.b32.xlu0 %v5345_v15, %s4825_s25 }
0x31ee   :  { %3134 = vrot.lane.b32.xlu0 %v5426_v8, %s4827_s29 }
0x31f2   :  { %3550 = vrot.lane.b32.xlu0 %v3548_v23, %s4828_s18 }
0x3258   :  { %v3754_v57 = vpop.permute.xlu0 %3753 }
0x3259   :  { %v3756_v15 = vmul.f32 %v4642_v37, %v3754_v57 }
0x325b   :  { %3758 = vrot.lane.b32.xlu1 %v3756_v15, %s4829_s16 }
0x325c   :  { %v2514_v8 = vpop.permute.xlu0 %2513 }
0x325d   :  { %2517 = vst.msk [vmem:[#allocation2] sm:$0x3] %vm2516_vm9, %v2514_v8 }
0x325e   :  { %2721 = vst.msk [vmem:[#allocation2] sm:$0x3] %vm2720_vm10, %v5372_v55  ;;  %v3960_v55 = vld [vmem:[%s5524_s14] ss:$0 sm:$0xff] }
0x325f   :  { %2930 = vst.msk [vmem:[#allocation2] sm:$0x3] %vm2929_vm11, %v2927_v58 }
0x3260   :  { %v3135_v59 = vpop.permute.xlu0 %3134 }
0x3261   :  { %3138 = vst.msk [vmem:[#allocation2] sm:$0x3] %vm3137_vm12, %v3135_v59 }
0x3262   :  { %3346 = vst.msk [vmem:[#allocation2] sm:$0x3] %vm3345_vm13, %v3343_v60 }
0x3264   :  { %v3551_v27 = vpop.permute.xlu0 %3550 }
0x3265   :  { %3554 = vst.msk [vmem:[#allocation2] sm:$0x3] %vm3553_vm14, %v3551_v27 }
0x32cd   :  { %v3759_v61 = vpop.permute.xlu1 %3758 }
0x32ce   :  { %3762 = vst.msk [vmem:[#allocation2] sm:$0x3] %vm3761_vm15, %v3759_v61 }
0x32d5   :  { %v3763_v62 = vld [vmem:[#allocation2] sm:$0x3] }
0x32d6   :  { %4285 = vmatmul.mubr.msk.f32.vlgmr.msra.gmra.mrb[32].mxu0 %vm3770_vm0, %v3763_v62 }
0x33a9   :  { %v3840_v29 = vpop.f32.mrb[32].mxu0 }
0x33aa   :  { %v3841_v5 = vadd.f32 %v3960_v55, %v3840_v29  ;;  %v4286_v0 = vpop.f32.mrb[33].mxu0 }
0x33ac   :  { %3844 = vst [vmem:[#allocation14] sm:$0x3] %v3841_v5 }
0x33ad   :  { %4788 = shalt.err (!%p4785_p10)
}
0x33ae   :  { %s4789_s23 = scalar_lea.hbm %s5525_s15, 32 }
0x33af   :  { %p4790_p11 = scmp.ne.s32.totalorder %s5525_s15, %s4789_s23  ;;  %p4793_p12 = scmp.lt.u32.totalorder %s4789_s23, %s5525_s15 }
0x33b1   :  { %p4795_p13 = pnand %p4793_p12, %p4790_p11 }
0x33b3   :  { %4798 = shalt.err (!%p4795_p13)
}
0x33b4   :  { %3854 = dma.vmem_to_hbm [thread:$0]  %s3852_s30, 32, %s5525_s15, [#allocation5]  }
0x33b5   :  { %4807 = dma.done.wait [#allocation5], 32  }
0x33b6   :  { %4808 = vsyncadd [#allocation5], 4294967264 }
0x33b7   :  { %3858 = vsyncpa [#allocation4], 1 }
0x33b8   :  { %3859 = vsyncpa [#allocation7], 1 }
0x33b9   :  { %3860 = vsyncpa [#allocation10], 1 }
0x33ba   :  { %3861 = vsyncpa [#allocation13], 1 }
0x33bb   :  { %3862 = vsyncpa [#allocation5], 1 }

</bundles_post_ra>
